<compile_context>
chip_gen: v6e
topology: v6e:2x2x1
jax: 0.10.0
libtpu: 0.0.40
codegen_flags: <defaults>
</compile_context>

<pallas_src>
import functools
import math

import jax
import jax.numpy as jnp
from jax.experimental import pallas as pl
from jax.experimental.pallas import tpu as pltpu  # noqa: F401  (kept for TPU-specific tuning hooks)

# ----------------------------- hyper-parameters ------------------------------
EMBED_DIM = 32
IMAGE_RES = 16
PATCH = 8
VISION_WIDTH = 64            # vision_heads = VISION_WIDTH // 64 = 1
VISION_LAYERS = 2
NO_FRAME = 2                 # T (frames per video)
CONTEXT_LEN = 8
VOCAB = 64
T_WIDTH = 32
T_HEADS = 2
T_LAYERS = 2
BATCH = 2                    # videos; image batch = BATCH * NO_FRAME
VISION_HEADS = VISION_WIDTH // 64


# ------------------------------ Pallas kernels --------------------------------
def _apply_act(h, act):
    if act == "quick_gelu":                     # x * sigmoid(1.702 x)
        return h * jax.nn.sigmoid(1.702 * h)
    if act == "gelu":                           # exact (erf) GELU = torch nn.GELU default
        return 0.5 * h * (1.0 + jax.lax.erf(h * 0.7071067811865476))
    return h


def _linear_kernel(x_ref, w_ref, *rest, act, has_bias):
    if has_bias:
        b_ref, o_ref = rest
    else:
        (o_ref,) = rest
    h = jnp.dot(x_ref[...], w_ref[...], preferred_element_type=jnp.float32)
    if has_bias:
        h = h + b_ref[...]
    o_ref[...] = _apply_act(h, act)


def pallas_linear(x, w, b=None, act=None):
    """y = act(x @ w [+ b]); whole operands in one VMEM block (no grid, no padding)."""
    M, K = x.shape
    N = w.shape[1]
    args = [x.astype(jnp.float32), w.astype(jnp.float32)]
    if b is not None:
        args.append(b.reshape(1, N).astype(jnp.float32))
    kern = functools.partial(_linear_kernel, act=act, has_bias=b is not None)
    return pl.pallas_call(
        kern, out_shape=jax.ShapeDtypeStruct((M, N), jnp.float32))(*args)


def _ln_linear_kernel(x_ref, g_ref, bta_ref, w_ref, *rest, act, has_bias):
    if has_bias:
        b_ref, o_ref = rest
    else:
        (o_ref,) = rest
    x = x_ref[...].astype(jnp.float32)
    mu = jnp.mean(x, axis=-1, keepdims=True)
    var = jnp.mean(jnp.square(x - mu), axis=-1, keepdims=True)
    y = (x - mu) * jax.lax.rsqrt(var + 1e-5) * g_ref[...] + bta_ref[...]
    h = jnp.dot(y, w_ref[...], preferred_element_type=jnp.float32)
    if has_bias:
        h = h + b_ref[...]
    o_ref[...] = _apply_act(h, act)


def pallas_ln_linear(x, g, beta, w, b=None, act=None):
    """y = act(LayerNorm(x) @ w [+ b]) — LN fused into the matmul prologue."""
    M, K = x.shape
    N = w.shape[1]
    args = [x.astype(jnp.float32),
            g.reshape(1, K).astype(jnp.float32),
            beta.reshape(1, K).astype(jnp.float32),
            w.astype(jnp.float32)]
    if b is not None:
        args.append(b.reshape(1, N).astype(jnp.float32))
    kern = functools.partial(_ln_linear_kernel, act=act, has_bias=b is not None)
    return pl.pallas_call(
        kern, out_shape=jax.ShapeDtypeStruct((M, N), jnp.float32))(*args)


def _linear_residual_kernel(x_ref, w_ref, b_ref, r_ref, o_ref):
    o_ref[...] = (jnp.dot(x_ref[...], w_ref[...], preferred_element_type=jnp.float32)
                  + b_ref[...] + r_ref[...])


def pallas_linear_residual(x, w, b, r):
    """y = x @ w + b + r — residual add fused into the matmul epilogue."""
    M, K = x.shape
    N = w.shape[1]
    return pl.pallas_call(
        _linear_residual_kernel,
        out_shape=jax.ShapeDtypeStruct((M, N), jnp.float32),
    )(x.astype(jnp.float32), w.astype(jnp.float32),
      b.reshape(1, N).astype(jnp.float32), r.astype(jnp.float32))


def _adapter_kernel(x_ref, w1_ref, b1_ref, w2_ref, b2_ref, o_ref, *, skip):
    x = x_ref[...]
    h = jnp.dot(x, w1_ref[...], preferred_element_type=jnp.float32) + b1_ref[...]
    h = 0.5 * h * (1.0 + jax.lax.erf(h * 0.7071067811865476))      # nn.GELU (erf)
    y = jnp.dot(h, w2_ref[...], preferred_element_type=jnp.float32) + b2_ref[...]
    o_ref[...] = (x + y) if skip else y


def pallas_adapter(x2d, p, skip):
    """Adapter: fc2(GELU(fc1(x))) [+ x] fused in one kernel (dh is tiny)."""
    M, D = x2d.shape
    dh = p['fc1_w'].shape[1]
    kern = functools.partial(_adapter_kernel, skip=skip)
    return pl.pallas_call(
        kern, out_shape=jax.ShapeDtypeStruct((M, D), jnp.float32)
    )(x2d.astype(jnp.float32),
      p['fc1_w'].astype(jnp.float32), p['fc1_b'].reshape(1, dh).astype(jnp.float32),
      p['fc2_w'].astype(jnp.float32), p['fc2_b'].reshape(1, D).astype(jnp.float32))


def _layernorm_kernel(x_ref, g_ref, b_ref, o_ref):
    x = x_ref[...].astype(jnp.float32)
    mu = jnp.mean(x, axis=-1, keepdims=True)
    var = jnp.mean(jnp.square(x - mu), axis=-1, keepdims=True)
    o_ref[...] = (x - mu) * jax.lax.rsqrt(var + 1e-5) * g_ref[...] + b_ref[...]


def pallas_layernorm(x2d, g, b):
    """Standalone LN (only used for ln_pre); whole array in one block."""
    M, D = x2d.shape
    return pl.pallas_call(
        _layernorm_kernel, out_shape=jax.ShapeDtypeStruct((M, D), jnp.float32)
    )(x2d.astype(jnp.float32), g.reshape(1, D).astype(jnp.float32),
      b.reshape(1, D).astype(jnp.float32))


def _attn_kernel(q_ref, k_ref, v_ref, *rest, scale, has_mask):
    if has_mask:
        m_ref, o_ref = rest
    else:
        (o_ref,) = rest
    q = q_ref[...] * scale                       # (B, L, hd)
    k = k_ref[...]
    v = v_ref[...]
    # 'bqd,bkd->bqk' — MXU consumes k un-transposed (no XLU transpose).
    s = jax.lax.dot_general(q, k, (((2,), (2,)), ((0,), (0,))),
                            preferred_element_type=jnp.float32)
    if has_mask:
        s = s + m_ref[...][None]                 # additive (L, L) mask
    s = s - jnp.max(s, axis=-1, keepdims=True)
    e = jnp.exp(s)
    denom = jnp.sum(e, axis=-1, keepdims=True)
    # 'bqk,bkd->bqd'
    o = jax.lax.dot_general(e, v, (((2,), (1,)), ((0,), (0,))),
                            preferred_element_type=jnp.float32)
    o_ref[...] = o * pl.reciprocal(denom, approx=True)


def pallas_attention(q, k, v, mask, scale):
    """q,k,v: (B, L, hd) f32; mask: (L, L) additive or None; one batched kernel call."""
    B, L, hd = q.shape
    args = [q.astype(jnp.float32), k.astype(jnp.float32), v.astype(jnp.float32)]
    if mask is not None:
        args.append(mask.astype(jnp.float32))
    kern = functools.partial(_attn_kernel, scale=scale, has_mask=mask is not None)
    return pl.pallas_call(
        kern, out_shape=jax.ShapeDtypeStruct((B, L, hd), jnp.float32))(*args)


# ------------------------------- model glue -----------------------------------
def attention_block(x, ln_w, ln_b, ap, n_head, mask, residual):
    """out_proj(MHA(LN(x))) [+ residual].  x: (L, N, E), torch batch_first=False."""
    L, N, E = x.shape
    hd = E // n_head
    x2d = x.reshape(L * N, E)
    qkv = pallas_ln_linear(x2d, ln_w, ln_b, ap['in_w'], ap['in_b'])       # LN + QKV fused
    qkv = qkv.reshape(L, N, 3 * E)
    q, k, v = qkv[..., :E], qkv[..., E:2 * E], qkv[..., 2 * E:]
    split = lambda t: t.reshape(L, N * n_head, hd).transpose(1, 0, 2)     # (N*h, L, hd)
    o = pallas_attention(split(q), split(k), split(v), mask, hd ** -0.5)  # all heads, one call
    o2d = o.transpose(1, 0, 2).reshape(L * N, E)
    if residual is not None:
        y = pallas_linear_residual(o2d, ap['out_w'], ap['out_b'],
                                   residual.reshape(L * N, E))            # out-proj + residual fused
    else:
        y = pallas_linear(o2d, ap['out_w'], ap['out_b'])
    return y.reshape(L, N, E)


def adapter(x, p, skip):
    shp = x.shape
    return pallas_adapter(x.reshape(-1, shp[-1]), p, skip).reshape(shp)


def mlp_residual(x, ln_w, ln_b, p):
    """x + c_proj(QuickGELU(c_fc(LN(x)))) — two fused kernels."""
    shp = x.shape
    d = shp[-1]
    x2d = x.reshape(-1, d)
    h = pallas_ln_linear(x2d, ln_w, ln_b, p['fc_w'], p['fc_b'], act="quick_gelu")
    y = pallas_linear_residual(h, p['proj_w'], p['proj_b'], x2d)
    return y.reshape(shp)


def res_block_image(x, p, n_head, T):
    l, bt, d = x.shape
    b = bt // T
    # temporal adaptation branch (config.T_Adapter=True, config.prompt.use=False);
    # reproduces the module's exact view / permute / reshape sequence.
    xt = x.reshape(l, b, T, d).transpose(2, 0, 1, 3).reshape(T, l * b, d)
    xt = attention_block(xt, p['ln1_w'], p['ln1_b'], p['attn'], n_head, None, residual=None)
    xt = adapter(xt, p['t_adapter'], skip=False)
    xt = xt.reshape(T, l, b, d).transpose(1, 0, 2, 3).reshape(l, T * b, d)
    x = x + xt
    # spatial attention (residual fused into the out-proj epilogue)
    x = attention_block(x, p['ln1_w'], p['ln1_b'], p['attn'], n_head, None, residual=x)
    x = adapter(x, p['adapter'], skip=True)
    x = mlp_residual(x, p['ln2_w'], p['ln2_b'], p['mlp'])
    return x


def res_block_text(x, p, n_head, mask):
    x = attention_block(x, p['ln1_w'], p['ln1_b'], p['attn'], n_head, mask, residual=x)
    x = adapter(x, p['adapter'], skip=True)
    x = mlp_residual(x, p['ln2_w'], p['ln2_b'], p['mlp'])
    return x


def encode_image(params, image):
    v = params['visual']
    BT, C, H, W = image.shape
    pth = PATCH
    gh, gw = H // pth, W // pth
    d = VISION_WIDTH
    # conv1 (stride = kernel = patch) as im2col + matmul (no bias)
    patches = image.reshape(BT, C, gh, pth, gw, pth)
    patches = patches.transpose(0, 2, 4, 1, 3, 5).reshape(BT * gh * gw, C * pth * pth)
    wconv = v['conv1_w'].reshape(d, C * pth * pth).T
    x = pallas_linear(patches, wconv)                       # (BT*gh*gw, d)
    x = x.reshape(BT, gh * gw, d)
    cls = jnp.broadcast_to(v['class_embedding'].reshape(1, 1, d), (BT, 1, d))
    x = jnp.concatenate([cls, x], axis=1)                   # (BT, n, d)
    x = x + v['positional_embedding'][None]
    n = x.shape[1]
    b = BT // NO_FRAME
    # '(b t) n d -> (b n) t d'
    x = x.reshape(b, NO_FRAME, n, d).transpose(0, 2, 1, 3).reshape(b * n, NO_FRAME, d)
    x = x + v['temporal_embedding']
    # '(b n) t d -> (b t) n d'
    x = x.reshape(b, n, NO_FRAME, d).transpose(0, 2, 1, 3).reshape(b * NO_FRAME, n, d)
    x = pallas_layernorm(x.reshape(-1, d), v['ln_pre_w'], v['ln_pre_b'])
    x = x.reshape(b * NO_FRAME, n, d).transpose(1, 0, 2)    # (n, BT, d)
    for blk in v['blocks']:
        x = res_block_image(x, blk, VISION_HEADS, NO_FRAME)
    x = x.transpose(1, 0, 2)                                # (BT, n, d)
    # ln_post on CLS token fused with the (bias-free) projection
    x = pallas_ln_linear(x[:, 0, :], v['ln_post_w'], v['ln_post_b'], v['proj'])
    return x                                                # (BT, EMBED_DIM)


def encode_text(params, text):
    t = params['text']
    x = jnp.take(t['token_embedding'], text, axis=0)        # (B, Lc, tw)
    x = x + t['positional_embedding'][None]
    x = x.transpose(1, 0, 2)                                # (Lc, B, tw)
    for blk in t['blocks']:
        x = res_block_text(x, blk, T_HEADS, t['attn_mask'])
    x = x.transpose(1, 0, 2)                                # (B, Lc, tw)
    eot = jnp.argmax(text, axis=-1)
    x_eot = x[jnp.arange(x.shape[0]), eot]                  # (B, tw)
    # ln_final is row-wise so it commutes with the row gather -> fuse LN + text_projection
    x = pallas_ln_linear(x_eot, t['ln_final_w'], t['ln_final_b'], t['text_projection'])
    return x                                                # (B, EMBED_DIM)


@jax.jit
def clip_forward(params, image, text):
    img_f = encode_image(params, image)
    txt_f = encode_text(params, text)
    img_f = img_f / jnp.linalg.norm(img_f, axis=-1, keepdims=True)
    txt_f = txt_f / jnp.linalg.norm(txt_f, axis=-1, keepdims=True)
    scale = jnp.exp(params['logit_scale'])
    logits_per_image = scale * pallas_linear(img_f, txt_f.T)
    logits_per_text = logits_per_image.T                    # mathematically identical; no 2nd matmul
    return logits_per_image, logits_per_text


# ------------------------------ parameter init --------------------------------
class _KeyGen:
    def __init__(self, seed):
        self._key = jax.random.PRNGKey(seed)

    def __call__(self):
        self._key, sub = jax.random.split(self._key)
        return sub


def _randn(kg, shape, std):
    return std * jax.random.normal(kg(), shape, jnp.float32)


def init_block_params(kg, d, with_t_adapter):
    dh = int(d * 0.25)
    attn_std = d ** -0.5
    fc_std = (2 * d) ** -0.5
    proj_std = attn_std * 0.5

    def adapter_p():
        # NOTE: real model zero-inits D_fc2 (init_adapter); we use small random
        # values so the adapter path is numerically non-trivial.
        return dict(fc1_w=_randn(kg, (d, dh), 0.02), fc1_b=jnp.zeros((dh,), jnp.float32),
                    fc2_w=_randn(kg, (dh, d), 0.02), fc2_b=jnp.zeros((d,), jnp.float32))

    p = dict(
        ln1_w=jnp.ones((d,), jnp.float32), ln1_b=jnp.zeros((d,), jnp.float32),
        ln2_w=jnp.ones((d,), jnp.float32), ln2_b=jnp.zeros((d,), jnp.float32),
        attn=dict(in_w=_randn(kg, (d, 3 * d), attn_std), in_b=jnp.zeros((3 * d,), jnp.float32),
                  out_w=_randn(kg, (d, d), proj_std), out_b=jnp.zeros((d,), jnp.float32)),
        mlp=dict(fc_w=_randn(kg, (d, 4 * d), fc_std), fc_b=jnp.zeros((4 * d,), jnp.float32),
                 proj_w=_randn(kg, (4 * d, d), proj_std), proj_b=jnp.zeros((d,), jnp.float32)),
        adapter=adapter_p(),
    )
    if with_t_adapter:
        p['t_adapter'] = adapter_p()
    return p


def init_params(seed=0):
    kg = _KeyGen(seed)
    d = VISION_WIDTH
    scale = d ** -0.5
    n_tok = (IMAGE_RES // PATCH) ** 2 + 1
    visual = dict(
        conv1_w=_randn(kg, (d, 3, PATCH, PATCH), 0.02),
        class_embedding=_randn(kg, (d,), scale),
        positional_embedding=_randn(kg, (n_tok, d), scale),
        temporal_embedding=jnp.zeros((1, NO_FRAME, d), jnp.float32),
        ln_pre_w=jnp.ones((d,), jnp.float32), ln_pre_b=jnp.zeros((d,), jnp.float32),
        ln_post_w=jnp.ones((d,), jnp.float32), ln_post_b=jnp.zeros((d,), jnp.float32),
        proj=_randn(kg, (d, EMBED_DIM), scale),
        blocks=[init_block_params(kg, d, True) for _ in range(VISION_LAYERS)],
    )
    tw = T_WIDTH
    idx = jnp.arange(CONTEXT_LEN)
    causal = jnp.where(idx[None, :] > idx[:, None],
                       jnp.float32(-jnp.inf), jnp.float32(0.0))
    text = dict(
        token_embedding=_randn(kg, (VOCAB, tw), 0.02),
        positional_embedding=_randn(kg, (CONTEXT_LEN, tw), 0.01),
        ln_final_w=jnp.ones((tw,), jnp.float32), ln_final_b=jnp.zeros((tw,), jnp.float32),
        text_projection=_randn(kg, (tw, EMBED_DIM), tw ** -0.5),
        attn_mask=causal,
        blocks=[init_block_params(kg, tw, False) for _ in range(T_LAYERS)],
    )
    return dict(visual=visual, text=text,
                logit_scale=jnp.float32(math.log(1.0 / 0.07)))


# ----------------------------------- main --------------------------------------
if __name__ == "__main__":
    params = init_params(0)
    key = jax.random.PRNGKey(0)
    k_img, k_txt = jax.random.split(key)
    image = jax.random.normal(
        k_img, (BATCH * NO_FRAME, 3, IMAGE_RES, IMAGE_RES), jnp.float32)
    text = jax.random.randint(k_txt, (BATCH, CONTEXT_LEN), 0, VOCAB, jnp.int32)

    logits_per_image, logits_per_text = clip_forward(params, image, text)
    jax.block_until_ready((logits_per_image, logits_per_text))

    assert logits_per_image.shape == (BATCH * NO_FRAME, BATCH)
    assert logits_per_text.shape == (BATCH, BATCH * NO_FRAME)
    assert bool(jnp.all(jnp.isfinite(logits_per_image)))
    assert bool(jnp.all(jnp.isfinite(logits_per_text)))
    print("KERNEL_OK")
</pallas_src>

<mosaic_0001>
module attributes {stable_mosaic.version = 11 : i64} {
  func.func @_linear_kernel(%arg0: memref<16x192xf32, #tpu.memory_space<vmem>>, %arg1: memref<192x64xf32, #tpu.memory_space<vmem>>, %arg2: memref<16x64xf32, #tpu.memory_space<vmem>>) attributes {dimension_semantics = [], scalar_prefetch = 0 : i64, scratch_operands = 0 : i64, tpu.core_type = #tpu.core_type<tc>} {
    %c0 = arith.constant 0 : index
    %c0_0 = arith.constant 0 : index
    %0 = vector.load %arg0[%c0, %c0_0] : memref<16x192xf32, #tpu.memory_space<vmem>>, vector<16x192xf32>
    %c0_1 = arith.constant 0 : index
    %c0_2 = arith.constant 0 : index
    %1 = vector.load %arg1[%c0_1, %c0_2] : memref<192x64xf32, #tpu.memory_space<vmem>>, vector<192x64xf32>
    %cst = arith.constant dense<0.000000e+00> : vector<16x64xf32>
    %2 = tpu.matmul %0, %1, %cst {dimension_numbers = #tpu.dot_dimension_numbers<[1], [0], [0], [1], [0, 0, 1, 1], [], []>} : vector<16x192xf32>, vector<192x64xf32>, vector<16x64xf32> -> vector<16x64xf32>
    %c0_3 = arith.constant 0 : index
    %c0_4 = arith.constant 0 : index
    %3 = vector.load %arg2[%c0_3, %c0_4] : memref<16x64xf32, #tpu.memory_space<vmem>>, vector<16x64xf32>
    tpu.vector_store %arg2[%c0_3, %c0_4], %2 {strides = array<i32>} : memref<16x64xf32, #tpu.memory_space<vmem>>, vector<16x64xf32>,
    return
  }
}

module attributes {stable_mosaic.version = 11 : i64} {
  func.func @_attn_kernel(%arg0: memref<10x2x64xf32, #tpu.memory_space<vmem>>, %arg1: memref<10x2x64xf32, #tpu.memory_space<vmem>>, %arg2: memref<10x2x64xf32, #tpu.memory_space<vmem>>, %arg3: memref<10x2x64xf32, #tpu.memory_space<vmem>>) attributes {dimension_semantics = [], scalar_prefetch = 0 : i64, scratch_operands = 0 : i64, tpu.core_type = #tpu.core_type<tc>} {
    %c0 = arith.constant 0 : index
    %c0_0 = arith.constant 0 : index
    %c0_1 = arith.constant 0 : index
    %0 = vector.load %arg0[%c0, %c0_0, %c0_1] : memref<10x2x64xf32, #tpu.memory_space<vmem>>, vector<10x2x64xf32>
    %cst = arith.constant 1.250000e-01 : f32
    %1 = vector.broadcast %cst : f32 to vector<10x2x64xf32>
    %2 = arith.mulf %0, %1 : vector<10x2x64xf32>
    %c0_2 = arith.constant 0 : index
    %c0_3 = arith.constant 0 : index
    %c0_4 = arith.constant 0 : index
    %3 = vector.load %arg1[%c0_2, %c0_3, %c0_4] : memref<10x2x64xf32, #tpu.memory_space<vmem>>, vector<10x2x64xf32>
    %c0_5 = arith.constant 0 : index
    %c0_6 = arith.constant 0 : index
    %c0_7 = arith.constant 0 : index
    %4 = vector.load %arg2[%c0_5, %c0_6, %c0_7] : memref<10x2x64xf32, #tpu.memory_space<vmem>>, vector<10x2x64xf32>
    %cst_8 = arith.constant dense<0.000000e+00> : vector<10x2x2xf32>
    %5 = tpu.matmul %2, %3, %cst_8 {dimension_numbers = #tpu.dot_dimension_numbers<[2], [2], [1], [1], [0, 0, 0, 1, 1, 1], [0], [0]>} : vector<10x2x64xf32>, vector<10x2x64xf32>, vector<10x2x2xf32> -> vector<10x2x2xf32>
    %cst_9 = arith.constant dense<0xFF800000> : vector<10x2xf32>
    %6 = vector.multi_reduction <maximumf>, %5, %cst_9 [2] : vector<10x2x2xf32> to vector<10x2xf32>
    %7 = vector.shape_cast %6 : vector<10x2xf32> to vector<10x2x1xf32>
    %8 = vector.broadcast %7 : vector<10x2x1xf32> to vector<10x2x2xf32>
    %9 = arith.subf %5, %8 : vector<10x2x2xf32>
    %10 = math.exp %9 : vector<10x2x2xf32>
    %cst_10 = arith.constant dense<0.000000e+00> : vector<10x2xf32>
    %11 = vector.multi_reduction <add>, %10, %cst_10 [2] : vector<10x2x2xf32> to vector<10x2xf32>
    %12 = vector.shape_cast %11 : vector<10x2xf32> to vector<10x2x1xf32>
    %cst_11 = arith.constant dense<0.000000e+00> : vector<10x2x64xf32>
    %13 = tpu.matmul %10, %4, %cst_11 {dimension_numbers = #tpu.dot_dimension_numbers<[2], [1], [1], [2], [0, 0, 0, 1, 1, 2], [0], [0]>} : vector<10x2x2xf32>, vector<10x2x64xf32>, vector<10x2x64xf32> -> vector<10x2x64xf32>
    %14 = tpu.reciprocal %12 {approx = true} : vector<10x2x1xf32> -> vector<10x2x1xf32>
    %15 = vector.broadcast %14 : vector<10x2x1xf32> to vector<10x2x64xf32>
    %16 = arith.mulf %13, %15 : vector<10x2x64xf32>
    %c0_12 = arith.constant 0 : index
    %c0_13 = arith.constant 0 : index
    %c0_14 = arith.constant 0 : index
    %17 = vector.load %arg3[%c0_12, %c0_13, %c0_14] : memref<10x2x64xf32, #tpu.memory_space<vmem>>, vector<10x2x64xf32>
    tpu.vector_store %arg3[%c0_12, %c0_13, %c0_14], %16 {strides = array<i32>} : memref<10x2x64xf32, #tpu.memory_space<vmem>>, vector<10x2x64xf32>,
    return
  }
}

module attributes {stable_mosaic.version = 11 : i64} {
  func.func @_ln_linear_kernel(%arg0: memref<20x64xf32, #tpu.memory_space<vmem>>, %arg1: memref<1x64xf32, #tpu.memory_space<vmem>>, %arg2: memref<1x64xf32, #tpu.memory_space<vmem>>, %arg3: memref<64x192xf32, #tpu.memory_space<vmem>>, %arg4: memref<1x192xf32, #tpu.memory_space<vmem>>, %arg5: memref<20x192xf32, #tpu.memory_space<vmem>>) attributes {dimension_semantics = [], scalar_prefetch = 0 : i64, scratch_operands = 0 : i64, tpu.core_type = #tpu.core_type<tc>} {
    %c0 = arith.constant 0 : index
    %c0_0 = arith.constant 0 : index
    %0 = vector.load %arg0[%c0, %c0_0] : memref<20x64xf32, #tpu.memory_space<vmem>>, vector<20x64xf32>
    %cst = arith.constant dense<0.000000e+00> : vector<20xf32>
    %1 = vector.multi_reduction <add>, %0, %cst [1] : vector<20x64xf32> to vector<20xf32>
    %2 = vector.shape_cast %1 : vector<20xf32> to vector<20x1xf32>
    %cst_1 = arith.constant 6.400000e+01 : f32
    %3 = vector.broadcast %cst_1 : f32 to vector<20x1xf32>
    %4 = arith.divf %2, %3 : vector<20x1xf32>
    %5 = vector.broadcast %4 : vector<20x1xf32> to vector<20x64xf32>
    %6 = arith.subf %0, %5 : vector<20x64xf32>
    %7 = arith.mulf %6, %6 : vector<20x64xf32>
    %cst_2 = arith.constant dense<0.000000e+00> : vector<20xf32>
    %8 = vector.multi_reduction <add>, %7, %cst_2 [1] : vector<20x64xf32> to vector<20xf32>
    %9 = vector.shape_cast %8 : vector<20xf32> to vector<20x1xf32>
    %cst_3 = arith.constant 6.400000e+01 : f32
    %10 = vector.broadcast %cst_3 : f32 to vector<20x1xf32>
    %11 = arith.divf %9, %10 : vector<20x1xf32>
    %12 = vector.broadcast %4 : vector<20x1xf32> to vector<20x64xf32>
    %13 = arith.subf %0, %12 : vector<20x64xf32>
    %cst_4 = arith.constant 9.99999974E-6 : f32
    %14 = vector.broadcast %cst_4 : f32 to vector<20x1xf32>
    %15 = arith.addf %11, %14 : vector<20x1xf32>
    %16 = math.rsqrt %15 : vector<20x1xf32>
    %17 = vector.broadcast %16 : vector<20x1xf32> to vector<20x64xf32>
    %18 = arith.mulf %13, %17 : vector<20x64xf32>
    %c0_5 = arith.constant 0 : index
    %c0_6 = arith.constant 0 : index
    %19 = vector.load %arg1[%c0_5, %c0_6] : memref<1x64xf32, #tpu.memory_space<vmem>>, vector<1x64xf32>
    %20 = vector.broadcast %19 : vector<1x64xf32> to vector<20x64xf32>
    %21 = arith.mulf %18, %20 : vector<20x64xf32>
    %c0_7 = arith.constant 0 : index
    %c0_8 = arith.constant 0 : index
    %22 = vector.load %arg2[%c0_7, %c0_8] : memref<1x64xf32, #tpu.memory_space<vmem>>, vector<1x64xf32>
    %23 = vector.broadcast %22 : vector<1x64xf32> to vector<20x64xf32>
    %24 = arith.addf %21, %23 : vector<20x64xf32>
    %c0_9 = arith.constant 0 : index
    %c0_10 = arith.constant 0 : index
    %25 = vector.load %arg3[%c0_9, %c0_10] : memref<64x192xf32, #tpu.memory_space<vmem>>, vector<64x192xf32>
    %cst_11 = arith.constant dense<0.000000e+00> : vector<20x192xf32>
    %26 = tpu.matmul %24, %25, %cst_11 {dimension_numbers = #tpu.dot_dimension_numbers<[1], [0], [0], [1], [0, 0, 1, 1], [], []>} : vector<20x64xf32>, vector<64x192xf32>, vector<20x192xf32> -> vector<20x192xf32>
    %c0_12 = arith.constant 0 : index
    %c0_13 = arith.constant 0 : index
    %27 = vector.load %arg4[%c0_12, %c0_13] : memref<1x192xf32, #tpu.memory_space<vmem>>, vector<1x192xf32>
    %28 = vector.broadcast %27 : vector<1x192xf32> to vector<20x192xf32>
    %29 = arith.addf %26, %28 : vector<20x192xf32>
    %c0_14 = arith.constant 0 : index
    %c0_15 = arith.constant 0 : index
    %30 = vector.load %arg5[%c0_14, %c0_15] : memref<20x192xf32, #tpu.memory_space<vmem>>, vector<20x192xf32>
    tpu.vector_store %arg5[%c0_14, %c0_15], %29 {strides = array<i32>} : memref<20x192xf32, #tpu.memory_space<vmem>>, vector<20x192xf32>,
    return
  }
}

module attributes {stable_mosaic.version = 11 : i64} {
  func.func @_layernorm_kernel(%arg0: memref<20x64xf32, #tpu.memory_space<vmem>>, %arg1: memref<1x64xf32, #tpu.memory_space<vmem>>, %arg2: memref<1x64xf32, #tpu.memory_space<vmem>>, %arg3: memref<20x64xf32, #tpu.memory_space<vmem>>) attributes {dimension_semantics = [], scalar_prefetch = 0 : i64, scratch_operands = 0 : i64, tpu.core_type = #tpu.core_type<tc>} {
    %c0 = arith.constant 0 : index
    %c0_0 = arith.constant 0 : index
    %0 = vector.load %arg0[%c0, %c0_0] : memref<20x64xf32, #tpu.memory_space<vmem>>, vector<20x64xf32>
    %cst = arith.constant dense<0.000000e+00> : vector<20xf32>
    %1 = vector.multi_reduction <add>, %0, %cst [1] : vector<20x64xf32> to vector<20xf32>
    %2 = vector.shape_cast %1 : vector<20xf32> to vector<20x1xf32>
    %cst_1 = arith.constant 6.400000e+01 : f32
    %3 = vector.broadcast %cst_1 : f32 to vector<20x1xf32>
    %4 = arith.divf %2, %3 : vector<20x1xf32>
    %5 = vector.broadcast %4 : vector<20x1xf32> to vector<20x64xf32>
    %6 = arith.subf %0, %5 : vector<20x64xf32>
    %7 = arith.mulf %6, %6 : vector<20x64xf32>
    %cst_2 = arith.constant dense<0.000000e+00> : vector<20xf32>
    %8 = vector.multi_reduction <add>, %7, %cst_2 [1] : vector<20x64xf32> to vector<20xf32>
    %9 = vector.shape_cast %8 : vector<20xf32> to vector<20x1xf32>
    %cst_3 = arith.constant 6.400000e+01 : f32
    %10 = vector.broadcast %cst_3 : f32 to vector<20x1xf32>
    %11 = arith.divf %9, %10 : vector<20x1xf32>
    %12 = vector.broadcast %4 : vector<20x1xf32> to vector<20x64xf32>
    %13 = arith.subf %0, %12 : vector<20x64xf32>
    %cst_4 = arith.constant 9.99999974E-6 : f32
    %14 = vector.broadcast %cst_4 : f32 to vector<20x1xf32>
    %15 = arith.addf %11, %14 : vector<20x1xf32>
    %16 = math.rsqrt %15 : vector<20x1xf32>
    %17 = vector.broadcast %16 : vector<20x1xf32> to vector<20x64xf32>
    %18 = arith.mulf %13, %17 : vector<20x64xf32>
    %c0_5 = arith.constant 0 : index
    %c0_6 = arith.constant 0 : index
    %19 = vector.load %arg1[%c0_5, %c0_6] : memref<1x64xf32, #tpu.memory_space<vmem>>, vector<1x64xf32>
    %20 = vector.broadcast %19 : vector<1x64xf32> to vector<20x64xf32>
    %21 = arith.mulf %18, %20 : vector<20x64xf32>
    %c0_7 = arith.constant 0 : index
    %c0_8 = arith.constant 0 : index
    %22 = vector.load %arg2[%c0_7, %c0_8] : memref<1x64xf32, #tpu.memory_space<vmem>>, vector<1x64xf32>
    %23 = vector.broadcast %22 : vector<1x64xf32> to vector<20x64xf32>
    %24 = arith.addf %21, %23 : vector<20x64xf32>
    %c0_9 = arith.constant 0 : index
    %c0_10 = arith.constant 0 : index
    %25 = vector.load %arg3[%c0_9, %c0_10] : memref<20x64xf32, #tpu.memory_space<vmem>>, vector<20x64xf32>
    tpu.vector_store %arg3[%c0_9, %c0_10], %24 {strides = array<i32>} : memref<20x64xf32, #tpu.memory_space<vmem>>, vector<20x64xf32>,
    return
  }
}

module attributes {stable_mosaic.version = 11 : i64} {
  func.func @_linear_kernel(%arg0: memref<20x64xf32, #tpu.memory_space<vmem>>, %arg1: memref<64x64xf32, #tpu.memory_space<vmem>>, %arg2: memref<1x64xf32, #tpu.memory_space<vmem>>, %arg3: memref<20x64xf32, #tpu.memory_space<vmem>>) attributes {dimension_semantics = [], scalar_prefetch = 0 : i64, scratch_operands = 0 : i64, tpu.core_type = #tpu.core_type<tc>} {
    %c0 = arith.constant 0 : index
    %c0_0 = arith.constant 0 : index
    %0 = vector.load %arg0[%c0, %c0_0] : memref<20x64xf32, #tpu.memory_space<vmem>>, vector<20x64xf32>
    %c0_1 = arith.constant 0 : index
    %c0_2 = arith.constant 0 : index
    %1 = vector.load %arg1[%c0_1, %c0_2] : memref<64x64xf32, #tpu.memory_space<vmem>>, vector<64x64xf32>
    %cst = arith.constant dense<0.000000e+00> : vector<20x64xf32>
    %2 = tpu.matmul %0, %1, %cst {dimension_numbers = #tpu.dot_dimension_numbers<[1], [0], [0], [1], [0, 0, 1, 1], [], []>} : vector<20x64xf32>, vector<64x64xf32>, vector<20x64xf32> -> vector<20x64xf32>
    %c0_3 = arith.constant 0 : index
    %c0_4 = arith.constant 0 : index
    %3 = vector.load %arg2[%c0_3, %c0_4] : memref<1x64xf32, #tpu.memory_space<vmem>>, vector<1x64xf32>
    %4 = vector.broadcast %3 : vector<1x64xf32> to vector<20x64xf32>
    %5 = arith.addf %2, %4 : vector<20x64xf32>
    %c0_5 = arith.constant 0 : index
    %c0_6 = arith.constant 0 : index
    %6 = vector.load %arg3[%c0_5, %c0_6] : memref<20x64xf32, #tpu.memory_space<vmem>>, vector<20x64xf32>
    tpu.vector_store %arg3[%c0_5, %c0_6], %5 {strides = array<i32>} : memref<20x64xf32, #tpu.memory_space<vmem>>, vector<20x64xf32>,
    return
  }
}

module attributes {stable_mosaic.version = 11 : i64} {
  func.func @_adapter_kernel(%arg0: memref<20x64xf32, #tpu.memory_space<vmem>>, %arg1: memref<64x16xf32, #tpu.memory_space<vmem>>, %arg2: memref<1x16xf32, #tpu.memory_space<vmem>>, %arg3: memref<16x64xf32, #tpu.memory_space<vmem>>, %arg4: memref<1x64xf32, #tpu.memory_space<vmem>>, %arg5: memref<20x64xf32, #tpu.memory_space<vmem>>) attributes {dimension_semantics = [], scalar_prefetch = 0 : i64, scratch_operands = 0 : i64, tpu.core_type = #tpu.core_type<tc>} {
    %c0 = arith.constant 0 : index
    %c0_0 = arith.constant 0 : index
    %0 = vector.load %arg0[%c0, %c0_0] : memref<20x64xf32, #tpu.memory_space<vmem>>, vector<20x64xf32>
    %c0_1 = arith.constant 0 : index
    %c0_2 = arith.constant 0 : index
    %1 = vector.load %arg1[%c0_1, %c0_2] : memref<64x16xf32, #tpu.memory_space<vmem>>, vector<64x16xf32>
    %cst = arith.constant dense<0.000000e+00> : vector<20x16xf32>
    %2 = tpu.matmul %0, %1, %cst {dimension_numbers = #tpu.dot_dimension_numbers<[1], [0], [0], [1], [0, 0, 1, 1], [], []>} : vector<20x64xf32>, vector<64x16xf32>, vector<20x16xf32> -> vector<20x16xf32>
    %c0_3 = arith.constant 0 : index
    %c0_4 = arith.constant 0 : index
    %3 = vector.load %arg2[%c0_3, %c0_4] : memref<1x16xf32, #tpu.memory_space<vmem>>, vector<1x16xf32>
    %4 = vector.broadcast %3 : vector<1x16xf32> to vector<20x16xf32>
    %5 = arith.addf %2, %4 : vector<20x16xf32>
    %cst_5 = arith.constant 5.000000e-01 : f32
    %6 = vector.broadcast %cst_5 : f32 to vector<20x16xf32>
    %7 = arith.mulf %6, %5 : vector<20x16xf32>
    %cst_6 = arith.constant 0.707106769 : f32
    %8 = vector.broadcast %cst_6 : f32 to vector<20x16xf32>
    %9 = arith.mulf %5, %8 : vector<20x16xf32>
    %10 = math.erf %9 : vector<20x16xf32>
    %cst_7 = arith.constant 1.000000e+00 : f32
    %11 = vector.broadcast %cst_7 : f32 to vector<20x16xf32>
    %12 = arith.addf %11, %10 : vector<20x16xf32>
    %13 = arith.mulf %7, %12 : vector<20x16xf32>
    %c0_8 = arith.constant 0 : index
    %c0_9 = arith.constant 0 : index
    %14 = vector.load %arg3[%c0_8, %c0_9] : memref<16x64xf32, #tpu.memory_space<vmem>>, vector<16x64xf32>
    %cst_10 = arith.constant dense<0.000000e+00> : vector<20x64xf32>
    %15 = tpu.matmul %13, %14, %cst_10 {dimension_numbers = #tpu.dot_dimension_numbers<[1], [0], [0], [1], [0, 0, 1, 1], [], []>} : vector<20x16xf32>, vector<16x64xf32>, vector<20x64xf32> -> vector<20x64xf32>
    %c0_11 = arith.constant 0 : index
    %c0_12 = arith.constant 0 : index
    %16 = vector.load %arg4[%c0_11, %c0_12] : memref<1x64xf32, #tpu.memory_space<vmem>>, vector<1x64xf32>
    %17 = vector.broadcast %16 : vector<1x64xf32> to vector<20x64xf32>
    %18 = arith.addf %15, %17 : vector<20x64xf32>
    %c0_13 = arith.constant 0 : index
    %c0_14 = arith.constant 0 : index
    %19 = vector.load %arg5[%c0_13, %c0_14] : memref<20x64xf32, #tpu.memory_space<vmem>>, vector<20x64xf32>
    tpu.vector_store %arg5[%c0_13, %c0_14], %18 {strides = array<i32>} : memref<20x64xf32, #tpu.memory_space<vmem>>, vector<20x64xf32>,
    return
  }
}

module attributes {stable_mosaic.version = 11 : i64} {
  func.func @_linear_residual_kernel(%arg0: memref<20x64xf32, #tpu.memory_space<vmem>>, %arg1: memref<64x64xf32, #tpu.memory_space<vmem>>, %arg2: memref<1x64xf32, #tpu.memory_space<vmem>>, %arg3: memref<20x64xf32, #tpu.memory_space<vmem>>, %arg4: memref<20x64xf32, #tpu.memory_space<vmem>>) attributes {dimension_semantics = [], scalar_prefetch = 0 : i64, scratch_operands = 0 : i64, tpu.core_type = #tpu.core_type<tc>} {
    %c0 = arith.constant 0 : index
    %c0_0 = arith.constant 0 : index
    %0 = vector.load %arg0[%c0, %c0_0] : memref<20x64xf32, #tpu.memory_space<vmem>>, vector<20x64xf32>
    %c0_1 = arith.constant 0 : index
    %c0_2 = arith.constant 0 : index
    %1 = vector.load %arg1[%c0_1, %c0_2] : memref<64x64xf32, #tpu.memory_space<vmem>>, vector<64x64xf32>
    %cst = arith.constant dense<0.000000e+00> : vector<20x64xf32>
    %2 = tpu.matmul %0, %1, %cst {dimension_numbers = #tpu.dot_dimension_numbers<[1], [0], [0], [1], [0, 0, 1, 1], [], []>} : vector<20x64xf32>, vector<64x64xf32>, vector<20x64xf32> -> vector<20x64xf32>
    %c0_3 = arith.constant 0 : index
    %c0_4 = arith.constant 0 : index
    %3 = vector.load %arg2[%c0_3, %c0_4] : memref<1x64xf32, #tpu.memory_space<vmem>>, vector<1x64xf32>
    %4 = vector.broadcast %3 : vector<1x64xf32> to vector<20x64xf32>
    %5 = arith.addf %2, %4 : vector<20x64xf32>
    %c0_5 = arith.constant 0 : index
    %c0_6 = arith.constant 0 : index
    %6 = vector.load %arg3[%c0_5, %c0_6] : memref<20x64xf32, #tpu.memory_space<vmem>>, vector<20x64xf32>
    %7 = arith.addf %5, %6 : vector<20x64xf32>
    %c0_7 = arith.constant 0 : index
    %c0_8 = arith.constant 0 : index
    %8 = vector.load %arg4[%c0_7, %c0_8] : memref<20x64xf32, #tpu.memory_space<vmem>>, vector<20x64xf32>
    tpu.vector_store %arg4[%c0_7, %c0_8], %7 {strides = array<i32>} : memref<20x64xf32, #tpu.memory_space<vmem>>, vector<20x64xf32>,
    return
  }
}

module attributes {stable_mosaic.version = 11 : i64} {
  func.func @_attn_kernel(%arg0: memref<4x5x64xf32, #tpu.memory_space<vmem>>, %arg1: memref<4x5x64xf32, #tpu.memory_space<vmem>>, %arg2: memref<4x5x64xf32, #tpu.memory_space<vmem>>, %arg3: memref<4x5x64xf32, #tpu.memory_space<vmem>>) attributes {dimension_semantics = [], scalar_prefetch = 0 : i64, scratch_operands = 0 : i64, tpu.core_type = #tpu.core_type<tc>} {
    %c0 = arith.constant 0 : index
    %c0_0 = arith.constant 0 : index
    %c0_1 = arith.constant 0 : index
    %0 = vector.load %arg0[%c0, %c0_0, %c0_1] : memref<4x5x64xf32, #tpu.memory_space<vmem>>, vector<4x5x64xf32>
    %cst = arith.constant 1.250000e-01 : f32
    %1 = vector.broadcast %cst : f32 to vector<4x5x64xf32>
    %2 = arith.mulf %0, %1 : vector<4x5x64xf32>
    %c0_2 = arith.constant 0 : index
    %c0_3 = arith.constant 0 : index
    %c0_4 = arith.constant 0 : index
    %3 = vector.load %arg1[%c0_2, %c0_3, %c0_4] : memref<4x5x64xf32, #tpu.memory_space<vmem>>, vector<4x5x64xf32>
    %c0_5 = arith.constant 0 : index
    %c0_6 = arith.constant 0 : index
    %c0_7 = arith.constant 0 : index
    %4 = vector.load %arg2[%c0_5, %c0_6, %c0_7] : memref<4x5x64xf32, #tpu.memory_space<vmem>>, vector<4x5x64xf32>
    %cst_8 = arith.constant dense<0.000000e+00> : vector<4x5x5xf32>
    %5 = tpu.matmul %2, %3, %cst_8 {dimension_numbers = #tpu.dot_dimension_numbers<[2], [2], [1], [1], [0, 0, 0, 1, 1, 1], [0], [0]>} : vector<4x5x64xf32>, vector<4x5x64xf32>, vector<4x5x5xf32> -> vector<4x5x5xf32>
    %cst_9 = arith.constant dense<0xFF800000> : vector<4x5xf32>
    %6 = vector.multi_reduction <maximumf>, %5, %cst_9 [2] : vector<4x5x5xf32> to vector<4x5xf32>
    %7 = vector.shape_cast %6 : vector<4x5xf32> to vector<4x5x1xf32>
    %8 = vector.broadcast %7 : vector<4x5x1xf32> to vector<4x5x5xf32>
    %9 = arith.subf %5, %8 : vector<4x5x5xf32>
    %10 = math.exp %9 : vector<4x5x5xf32>
    %cst_10 = arith.constant dense<0.000000e+00> : vector<4x5xf32>
    %11 = vector.multi_reduction <add>, %10, %cst_10 [2] : vector<4x5x5xf32> to vector<4x5xf32>
    %12 = vector.shape_cast %11 : vector<4x5xf32> to vector<4x5x1xf32>
    %cst_11 = arith.constant dense<0.000000e+00> : vector<4x5x64xf32>
    %13 = tpu.matmul %10, %4, %cst_11 {dimension_numbers = #tpu.dot_dimension_numbers<[2], [1], [1], [2], [0, 0, 0, 1, 1, 2], [0], [0]>} : vector<4x5x5xf32>, vector<4x5x64xf32>, vector<4x5x64xf32> -> vector<4x5x64xf32>
    %14 = tpu.reciprocal %12 {approx = true} : vector<4x5x1xf32> -> vector<4x5x1xf32>
    %15 = vector.broadcast %14 : vector<4x5x1xf32> to vector<4x5x64xf32>
    %16 = arith.mulf %13, %15 : vector<4x5x64xf32>
    %c0_12 = arith.constant 0 : index
    %c0_13 = arith.constant 0 : index
    %c0_14 = arith.constant 0 : index
    %17 = vector.load %arg3[%c0_12, %c0_13, %c0_14] : memref<4x5x64xf32, #tpu.memory_space<vmem>>, vector<4x5x64xf32>
    tpu.vector_store %arg3[%c0_12, %c0_13, %c0_14], %16 {strides = array<i32>} : memref<4x5x64xf32, #tpu.memory_space<vmem>>, vector<4x5x64xf32>,
    return
  }
}

module attributes {stable_mosaic.version = 11 : i64} {
  func.func @_adapter_kernel(%arg0: memref<20x64xf32, #tpu.memory_space<vmem>>, %arg1: memref<64x16xf32, #tpu.memory_space<vmem>>, %arg2: memref<1x16xf32, #tpu.memory_space<vmem>>, %arg3: memref<16x64xf32, #tpu.memory_space<vmem>>, %arg4: memref<1x64xf32, #tpu.memory_space<vmem>>, %arg5: memref<20x64xf32, #tpu.memory_space<vmem>>) attributes {dimension_semantics = [], scalar_prefetch = 0 : i64, scratch_operands = 0 : i64, tpu.core_type = #tpu.core_type<tc>} {
    %c0 = arith.constant 0 : index
    %c0_0 = arith.constant 0 : index
    %0 = vector.load %arg0[%c0, %c0_0] : memref<20x64xf32, #tpu.memory_space<vmem>>, vector<20x64xf32>
    %c0_1 = arith.constant 0 : index
    %c0_2 = arith.constant 0 : index
    %1 = vector.load %arg1[%c0_1, %c0_2] : memref<64x16xf32, #tpu.memory_space<vmem>>, vector<64x16xf32>
    %cst = arith.constant dense<0.000000e+00> : vector<20x16xf32>
    %2 = tpu.matmul %0, %1, %cst {dimension_numbers = #tpu.dot_dimension_numbers<[1], [0], [0], [1], [0, 0, 1, 1], [], []>} : vector<20x64xf32>, vector<64x16xf32>, vector<20x16xf32> -> vector<20x16xf32>
    %c0_3 = arith.constant 0 : index
    %c0_4 = arith.constant 0 : index
    %3 = vector.load %arg2[%c0_3, %c0_4] : memref<1x16xf32, #tpu.memory_space<vmem>>, vector<1x16xf32>
    %4 = vector.broadcast %3 : vector<1x16xf32> to vector<20x16xf32>
    %5 = arith.addf %2, %4 : vector<20x16xf32>
    %cst_5 = arith.constant 5.000000e-01 : f32
    %6 = vector.broadcast %cst_5 : f32 to vector<20x16xf32>
    %7 = arith.mulf %6, %5 : vector<20x16xf32>
    %cst_6 = arith.constant 0.707106769 : f32
    %8 = vector.broadcast %cst_6 : f32 to vector<20x16xf32>
    %9 = arith.mulf %5, %8 : vector<20x16xf32>
    %10 = math.erf %9 : vector<20x16xf32>
    %cst_7 = arith.constant 1.000000e+00 : f32
    %11 = vector.broadcast %cst_7 : f32 to vector<20x16xf32>
    %12 = arith.addf %11, %10 : vector<20x16xf32>
    %13 = arith.mulf %7, %12 : vector<20x16xf32>
    %c0_8 = arith.constant 0 : index
    %c0_9 = arith.constant 0 : index
    %14 = vector.load %arg3[%c0_8, %c0_9] : memref<16x64xf32, #tpu.memory_space<vmem>>, vector<16x64xf32>
    %cst_10 = arith.constant dense<0.000000e+00> : vector<20x64xf32>
    %15 = tpu.matmul %13, %14, %cst_10 {dimension_numbers = #tpu.dot_dimension_numbers<[1], [0], [0], [1], [0, 0, 1, 1], [], []>} : vector<20x16xf32>, vector<16x64xf32>, vector<20x64xf32> -> vector<20x64xf32>
    %c0_11 = arith.constant 0 : index
    %c0_12 = arith.constant 0 : index
    %16 = vector.load %arg4[%c0_11, %c0_12] : memref<1x64xf32, #tpu.memory_space<vmem>>, vector<1x64xf32>
    %17 = vector.broadcast %16 : vector<1x64xf32> to vector<20x64xf32>
    %18 = arith.addf %15, %17 : vector<20x64xf32>
    %19 = arith.addf %0, %18 : vector<20x64xf32>
    %c0_13 = arith.constant 0 : index
    %c0_14 = arith.constant 0 : index
    %20 = vector.load %arg5[%c0_13, %c0_14] : memref<20x64xf32, #tpu.memory_space<vmem>>, vector<20x64xf32>
    tpu.vector_store %arg5[%c0_13, %c0_14], %19 {strides = array<i32>} : memref<20x64xf32, #tpu.memory_space<vmem>>, vector<20x64xf32>,
    return
  }
}

module attributes {stable_mosaic.version = 11 : i64} {
  func.func @_ln_linear_kernel(%arg0: memref<20x64xf32, #tpu.memory_space<vmem>>, %arg1: memref<1x64xf32, #tpu.memory_space<vmem>>, %arg2: memref<1x64xf32, #tpu.memory_space<vmem>>, %arg3: memref<64x256xf32, #tpu.memory_space<vmem>>, %arg4: memref<1x256xf32, #tpu.memory_space<vmem>>, %arg5: memref<20x256xf32, #tpu.memory_space<vmem>>) attributes {dimension_semantics = [], scalar_prefetch = 0 : i64, scratch_operands = 0 : i64, tpu.core_type = #tpu.core_type<tc>} {
    %c0 = arith.constant 0 : index
    %c0_0 = arith.constant 0 : index
    %0 = vector.load %arg0[%c0, %c0_0] : memref<20x64xf32, #tpu.memory_space<vmem>>, vector<20x64xf32>
    %cst = arith.constant dense<0.000000e+00> : vector<20xf32>
    %1 = vector.multi_reduction <add>, %0, %cst [1] : vector<20x64xf32> to vector<20xf32>
    %2 = vector.shape_cast %1 : vector<20xf32> to vector<20x1xf32>
    %cst_1 = arith.constant 6.400000e+01 : f32
    %3 = vector.broadcast %cst_1 : f32 to vector<20x1xf32>
    %4 = arith.divf %2, %3 : vector<20x1xf32>
    %5 = vector.broadcast %4 : vector<20x1xf32> to vector<20x64xf32>
    %6 = arith.subf %0, %5 : vector<20x64xf32>
    %7 = arith.mulf %6, %6 : vector<20x64xf32>
    %cst_2 = arith.constant dense<0.000000e+00> : vector<20xf32>
    %8 = vector.multi_reduction <add>, %7, %cst_2 [1] : vector<20x64xf32> to vector<20xf32>
    %9 = vector.shape_cast %8 : vector<20xf32> to vector<20x1xf32>
    %cst_3 = arith.constant 6.400000e+01 : f32
    %10 = vector.broadcast %cst_3 : f32 to vector<20x1xf32>
    %11 = arith.divf %9, %10 : vector<20x1xf32>
    %12 = vector.broadcast %4 : vector<20x1xf32> to vector<20x64xf32>
    %13 = arith.subf %0, %12 : vector<20x64xf32>
    %cst_4 = arith.constant 9.99999974E-6 : f32
    %14 = vector.broadcast %cst_4 : f32 to vector<20x1xf32>
    %15 = arith.addf %11, %14 : vector<20x1xf32>
    %16 = math.rsqrt %15 : vector<20x1xf32>
    %17 = vector.broadcast %16 : vector<20x1xf32> to vector<20x64xf32>
    %18 = arith.mulf %13, %17 : vector<20x64xf32>
    %c0_5 = arith.constant 0 : index
    %c0_6 = arith.constant 0 : index
    %19 = vector.load %arg1[%c0_5, %c0_6] : memref<1x64xf32, #tpu.memory_space<vmem>>, vector<1x64xf32>
    %20 = vector.broadcast %19 : vector<1x64xf32> to vector<20x64xf32>
    %21 = arith.mulf %18, %20 : vector<20x64xf32>
    %c0_7 = arith.constant 0 : index
    %c0_8 = arith.constant 0 : index
    %22 = vector.load %arg2[%c0_7, %c0_8] : memref<1x64xf32, #tpu.memory_space<vmem>>, vector<1x64xf32>
    %23 = vector.broadcast %22 : vector<1x64xf32> to vector<20x64xf32>
    %24 = arith.addf %21, %23 : vector<20x64xf32>
    %c0_9 = arith.constant 0 : index
    %c0_10 = arith.constant 0 : index
    %25 = vector.load %arg3[%c0_9, %c0_10] : memref<64x256xf32, #tpu.memory_space<vmem>>, vector<64x256xf32>
    %cst_11 = arith.constant dense<0.000000e+00> : vector<20x256xf32>
    %26 = tpu.matmul %24, %25, %cst_11 {dimension_numbers = #tpu.dot_dimension_numbers<[1], [0], [0], [1], [0, 0, 1, 1], [], []>} : vector<20x64xf32>, vector<64x256xf32>, vector<20x256xf32> -> vector<20x256xf32>
    %c0_12 = arith.constant 0 : index
    %c0_13 = arith.constant 0 : index
    %27 = vector.load %arg4[%c0_12, %c0_13] : memref<1x256xf32, #tpu.memory_space<vmem>>, vector<1x256xf32>
    %28 = vector.broadcast %27 : vector<1x256xf32> to vector<20x256xf32>
    %29 = arith.addf %26, %28 : vector<20x256xf32>
    %cst_14 = arith.constant 1.702000e+00 : f32
    %30 = vector.broadcast %cst_14 : f32 to vector<20x256xf32>
    %31 = arith.mulf %30, %29 : vector<20x256xf32>
    %32 = arith.negf %31 : vector<20x256xf32>
    %33 = math.exp %32 : vector<20x256xf32>
    %cst_15 = arith.constant 1.000000e+00 : f32
    %34 = vector.broadcast %cst_15 : f32 to vector<20x256xf32>
    %35 = arith.addf %34, %33 : vector<20x256xf32>
    %36 = arith.divf %34, %35 : vector<20x256xf32>
    %37 = arith.mulf %29, %36 : vector<20x256xf32>
    %c0_16 = arith.constant 0 : index
    %c0_17 = arith.constant 0 : index
    %38 = vector.load %arg5[%c0_16, %c0_17] : memref<20x256xf32, #tpu.memory_space<vmem>>, vector<20x256xf32>
    tpu.vector_store %arg5[%c0_16, %c0_17], %37 {strides = array<i32>} : memref<20x256xf32, #tpu.memory_space<vmem>>, vector<20x256xf32>,
    return
  }
}

module attributes {stable_mosaic.version = 11 : i64} {
  func.func @_linear_residual_kernel(%arg0: memref<20x256xf32, #tpu.memory_space<vmem>>, %arg1: memref<256x64xf32, #tpu.memory_space<vmem>>, %arg2: memref<1x64xf32, #tpu.memory_space<vmem>>, %arg3: memref<20x64xf32, #tpu.memory_space<vmem>>, %arg4: memref<20x64xf32, #tpu.memory_space<vmem>>) attributes {dimension_semantics = [], scalar_prefetch = 0 : i64, scratch_operands = 0 : i64, tpu.core_type = #tpu.core_type<tc>} {
    %c0 = arith.constant 0 : index
    %c0_0 = arith.constant 0 : index
    %0 = vector.load %arg0[%c0, %c0_0] : memref<20x256xf32, #tpu.memory_space<vmem>>, vector<20x256xf32>
    %c0_1 = arith.constant 0 : index
    %c0_2 = arith.constant 0 : index
    %1 = vector.load %arg1[%c0_1, %c0_2] : memref<256x64xf32, #tpu.memory_space<vmem>>, vector<256x64xf32>
    %cst = arith.constant dense<0.000000e+00> : vector<20x64xf32>
    %2 = tpu.matmul %0, %1, %cst {dimension_numbers = #tpu.dot_dimension_numbers<[1], [0], [0], [1], [0, 0, 1, 1], [], []>} : vector<20x256xf32>, vector<256x64xf32>, vector<20x64xf32> -> vector<20x64xf32>
    %c0_3 = arith.constant 0 : index
    %c0_4 = arith.constant 0 : index
    %3 = vector.load %arg2[%c0_3, %c0_4] : memref<1x64xf32, #tpu.memory_space<vmem>>, vector<1x64xf32>
    %4 = vector.broadcast %3 : vector<1x64xf32> to vector<20x64xf32>
    %5 = arith.addf %2, %4 : vector<20x64xf32>
    %c0_5 = arith.constant 0 : index
    %c0_6 = arith.constant 0 : index
    %6 = vector.load %arg3[%c0_5, %c0_6] : memref<20x64xf32, #tpu.memory_space<vmem>>, vector<20x64xf32>
    %7 = arith.addf %5, %6 : vector<20x64xf32>
    %c0_7 = arith.constant 0 : index
    %c0_8 = arith.constant 0 : index
    %8 = vector.load %arg4[%c0_7, %c0_8] : memref<20x64xf32, #tpu.memory_space<vmem>>, vector<20x64xf32>
    tpu.vector_store %arg4[%c0_7, %c0_8], %7 {strides = array<i32>} : memref<20x64xf32, #tpu.memory_space<vmem>>, vector<20x64xf32>,
    return
  }
}

module attributes {stable_mosaic.version = 11 : i64} {
  func.func @_ln_linear_kernel(%arg0: memref<4x64xf32, #tpu.memory_space<vmem>>, %arg1: memref<1x64xf32, #tpu.memory_space<vmem>>, %arg2: memref<1x64xf32, #tpu.memory_space<vmem>>, %arg3: memref<64x32xf32, #tpu.memory_space<vmem>>, %arg4: memref<4x32xf32, #tpu.memory_space<vmem>>) attributes {dimension_semantics = [], scalar_prefetch = 0 : i64, scratch_operands = 0 : i64, tpu.core_type = #tpu.core_type<tc>} {
    %c0 = arith.constant 0 : index
    %c0_0 = arith.constant 0 : index
    %0 = vector.load %arg0[%c0, %c0_0] : memref<4x64xf32, #tpu.memory_space<vmem>>, vector<4x64xf32>
    %cst = arith.constant dense<0.000000e+00> : vector<4xf32>
    %1 = vector.multi_reduction <add>, %0, %cst [1] : vector<4x64xf32> to vector<4xf32>
    %2 = vector.shape_cast %1 : vector<4xf32> to vector<4x1xf32>
    %cst_1 = arith.constant 6.400000e+01 : f32
    %3 = vector.broadcast %cst_1 : f32 to vector<4x1xf32>
    %4 = arith.divf %2, %3 : vector<4x1xf32>
    %5 = vector.broadcast %4 : vector<4x1xf32> to vector<4x64xf32>
    %6 = arith.subf %0, %5 : vector<4x64xf32>
    %7 = arith.mulf %6, %6 : vector<4x64xf32>
    %cst_2 = arith.constant dense<0.000000e+00> : vector<4xf32>
    %8 = vector.multi_reduction <add>, %7, %cst_2 [1] : vector<4x64xf32> to vector<4xf32>
    %9 = vector.shape_cast %8 : vector<4xf32> to vector<4x1xf32>
    %cst_3 = arith.constant 6.400000e+01 : f32
    %10 = vector.broadcast %cst_3 : f32 to vector<4x1xf32>
    %11 = arith.divf %9, %10 : vector<4x1xf32>
    %12 = vector.broadcast %4 : vector<4x1xf32> to vector<4x64xf32>
    %13 = arith.subf %0, %12 : vector<4x64xf32>
    %cst_4 = arith.constant 9.99999974E-6 : f32
    %14 = vector.broadcast %cst_4 : f32 to vector<4x1xf32>
    %15 = arith.addf %11, %14 : vector<4x1xf32>
    %16 = math.rsqrt %15 : vector<4x1xf32>
    %17 = vector.broadcast %16 : vector<4x1xf32> to vector<4x64xf32>
    %18 = arith.mulf %13, %17 : vector<4x64xf32>
    %c0_5 = arith.constant 0 : index
    %c0_6 = arith.constant 0 : index
    %19 = vector.load %arg1[%c0_5, %c0_6] : memref<1x64xf32, #tpu.memory_space<vmem>>, vector<1x64xf32>
    %20 = vector.broadcast %19 : vector<1x64xf32> to vector<4x64xf32>
    %21 = arith.mulf %18, %20 : vector<4x64xf32>
    %c0_7 = arith.constant 0 : index
    %c0_8 = arith.constant 0 : index
    %22 = vector.load %arg2[%c0_7, %c0_8] : memref<1x64xf32, #tpu.memory_space<vmem>>, vector<1x64xf32>
    %23 = vector.broadcast %22 : vector<1x64xf32> to vector<4x64xf32>
    %24 = arith.addf %21, %23 : vector<4x64xf32>
    %c0_9 = arith.constant 0 : index
    %c0_10 = arith.constant 0 : index
    %25 = vector.load %arg3[%c0_9, %c0_10] : memref<64x32xf32, #tpu.memory_space<vmem>>, vector<64x32xf32>
    %cst_11 = arith.constant dense<0.000000e+00> : vector<4x32xf32>
    %26 = tpu.matmul %24, %25, %cst_11 {dimension_numbers = #tpu.dot_dimension_numbers<[1], [0], [0], [1], [0, 0, 1, 1], [], []>} : vector<4x64xf32>, vector<64x32xf32>, vector<4x32xf32> -> vector<4x32xf32>
    %c0_12 = arith.constant 0 : index
    %c0_13 = arith.constant 0 : index
    %27 = vector.load %arg4[%c0_12, %c0_13] : memref<4x32xf32, #tpu.memory_space<vmem>>, vector<4x32xf32>
    tpu.vector_store %arg4[%c0_12, %c0_13], %26 {strides = array<i32>} : memref<4x32xf32, #tpu.memory_space<vmem>>, vector<4x32xf32>,
    return
  }
}

module attributes {stable_mosaic.version = 11 : i64} {
  func.func @_ln_linear_kernel(%arg0: memref<16x32xf32, #tpu.memory_space<vmem>>, %arg1: memref<1x32xf32, #tpu.memory_space<vmem>>, %arg2: memref<1x32xf32, #tpu.memory_space<vmem>>, %arg3: memref<32x96xf32, #tpu.memory_space<vmem>>, %arg4: memref<1x96xf32, #tpu.memory_space<vmem>>, %arg5: memref<16x96xf32, #tpu.memory_space<vmem>>) attributes {dimension_semantics = [], scalar_prefetch = 0 : i64, scratch_operands = 0 : i64, tpu.core_type = #tpu.core_type<tc>} {
    %c0 = arith.constant 0 : index
    %c0_0 = arith.constant 0 : index
    %0 = vector.load %arg0[%c0, %c0_0] : memref<16x32xf32, #tpu.memory_space<vmem>>, vector<16x32xf32>
    %cst = arith.constant dense<0.000000e+00> : vector<16xf32>
    %1 = vector.multi_reduction <add>, %0, %cst [1] : vector<16x32xf32> to vector<16xf32>
    %2 = vector.shape_cast %1 : vector<16xf32> to vector<16x1xf32>
    %cst_1 = arith.constant 3.200000e+01 : f32
    %3 = vector.broadcast %cst_1 : f32 to vector<16x1xf32>
    %4 = arith.divf %2, %3 : vector<16x1xf32>
    %5 = vector.broadcast %4 : vector<16x1xf32> to vector<16x32xf32>
    %6 = arith.subf %0, %5 : vector<16x32xf32>
    %7 = arith.mulf %6, %6 : vector<16x32xf32>
    %cst_2 = arith.constant dense<0.000000e+00> : vector<16xf32>
    %8 = vector.multi_reduction <add>, %7, %cst_2 [1] : vector<16x32xf32> to vector<16xf32>
    %9 = vector.shape_cast %8 : vector<16xf32> to vector<16x1xf32>
    %cst_3 = arith.constant 3.200000e+01 : f32
    %10 = vector.broadcast %cst_3 : f32 to vector<16x1xf32>
    %11 = arith.divf %9, %10 : vector<16x1xf32>
    %12 = vector.broadcast %4 : vector<16x1xf32> to vector<16x32xf32>
    %13 = arith.subf %0, %12 : vector<16x32xf32>
    %cst_4 = arith.constant 9.99999974E-6 : f32
    %14 = vector.broadcast %cst_4 : f32 to vector<16x1xf32>
    %15 = arith.addf %11, %14 : vector<16x1xf32>
    %16 = math.rsqrt %15 : vector<16x1xf32>
    %17 = vector.broadcast %16 : vector<16x1xf32> to vector<16x32xf32>
    %18 = arith.mulf %13, %17 : vector<16x32xf32>
    %c0_5 = arith.constant 0 : index
    %c0_6 = arith.constant 0 : index
    %19 = vector.load %arg1[%c0_5, %c0_6] : memref<1x32xf32, #tpu.memory_space<vmem>>, vector<1x32xf32>
    %20 = vector.broadcast %19 : vector<1x32xf32> to vector<16x32xf32>
    %21 = arith.mulf %18, %20 : vector<16x32xf32>
    %c0_7 = arith.constant 0 : index
    %c0_8 = arith.constant 0 : index
    %22 = vector.load %arg2[%c0_7, %c0_8] : memref<1x32xf32, #tpu.memory_space<vmem>>, vector<1x32xf32>
    %23 = vector.broadcast %22 : vector<1x32xf32> to vector<16x32xf32>
    %24 = arith.addf %21, %23 : vector<16x32xf32>
    %c0_9 = arith.constant 0 : index
    %c0_10 = arith.constant 0 : index
    %25 = vector.load %arg3[%c0_9, %c0_10] : memref<32x96xf32, #tpu.memory_space<vmem>>, vector<32x96xf32>
    %cst_11 = arith.constant dense<0.000000e+00> : vector<16x96xf32>
    %26 = tpu.matmul %24, %25, %cst_11 {dimension_numbers = #tpu.dot_dimension_numbers<[1], [0], [0], [1], [0, 0, 1, 1], [], []>} : vector<16x32xf32>, vector<32x96xf32>, vector<16x96xf32> -> vector<16x96xf32>
    %c0_12 = arith.constant 0 : index
    %c0_13 = arith.constant 0 : index
    %27 = vector.load %arg4[%c0_12, %c0_13] : memref<1x96xf32, #tpu.memory_space<vmem>>, vector<1x96xf32>
    %28 = vector.broadcast %27 : vector<1x96xf32> to vector<16x96xf32>
    %29 = arith.addf %26, %28 : vector<16x96xf32>
    %c0_14 = arith.constant 0 : index
    %c0_15 = arith.constant 0 : index
    %30 = vector.load %arg5[%c0_14, %c0_15] : memref<16x96xf32, #tpu.memory_space<vmem>>, vector<16x96xf32>
    tpu.vector_store %arg5[%c0_14, %c0_15], %29 {strides = array<i32>} : memref<16x96xf32, #tpu.memory_space<vmem>>, vector<16x96xf32>,
    return
  }
}

module attributes {stable_mosaic.version = 11 : i64} {
  func.func @_attn_kernel(%arg0: memref<4x8x16xf32, #tpu.memory_space<vmem>>, %arg1: memref<4x8x16xf32, #tpu.memory_space<vmem>>, %arg2: memref<4x8x16xf32, #tpu.memory_space<vmem>>, %arg3: memref<8x8xf32, #tpu.memory_space<vmem>>, %arg4: memref<4x8x16xf32, #tpu.memory_space<vmem>>) attributes {dimension_semantics = [], scalar_prefetch = 0 : i64, scratch_operands = 0 : i64, tpu.core_type = #tpu.core_type<tc>} {
    %c0 = arith.constant 0 : index
    %c0_0 = arith.constant 0 : index
    %c0_1 = arith.constant 0 : index
    %0 = vector.load %arg0[%c0, %c0_0, %c0_1] : memref<4x8x16xf32, #tpu.memory_space<vmem>>, vector<4x8x16xf32>
    %cst = arith.constant 2.500000e-01 : f32
    %1 = vector.broadcast %cst : f32 to vector<4x8x16xf32>
    %2 = arith.mulf %0, %1 : vector<4x8x16xf32>
    %c0_2 = arith.constant 0 : index
    %c0_3 = arith.constant 0 : index
    %c0_4 = arith.constant 0 : index
    %3 = vector.load %arg1[%c0_2, %c0_3, %c0_4] : memref<4x8x16xf32, #tpu.memory_space<vmem>>, vector<4x8x16xf32>
    %c0_5 = arith.constant 0 : index
    %c0_6 = arith.constant 0 : index
    %c0_7 = arith.constant 0 : index
    %4 = vector.load %arg2[%c0_5, %c0_6, %c0_7] : memref<4x8x16xf32, #tpu.memory_space<vmem>>, vector<4x8x16xf32>
    %cst_8 = arith.constant dense<0.000000e+00> : vector<4x8x8xf32>
    %5 = tpu.matmul %2, %3, %cst_8 {dimension_numbers = #tpu.dot_dimension_numbers<[2], [2], [1], [1], [0, 0, 0, 1, 1, 1], [0], [0]>} : vector<4x8x16xf32>, vector<4x8x16xf32>, vector<4x8x8xf32> -> vector<4x8x8xf32>
    %c0_9 = arith.constant 0 : index
    %c0_10 = arith.constant 0 : index
    %6 = vector.load %arg3[%c0_9, %c0_10] : memref<8x8xf32, #tpu.memory_space<vmem>>, vector<8x8xf32>
    %7 = vector.shape_cast %6 : vector<8x8xf32> to vector<1x8x8xf32>
    %8 = vector.broadcast %7 : vector<1x8x8xf32> to vector<4x8x8xf32>
    %9 = arith.addf %5, %8 : vector<4x8x8xf32>
    %cst_11 = arith.constant dense<0xFF800000> : vector<4x8xf32>
    %10 = vector.multi_reduction <maximumf>, %9, %cst_11 [2] : vector<4x8x8xf32> to vector<4x8xf32>
    %11 = vector.shape_cast %10 : vector<4x8xf32> to vector<4x8x1xf32>
    %12 = vector.broadcast %11 : vector<4x8x1xf32> to vector<4x8x8xf32>
    %13 = arith.subf %9, %12 : vector<4x8x8xf32>
    %14 = math.exp %13 : vector<4x8x8xf32>
    %cst_12 = arith.constant dense<0.000000e+00> : vector<4x8xf32>
    %15 = vector.multi_reduction <add>, %14, %cst_12 [2] : vector<4x8x8xf32> to vector<4x8xf32>
    %16 = vector.shape_cast %15 : vector<4x8xf32> to vector<4x8x1xf32>
    %cst_13 = arith.constant dense<0.000000e+00> : vector<4x8x16xf32>
    %17 = tpu.matmul %14, %4, %cst_13 {dimension_numbers = #tpu.dot_dimension_numbers<[2], [1], [1], [2], [0, 0, 0, 1, 1, 2], [0], [0]>} : vector<4x8x8xf32>, vector<4x8x16xf32>, vector<4x8x16xf32> -> vector<4x8x16xf32>
    %18 = tpu.reciprocal %16 {approx = true} : vector<4x8x1xf32> -> vector<4x8x1xf32>
    %19 = vector.broadcast %18 : vector<4x8x1xf32> to vector<4x8x16xf32>
    %20 = arith.mulf %17, %19 : vector<4x8x16xf32>
    %c0_14 = arith.constant 0 : index
    %c0_15 = arith.constant 0 : index
    %c0_16 = arith.constant 0 : index
    %21 = vector.load %arg4[%c0_14, %c0_15, %c0_16] : memref<4x8x16xf32, #tpu.memory_space<vmem>>, vector<4x8x16xf32>
    tpu.vector_store %arg4[%c0_14, %c0_15, %c0_16], %20 {strides = array<i32>} : memref<4x8x16xf32, #tpu.memory_space<vmem>>, vector<4x8x16xf32>,
    return
  }
}

module attributes {stable_mosaic.version = 11 : i64} {
  func.func @_linear_residual_kernel(%arg0: memref<16x32xf32, #tpu.memory_space<vmem>>, %arg1: memref<32x32xf32, #tpu.memory_space<vmem>>, %arg2: memref<1x32xf32, #tpu.memory_space<vmem>>, %arg3: memref<16x32xf32, #tpu.memory_space<vmem>>, %arg4: memref<16x32xf32, #tpu.memory_space<vmem>>) attributes {dimension_semantics = [], scalar_prefetch = 0 : i64, scratch_operands = 0 : i64, tpu.core_type = #tpu.core_type<tc>} {
    %c0 = arith.constant 0 : index
    %c0_0 = arith.constant 0 : index
    %0 = vector.load %arg0[%c0, %c0_0] : memref<16x32xf32, #tpu.memory_space<vmem>>, vector<16x32xf32>
    %c0_1 = arith.constant 0 : index
    %c0_2 = arith.constant 0 : index
    %1 = vector.load %arg1[%c0_1, %c0_2] : memref<32x32xf32, #tpu.memory_space<vmem>>, vector<32x32xf32>
    %cst = arith.constant dense<0.000000e+00> : vector<16x32xf32>
    %2 = tpu.matmul %0, %1, %cst {dimension_numbers = #tpu.dot_dimension_numbers<[1], [0], [0], [1], [0, 0, 1, 1], [], []>} : vector<16x32xf32>, vector<32x32xf32>, vector<16x32xf32> -> vector<16x32xf32>
    %c0_3 = arith.constant 0 : index
    %c0_4 = arith.constant 0 : index
    %3 = vector.load %arg2[%c0_3, %c0_4] : memref<1x32xf32, #tpu.memory_space<vmem>>, vector<1x32xf32>
    %4 = vector.broadcast %3 : vector<1x32xf32> to vector<16x32xf32>
    %5 = arith.addf %2, %4 : vector<16x32xf32>
    %c0_5 = arith.constant 0 : index
    %c0_6 = arith.constant 0 : index
    %6 = vector.load %arg3[%c0_5, %c0_6] : memref<16x32xf32, #tpu.memory_space<vmem>>, vector<16x32xf32>
    %7 = arith.addf %5, %6 : vector<16x32xf32>
    %c0_7 = arith.constant 0 : index
    %c0_8 = arith.constant 0 : index
    %8 = vector.load %arg4[%c0_7, %c0_8] : memref<16x32xf32, #tpu.memory_space<vmem>>, vector<16x32xf32>
    tpu.vector_store %arg4[%c0_7, %c0_8], %7 {strides = array<i32>} : memref<16x32xf32, #tpu.memory_space<vmem>>, vector<16x32xf32>,
    return
  }
}

module attributes {stable_mosaic.version = 11 : i64} {
  func.func @_ln_linear_kernel(%arg0: memref<16x32xf32, #tpu.memory_space<vmem>>, %arg1: memref<1x32xf32, #tpu.memory_space<vmem>>, %arg2: memref<1x32xf32, #tpu.memory_space<vmem>>, %arg3: memref<32x128xf32, #tpu.memory_space<vmem>>, %arg4: memref<1x128xf32, #tpu.memory_space<vmem>>, %arg5: memref<16x128xf32, #tpu.memory_space<vmem>>) attributes {dimension_semantics = [], scalar_prefetch = 0 : i64, scratch_operands = 0 : i64, tpu.core_type = #tpu.core_type<tc>} {
    %c0 = arith.constant 0 : index
    %c0_0 = arith.constant 0 : index
    %0 = vector.load %arg0[%c0, %c0_0] : memref<16x32xf32, #tpu.memory_space<vmem>>, vector<16x32xf32>
    %cst = arith.constant dense<0.000000e+00> : vector<16xf32>
    %1 = vector.multi_reduction <add>, %0, %cst [1] : vector<16x32xf32> to vector<16xf32>
    %2 = vector.shape_cast %1 : vector<16xf32> to vector<16x1xf32>
    %cst_1 = arith.constant 3.200000e+01 : f32
    %3 = vector.broadcast %cst_1 : f32 to vector<16x1xf32>
    %4 = arith.divf %2, %3 : vector<16x1xf32>
    %5 = vector.broadcast %4 : vector<16x1xf32> to vector<16x32xf32>
    %6 = arith.subf %0, %5 : vector<16x32xf32>
    %7 = arith.mulf %6, %6 : vector<16x32xf32>
    %cst_2 = arith.constant dense<0.000000e+00> : vector<16xf32>
    %8 = vector.multi_reduction <add>, %7, %cst_2 [1] : vector<16x32xf32> to vector<16xf32>
    %9 = vector.shape_cast %8 : vector<16xf32> to vector<16x1xf32>
    %cst_3 = arith.constant 3.200000e+01 : f32
    %10 = vector.broadcast %cst_3 : f32 to vector<16x1xf32>
    %11 = arith.divf %9, %10 : vector<16x1xf32>
    %12 = vector.broadcast %4 : vector<16x1xf32> to vector<16x32xf32>
    %13 = arith.subf %0, %12 : vector<16x32xf32>
    %cst_4 = arith.constant 9.99999974E-6 : f32
    %14 = vector.broadcast %cst_4 : f32 to vector<16x1xf32>
    %15 = arith.addf %11, %14 : vector<16x1xf32>
    %16 = math.rsqrt %15 : vector<16x1xf32>
    %17 = vector.broadcast %16 : vector<16x1xf32> to vector<16x32xf32>
    %18 = arith.mulf %13, %17 : vector<16x32xf32>
    %c0_5 = arith.constant 0 : index
    %c0_6 = arith.constant 0 : index
    %19 = vector.load %arg1[%c0_5, %c0_6] : memref<1x32xf32, #tpu.memory_space<vmem>>, vector<1x32xf32>
    %20 = vector.broadcast %19 : vector<1x32xf32> to vector<16x32xf32>
    %21 = arith.mulf %18, %20 : vector<16x32xf32>
    %c0_7 = arith.constant 0 : index
    %c0_8 = arith.constant 0 : index
    %22 = vector.load %arg2[%c0_7, %c0_8] : memref<1x32xf32, #tpu.memory_space<vmem>>, vector<1x32xf32>
    %23 = vector.broadcast %22 : vector<1x32xf32> to vector<16x32xf32>
    %24 = arith.addf %21, %23 : vector<16x32xf32>
    %c0_9 = arith.constant 0 : index
    %c0_10 = arith.constant 0 : index
    %25 = vector.load %arg3[%c0_9, %c0_10] : memref<32x128xf32, #tpu.memory_space<vmem>>, vector<32x128xf32>
    %cst_11 = arith.constant dense<0.000000e+00> : vector<16x128xf32>
    %26 = tpu.matmul %24, %25, %cst_11 {dimension_numbers = #tpu.dot_dimension_numbers<[1], [0], [0], [1], [0, 0, 1, 1], [], []>} : vector<16x32xf32>, vector<32x128xf32>, vector<16x128xf32> -> vector<16x128xf32>
    %c0_12 = arith.constant 0 : index
    %c0_13 = arith.constant 0 : index
    %27 = vector.load %arg4[%c0_12, %c0_13] : memref<1x128xf32, #tpu.memory_space<vmem>>, vector<1x128xf32>
    %28 = vector.broadcast %27 : vector<1x128xf32> to vector<16x128xf32>
    %29 = arith.addf %26, %28 : vector<16x128xf32>
    %cst_14 = arith.constant 1.702000e+00 : f32
    %30 = vector.broadcast %cst_14 : f32 to vector<16x128xf32>
    %31 = arith.mulf %30, %29 : vector<16x128xf32>
    %32 = arith.negf %31 : vector<16x128xf32>
    %33 = math.exp %32 : vector<16x128xf32>
    %cst_15 = arith.constant 1.000000e+00 : f32
    %34 = vector.broadcast %cst_15 : f32 to vector<16x128xf32>
    %35 = arith.addf %34, %33 : vector<16x128xf32>
    %36 = arith.divf %34, %35 : vector<16x128xf32>
    %37 = arith.mulf %29, %36 : vector<16x128xf32>
    %c0_16 = arith.constant 0 : index
    %c0_17 = arith.constant 0 : index
    %38 = vector.load %arg5[%c0_16, %c0_17] : memref<16x128xf32, #tpu.memory_space<vmem>>, vector<16x128xf32>
    tpu.vector_store %arg5[%c0_16, %c0_17], %37 {strides = array<i32>} : memref<16x128xf32, #tpu.memory_space<vmem>>, vector<16x128xf32>,
    return
  }
}

module attributes {stable_mosaic.version = 11 : i64} {
  func.func @_adapter_kernel(%arg0: memref<16x32xf32, #tpu.memory_space<vmem>>, %arg1: memref<32x8xf32, #tpu.memory_space<vmem>>, %arg2: memref<1x8xf32, #tpu.memory_space<vmem>>, %arg3: memref<8x32xf32, #tpu.memory_space<vmem>>, %arg4: memref<1x32xf32, #tpu.memory_space<vmem>>, %arg5: memref<16x32xf32, #tpu.memory_space<vmem>>) attributes {dimension_semantics = [], scalar_prefetch = 0 : i64, scratch_operands = 0 : i64, tpu.core_type = #tpu.core_type<tc>} {
    %c0 = arith.constant 0 : index
    %c0_0 = arith.constant 0 : index
    %0 = vector.load %arg0[%c0, %c0_0] : memref<16x32xf32, #tpu.memory_space<vmem>>, vector<16x32xf32>
    %c0_1 = arith.constant 0 : index
    %c0_2 = arith.constant 0 : index
    %1 = vector.load %arg1[%c0_1, %c0_2] : memref<32x8xf32, #tpu.memory_space<vmem>>, vector<32x8xf32>
    %cst = arith.constant dense<0.000000e+00> : vector<16x8xf32>
    %2 = tpu.matmul %0, %1, %cst {dimension_numbers = #tpu.dot_dimension_numbers<[1], [0], [0], [1], [0, 0, 1, 1], [], []>} : vector<16x32xf32>, vector<32x8xf32>, vector<16x8xf32> -> vector<16x8xf32>
    %c0_3 = arith.constant 0 : index
    %c0_4 = arith.constant 0 : index
    %3 = vector.load %arg2[%c0_3, %c0_4] : memref<1x8xf32, #tpu.memory_space<vmem>>, vector<1x8xf32>
    %4 = vector.broadcast %3 : vector<1x8xf32> to vector<16x8xf32>
    %5 = arith.addf %2, %4 : vector<16x8xf32>
    %cst_5 = arith.constant 5.000000e-01 : f32
    %6 = vector.broadcast %cst_5 : f32 to vector<16x8xf32>
    %7 = arith.mulf %6, %5 : vector<16x8xf32>
    %cst_6 = arith.constant 0.707106769 : f32
    %8 = vector.broadcast %cst_6 : f32 to vector<16x8xf32>
    %9 = arith.mulf %5, %8 : vector<16x8xf32>
    %10 = math.erf %9 : vector<16x8xf32>
    %cst_7 = arith.constant 1.000000e+00 : f32
    %11 = vector.broadcast %cst_7 : f32 to vector<16x8xf32>
    %12 = arith.addf %11, %10 : vector<16x8xf32>
    %13 = arith.mulf %7, %12 : vector<16x8xf32>
    %c0_8 = arith.constant 0 : index
    %c0_9 = arith.constant 0 : index
    %14 = vector.load %arg3[%c0_8, %c0_9] : memref<8x32xf32, #tpu.memory_space<vmem>>, vector<8x32xf32>
    %cst_10 = arith.constant dense<0.000000e+00> : vector<16x32xf32>
    %15 = tpu.matmul %13, %14, %cst_10 {dimension_numbers = #tpu.dot_dimension_numbers<[1], [0], [0], [1], [0, 0, 1, 1], [], []>} : vector<16x8xf32>, vector<8x32xf32>, vector<16x32xf32> -> vector<16x32xf32>
    %c0_11 = arith.constant 0 : index
    %c0_12 = arith.constant 0 : index
    %16 = vector.load %arg4[%c0_11, %c0_12] : memref<1x32xf32, #tpu.memory_space<vmem>>, vector<1x32xf32>
    %17 = vector.broadcast %16 : vector<1x32xf32> to vector<16x32xf32>
    %18 = arith.addf %15, %17 : vector<16x32xf32>
    %19 = arith.addf %0, %18 : vector<16x32xf32>
    %c0_13 = arith.constant 0 : index
    %c0_14 = arith.constant 0 : index
    %20 = vector.load %arg5[%c0_13, %c0_14] : memref<16x32xf32, #tpu.memory_space<vmem>>, vector<16x32xf32>
    tpu.vector_store %arg5[%c0_13, %c0_14], %19 {strides = array<i32>} : memref<16x32xf32, #tpu.memory_space<vmem>>, vector<16x32xf32>,
    return
  }
}

module attributes {stable_mosaic.version = 11 : i64} {
  func.func @_linear_residual_kernel(%arg0: memref<16x128xf32, #tpu.memory_space<vmem>>, %arg1: memref<128x32xf32, #tpu.memory_space<vmem>>, %arg2: memref<1x32xf32, #tpu.memory_space<vmem>>, %arg3: memref<16x32xf32, #tpu.memory_space<vmem>>, %arg4: memref<16x32xf32, #tpu.memory_space<vmem>>) attributes {dimension_semantics = [], scalar_prefetch = 0 : i64, scratch_operands = 0 : i64, tpu.core_type = #tpu.core_type<tc>} {
    %c0 = arith.constant 0 : index
    %c0_0 = arith.constant 0 : index
    %0 = vector.load %arg0[%c0, %c0_0] : memref<16x128xf32, #tpu.memory_space<vmem>>, vector<16x128xf32>
    %c0_1 = arith.constant 0 : index
    %c0_2 = arith.constant 0 : index
    %1 = vector.load %arg1[%c0_1, %c0_2] : memref<128x32xf32, #tpu.memory_space<vmem>>, vector<128x32xf32>
    %cst = arith.constant dense<0.000000e+00> : vector<16x32xf32>
    %2 = tpu.matmul %0, %1, %cst {dimension_numbers = #tpu.dot_dimension_numbers<[1], [0], [0], [1], [0, 0, 1, 1], [], []>} : vector<16x128xf32>, vector<128x32xf32>, vector<16x32xf32> -> vector<16x32xf32>
    %c0_3 = arith.constant 0 : index
    %c0_4 = arith.constant 0 : index
    %3 = vector.load %arg2[%c0_3, %c0_4] : memref<1x32xf32, #tpu.memory_space<vmem>>, vector<1x32xf32>
    %4 = vector.broadcast %3 : vector<1x32xf32> to vector<16x32xf32>
    %5 = arith.addf %2, %4 : vector<16x32xf32>
    %c0_5 = arith.constant 0 : index
    %c0_6 = arith.constant 0 : index
    %6 = vector.load %arg3[%c0_5, %c0_6] : memref<16x32xf32, #tpu.memory_space<vmem>>, vector<16x32xf32>
    %7 = arith.addf %5, %6 : vector<16x32xf32>
    %c0_7 = arith.constant 0 : index
    %c0_8 = arith.constant 0 : index
    %8 = vector.load %arg4[%c0_7, %c0_8] : memref<16x32xf32, #tpu.memory_space<vmem>>, vector<16x32xf32>
    tpu.vector_store %arg4[%c0_7, %c0_8], %7 {strides = array<i32>} : memref<16x32xf32, #tpu.memory_space<vmem>>, vector<16x32xf32>,
    return
  }
}

module attributes {stable_mosaic.version = 11 : i64} {
  func.func @_ln_linear_kernel(%arg0: memref<2x32xf32, #tpu.memory_space<vmem>>, %arg1: memref<1x32xf32, #tpu.memory_space<vmem>>, %arg2: memref<1x32xf32, #tpu.memory_space<vmem>>, %arg3: memref<32x32xf32, #tpu.memory_space<vmem>>, %arg4: memref<2x32xf32, #tpu.memory_space<vmem>>) attributes {dimension_semantics = [], scalar_prefetch = 0 : i64, scratch_operands = 0 : i64, tpu.core_type = #tpu.core_type<tc>} {
    %c0 = arith.constant 0 : index
    %c0_0 = arith.constant 0 : index
    %0 = vector.load %arg0[%c0, %c0_0] : memref<2x32xf32, #tpu.memory_space<vmem>>, vector<2x32xf32>
    %cst = arith.constant dense<0.000000e+00> : vector<2xf32>
    %1 = vector.multi_reduction <add>, %0, %cst [1] : vector<2x32xf32> to vector<2xf32>
    %2 = vector.shape_cast %1 : vector<2xf32> to vector<2x1xf32>
    %cst_1 = arith.constant 3.200000e+01 : f32
    %3 = vector.broadcast %cst_1 : f32 to vector<2x1xf32>
    %4 = arith.divf %2, %3 : vector<2x1xf32>
    %5 = vector.broadcast %4 : vector<2x1xf32> to vector<2x32xf32>
    %6 = arith.subf %0, %5 : vector<2x32xf32>
    %7 = arith.mulf %6, %6 : vector<2x32xf32>
    %cst_2 = arith.constant dense<0.000000e+00> : vector<2xf32>
    %8 = vector.multi_reduction <add>, %7, %cst_2 [1] : vector<2x32xf32> to vector<2xf32>
    %9 = vector.shape_cast %8 : vector<2xf32> to vector<2x1xf32>
    %cst_3 = arith.constant 3.200000e+01 : f32
    %10 = vector.broadcast %cst_3 : f32 to vector<2x1xf32>
    %11 = arith.divf %9, %10 : vector<2x1xf32>
    %12 = vector.broadcast %4 : vector<2x1xf32> to vector<2x32xf32>
    %13 = arith.subf %0, %12 : vector<2x32xf32>
    %cst_4 = arith.constant 9.99999974E-6 : f32
    %14 = vector.broadcast %cst_4 : f32 to vector<2x1xf32>
    %15 = arith.addf %11, %14 : vector<2x1xf32>
    %16 = math.rsqrt %15 : vector<2x1xf32>
    %17 = vector.broadcast %16 : vector<2x1xf32> to vector<2x32xf32>
    %18 = arith.mulf %13, %17 : vector<2x32xf32>
    %c0_5 = arith.constant 0 : index
    %c0_6 = arith.constant 0 : index
    %19 = vector.load %arg1[%c0_5, %c0_6] : memref<1x32xf32, #tpu.memory_space<vmem>>, vector<1x32xf32>
    %20 = vector.broadcast %19 : vector<1x32xf32> to vector<2x32xf32>
    %21 = arith.mulf %18, %20 : vector<2x32xf32>
    %c0_7 = arith.constant 0 : index
    %c0_8 = arith.constant 0 : index
    %22 = vector.load %arg2[%c0_7, %c0_8] : memref<1x32xf32, #tpu.memory_space<vmem>>, vector<1x32xf32>
    %23 = vector.broadcast %22 : vector<1x32xf32> to vector<2x32xf32>
    %24 = arith.addf %21, %23 : vector<2x32xf32>
    %c0_9 = arith.constant 0 : index
    %c0_10 = arith.constant 0 : index
    %25 = vector.load %arg3[%c0_9, %c0_10] : memref<32x32xf32, #tpu.memory_space<vmem>>, vector<32x32xf32>
    %cst_11 = arith.constant dense<0.000000e+00> : vector<2x32xf32>
    %26 = tpu.matmul %24, %25, %cst_11 {dimension_numbers = #tpu.dot_dimension_numbers<[1], [0], [0], [1], [0, 0, 1, 1], [], []>} : vector<2x32xf32>, vector<32x32xf32>, vector<2x32xf32> -> vector<2x32xf32>
    %c0_12 = arith.constant 0 : index
    %c0_13 = arith.constant 0 : index
    %27 = vector.load %arg4[%c0_12, %c0_13] : memref<2x32xf32, #tpu.memory_space<vmem>>, vector<2x32xf32>
    tpu.vector_store %arg4[%c0_12, %c0_13], %26 {strides = array<i32>} : memref<2x32xf32, #tpu.memory_space<vmem>>, vector<2x32xf32>,
    return
  }
}

module attributes {stable_mosaic.version = 11 : i64} {
  func.func @_linear_kernel(%arg0: memref<4x32xf32, #tpu.memory_space<vmem>>, %arg1: memref<32x2xf32, #tpu.memory_space<vmem>>, %arg2: memref<4x2xf32, #tpu.memory_space<vmem>>) attributes {dimension_semantics = [], scalar_prefetch = 0 : i64, scratch_operands = 0 : i64, tpu.core_type = #tpu.core_type<tc>} {
    %c0 = arith.constant 0 : index
    %c0_0 = arith.constant 0 : index
    %0 = vector.load %arg0[%c0, %c0_0] : memref<4x32xf32, #tpu.memory_space<vmem>>, vector<4x32xf32>
    %c0_1 = arith.constant 0 : index
    %c0_2 = arith.constant 0 : index
    %1 = vector.load %arg1[%c0_1, %c0_2] : memref<32x2xf32, #tpu.memory_space<vmem>>, vector<32x2xf32>
    %cst = arith.constant dense<0.000000e+00> : vector<4x2xf32>
    %2 = tpu.matmul %0, %1, %cst {dimension_numbers = #tpu.dot_dimension_numbers<[1], [0], [0], [1], [0, 0, 1, 1], [], []>} : vector<4x32xf32>, vector<32x2xf32>, vector<4x2xf32> -> vector<4x2xf32>
    %c0_3 = arith.constant 0 : index
    %c0_4 = arith.constant 0 : index
    %3 = vector.load %arg2[%c0_3, %c0_4] : memref<4x2xf32, #tpu.memory_space<vmem>>, vector<4x2xf32>
    tpu.vector_store %arg2[%c0_3, %c0_4], %2 {strides = array<i32>} : memref<4x2xf32, #tpu.memory_space<vmem>>, vector<4x2xf32>,
    return
  }
}

</mosaic_0001>

<bundles_post_ra>
// kernel: clip_forward.37
= control target key start
LH: loop header
LB: loop body
LE: loop exit
PB: predicated region body
PF: predicated region fallthrough
CT: control target
= control target key end

     0   :  { %v178_v0 = vmov 0.0   ;;  %vm39_vm0 = vcmask 523264   ;;  %s336_s1 = inlined_call_operand.vmem [shape: f32[192,64], index: 1, kind: input, shape index: {}]   ;;  %s337_s0 = inlined_call_operand.vmem [shape: f32[16,192], index: 0, kind: input, shape index: {}]   ;;  %s338_s2 = inlined_call_operand.vmem [shape: f32[16,64], index: 2, kind: output, shape index: {}]  }
   0x1   :  { %46 = vmatprep.subr.mxu0 %v178_v0  ;;  %129 = vmatprep.subr.mxu1 %v178_v0  ;;  %v30_v1 = vld [vmem:[%s336_s1 + $0x78] sm:$0xff]  ;;  %v29_v2 = vld [vmem:[%s336_s1 + $0x70] sm:$0xff]  ;;  %v28_v3 = vld [vmem:[%s336_s1 + $0x68] sm:$0xff] }
   0x2   :  { %47 = vmatpush1.msra.mxu0 %v30_v1  ;;  %153 = vmatpush1.msra.mxu1 %v30_v1  ;;  %v27_v4 = vld [vmem:[%s336_s1 + $0x60] sm:$0xff]  ;;  %v26_v5 = vld [vmem:[%s336_s1 + $0x58] sm:$0xff]  ;;  %v25_v6 = vld [vmem:[%s336_s1 + $0x50] sm:$0xff] }
   0x3   :  { %48 = vmatprep.subr.mxu0 %v178_v0  ;;  %130 = vmatprep.subr.mxu1 %v178_v0  ;;  %v24_v7 = vld [vmem:[%s336_s1 + $0x48] sm:$0xff]  ;;  %v23_v8 = vld [vmem:[%s336_s1 + $0x40] sm:$0xff]  ;;  %v22_v9 = vld [vmem:[%s336_s1 + $0x38] sm:$0xff] }
   0x4   :  { %49 = vmatpush1.msra.mxu0 %v29_v2  ;;  %154 = vmatpush1.msra.mxu1 %v29_v2  ;;  %v21_v10 = vld [vmem:[%s336_s1 + $0x30] sm:$0xff]  ;;  %v20_v11 = vld [vmem:[%s336_s1 + $0x28] sm:$0xff]  ;;  %v19_v12 = vld [vmem:[%s336_s1 + $0x20] sm:$0xff] }
   0x5   :  { %50 = vmatprep.subr.mxu0 %v178_v0  ;;  %131 = vmatprep.subr.mxu1 %v178_v0  ;;  %v18_v13 = vld [vmem:[%s336_s1 + $0x18] sm:$0xff]  ;;  %v17_v14 = vld [vmem:[%s336_s1 + $0x10] sm:$0xff]  ;;  %v16_v15 = vld [vmem:[%s336_s1 + $0x8] sm:$0xff] }
   0x6   :  { %51 = vmatpush1.msra.mxu0 %v28_v3  ;;  %155 = vmatpush1.msra.mxu1 %v28_v3  ;;  %v15_v16 = vld [vmem:[%s336_s1] sm:$0xff]  ;;  %v38_v17 = vld [vmem:[%s336_s1 + $0xb8] sm:$0xff]  ;;  %v37_v18 = vld [vmem:[%s336_s1 + $0xb0] sm:$0xff] }
   0x7   :  { %52 = vmatprep.subr.mxu0 %v178_v0  ;;  %132 = vmatprep.subr.mxu1 %v178_v0  ;;  %v36_v19 = vld [vmem:[%s336_s1 + $0xa8] sm:$0xff]  ;;  %v35_v20 = vld [vmem:[%s336_s1 + $0xa0] sm:$0xff]  ;;  %v34_v21 = vld [vmem:[%s336_s1 + $0x98] sm:$0xff] }
   0x8   :  { %53 = vmatpush1.msra.mxu0 %v27_v4  ;;  %156 = vmatpush1.msra.mxu1 %v27_v4  ;;  %v33_v22 = vld [vmem:[%s336_s1 + $0x90] sm:$0xff]  ;;  %v32_v23 = vld [vmem:[%s336_s1 + $0x88] sm:$0xff]  ;;  %v31_v24 = vld [vmem:[%s336_s1 + $0x80] sm:$0xff] }
   0x9   :  { %54 = vmatprep.subr.mxu0 %v178_v0  ;;  %133 = vmatprep.subr.mxu1 %v178_v0  ;;  %v12_v25 = vld [vmem:[%s337_s0 + $0x8] sm:$0xff]  ;;  %v14_v26 = vld [vmem:[%s337_s0 + $0x18] sm:$0xff]  ;;  %v11_v27 = vld [vmem:[%s337_s0] sm:$0xff] }
   0xa   :  { %55 = vmatpush1.msra.mxu0 %v26_v5  ;;  %157 = vmatpush1.msra.mxu1 %v26_v5  ;;  %v13_v28 = vld [vmem:[%s337_s0 + $0x10] sm:$0xff] }
   0xb   :  { %56 = vmatprep.subr.mxu0 %v178_v0  ;;  %134 = vmatprep.subr.mxu1 %v178_v0 }
   0xc   :  { %57 = vmatpush1.msra.mxu0 %v25_v6  ;;  %158 = vmatpush1.msra.mxu1 %v25_v6 }
   0xd   :  { %58 = vmatprep.subr.mxu0 %v178_v0  ;;  %135 = vmatprep.subr.mxu1 %v178_v0 }
   0xe   :  { %59 = vmatpush1.msra.mxu0 %v24_v7  ;;  %159 = vmatpush1.msra.mxu1 %v24_v7 }
   0xf   :  { %60 = vmatprep.subr.mxu0 %v178_v0  ;;  %136 = vmatprep.subr.mxu1 %v178_v0 }
  0x10   :  { %61 = vmatpush1.msra.mxu0 %v23_v8  ;;  %160 = vmatpush1.msra.mxu1 %v23_v8 }
  0x11   :  { %62 = vmatprep.subr.mxu0 %v178_v0  ;;  %137 = vmatprep.subr.mxu1 %v178_v0 }
  0x12   :  { %63 = vmatpush1.msra.mxu0 %v22_v9  ;;  %161 = vmatpush1.msra.mxu1 %v22_v9 }
  0x13   :  { %64 = vmatprep.subr.mxu0 %v178_v0  ;;  %138 = vmatprep.subr.mxu1 %v178_v0 }
  0x14   :  { %65 = vmatpush1.msra.mxu0 %v21_v10  ;;  %162 = vmatpush1.msra.mxu1 %v21_v10 }
  0x15   :  { %66 = vmatprep.subr.mxu0 %v178_v0  ;;  %139 = vmatprep.subr.mxu1 %v178_v0 }
  0x16   :  { %67 = vmatpush1.msra.mxu0 %v20_v11  ;;  %163 = vmatpush1.msra.mxu1 %v20_v11 }
  0x17   :  { %68 = vmatprep.subr.mxu0 %v178_v0  ;;  %140 = vmatprep.subr.mxu1 %v178_v0 }
  0x18   :  { %69 = vmatpush1.msra.mxu0 %v19_v12  ;;  %164 = vmatpush1.msra.mxu1 %v19_v12 }
  0x19   :  { %70 = vmatprep.subr.mxu0 %v178_v0  ;;  %141 = vmatprep.subr.mxu1 %v178_v0 }
  0x1a   :  { %71 = vmatpush1.msra.mxu0 %v18_v13  ;;  %165 = vmatpush1.msra.mxu1 %v18_v13 }
  0x1b   :  { %72 = vmatprep.subr.mxu0 %v178_v0  ;;  %142 = vmatprep.subr.mxu1 %v178_v0 }
  0x1c   :  { %73 = vmatpush1.msra.mxu0 %v17_v14  ;;  %166 = vmatpush1.msra.mxu1 %v17_v14 }
  0x1d   :  { %74 = vmatprep.subr.mxu0 %v178_v0  ;;  %143 = vmatprep.subr.mxu1 %v178_v0 }
  0x1e   :  { %75 = vmatpush1.msra.mxu0 %v16_v15  ;;  %167 = vmatpush1.msra.mxu1 %v16_v15 }
  0x1f   :  { %76 = vmatprep.subr.mxu0 %v178_v0  ;;  %144 = vmatprep.subr.mxu1 %v178_v0 }
  0x20   :  { %77 = vmatpush1.msra.mxu0 %v15_v16  ;;  %168 = vmatpush1.msra.mxu1 %v15_v16 }
  0x21   :  { %94 = vmatprep.subr.mxu0 %v178_v0  ;;  %145 = vmatprep.subr.mxu1 %v178_v0 }
  0x22   :  { %95 = vmatpush2.msra.mxu0 %v38_v17  ;;  %169 = vmatpush2.msra.mxu1 %v38_v17 }
  0x23   :  { %96 = vmatprep.subr.mxu0 %v178_v0  ;;  %146 = vmatprep.subr.mxu1 %v178_v0 }
  0x24   :  { %97 = vmatpush2.msra.mxu0 %v37_v18  ;;  %170 = vmatpush2.msra.mxu1 %v37_v18 }
  0x25   :  { %98 = vmatprep.subr.mxu0 %v178_v0  ;;  %147 = vmatprep.subr.mxu1 %v178_v0 }
  0x26   :  { %99 = vmatpush2.msra.mxu0 %v36_v19  ;;  %171 = vmatpush2.msra.mxu1 %v36_v19 }
  0x27   :  { %100 = vmatprep.subr.mxu0 %v178_v0  ;;  %148 = vmatprep.subr.mxu1 %v178_v0 }
  0x28   :  { %101 = vmatpush2.msra.mxu0 %v35_v20  ;;  %172 = vmatpush2.msra.mxu1 %v35_v20 }
  0x29   :  { %102 = vmatprep.subr.mxu0 %v178_v0  ;;  %149 = vmatprep.subr.mxu1 %v178_v0 }
  0x2a   :  { %103 = vmatpush2.msra.mxu0 %v34_v21  ;;  %173 = vmatpush2.msra.mxu1 %v34_v21 }
  0x2b   :  { %104 = vmatprep.subr.mxu0 %v178_v0  ;;  %150 = vmatprep.subr.mxu1 %v178_v0 }
  0x2c   :  { %105 = vmatpush2.msra.mxu0 %v33_v22  ;;  %174 = vmatpush2.msra.mxu1 %v33_v22 }
  0x2d   :  { %106 = vmatprep.subr.mxu0 %v178_v0  ;;  %151 = vmatprep.subr.mxu1 %v178_v0 }
  0x2e   :  { %107 = vmatpush2.msra.mxu0 %v32_v23  ;;  %175 = vmatpush2.msra.mxu1 %v32_v23 }
  0x2f   :  { %108 = vmatprep.subr.mxu0 %v178_v0  ;;  %152 = vmatprep.subr.mxu1 %v178_v0 }
  0x30   :  { %109 = vmatpush2.msra.mxu0 %v31_v24  ;;  %176 = vmatpush2.msra.mxu1 %v31_v24 }
  0x31   :  { %127 = vmatprep.mubr.msk.f32.mxu0 %vm39_vm0, %v12_v25  ;;  %128 = vmatprep.mubr.msk.f32.mxu1 %vm39_vm0, %v14_v26 }
  0x32   :  { %111 = vmatmul.mubr.f32.vlgmr.msra.gmra.mxu0 %v11_v27  ;;  %116 = vmatmul.mubr.f32.vlgmr.msra.gmra.mxu1 %v13_v28 }
  0xf2   :  { %v112_v29 = vpop.f32.mrf.mxu0  ;;  %v117_v30 = vpop.f32.mrf.mxu1 }
  0xf3   :  { %121 = vst.msk [vmem:[%s338_s2] sm:$0xff] %vm39_vm0, %v112_v29  ;;  %122 = vst.msk [vmem:[%s338_s2 + $0x8] sm:$0xff] %vm39_vm0, %v117_v30 }
  0xf4   :  { %v114_v31 = vpop.f32.mrf.mxu0  ;;  %v119_v32 = vpop.f32.mrf.mxu1 }

// kernel: clip_forward.39
= control target key start
LH: loop header
LB: loop body
LE: loop exit
PB: predicated region body
PF: predicated region fallthrough
CT: control target
= control target key end

     0   :  { %vm23_vm0 = vcmask 523264   ;;  %vm30_vm1 = vcmask 519168   ;;  %v243_v37 = vmov 0.0   ;;  %v103_v61 = vlaneseq  ;;  %s385_s0 = inlined_call_operand.vmem [shape: f32[20,64], index: 0, kind: input, shape index: {}]   ;;  %s386_s3 = inlined_call_operand.vmem [shape: f32[64,192], index: 3, kind: input, shape index: {}]   ;;  %s387_s1 = inlined_call_operand.vmem [shape: f32[1,64], index: 1, kind: input, shape index: {}]   ;;  %s388_s2 = inlined_call_operand.vmem [shape: f32[1,64], index: 2, kind: input, shape index: {}]   ;;  %s389_s4 = inlined_call_operand.vmem [shape: f32[1,192], index: 4, kind: input, shape index: {}]   ;;  %s390_s5 = inlined_call_operand.vmem [shape: f32[20,192], index: 5, kind: output, shape index: {}]  }
   0x1   :  { %v21_v0 = vld [vmem:[%s385_s0 + $0x8] sm:$0xff]  ;;  %v22_v1 = vld [vmem:[%s385_s0 + $0x10] sm:$0xf]  ;;  %v20_v2 = vld [vmem:[%s385_s0] sm:$0xff]  ;;  %192 = vmatprep.mubr.f32.mxu1 %v243_v37  ;;  %186 = vmatprep.mubr.f32.mxu0 %v243_v37 }
   0x2   :  { %v27_v3 = vsel %vm23_vm0, %v21_v0, 0.0  ;;  %v31_v4 = vsel %vm30_vm1, %v22_v1, 0.0  ;;  %v24_v5 = vsel %vm23_vm0, %v20_v2, 0.0  ;;  %v100_v21 = vld [vmem:[%s386_s3 + $0x78] sm:$0xff]  ;;  %v99_v22 = vld [vmem:[%s386_s3 + $0x70] sm:$0xff]  ;;  %v98_v23 = vld [vmem:[%s386_s3 + $0x68] sm:$0xff] }
   0x3   :  { %28 = vadd.xlane.f32.xlu0 %v27_v3  ;;  %32 = vadd.xlane.f32.xlu1 %v31_v4  ;;  %v97_v24 = vld [vmem:[%s386_s3 + $0x60] sm:$0xff]  ;;  %v96_v25 = vld [vmem:[%s386_s3 + $0x58] sm:$0xff]  ;;  %v95_v26 = vld [vmem:[%s386_s3 + $0x50] sm:$0xff]  ;;  %v104_v62 = vshrl.u32 %v103_v61, 7 }
   0x4   :  { %220 = vmatprep.subr.mxu1 %v100_v21  ;;  %138 = vmatprep.subr.mxu0 %v100_v21  ;;  %v94_v27 = vld [vmem:[%s386_s3 + $0x48] sm:$0xff]  ;;  %v93_v28 = vld [vmem:[%s386_s3 + $0x40] sm:$0xff]  ;;  %v92_v29 = vld [vmem:[%s386_s3 + $0x38] sm:$0xff] }
   0x5   :  { %228 = vmatpush1.msra.mxu1 %v99_v22  ;;  %139 = vmatpush1.msra.mxu0 %v99_v22  ;;  %v91_v30 = vld [vmem:[%s386_s3 + $0x30] sm:$0xff]  ;;  %v90_v31 = vld [vmem:[%s386_s3 + $0x28] sm:$0xff]  ;;  %v89_v32 = vld [vmem:[%s386_s3 + $0x20] sm:$0xff]  ;;  %v105_v63 = vsub.s32 0, %v104_v62 }
   0x6   :  { %221 = vmatprep.subr.mxu1 %v98_v23  ;;  %140 = vmatprep.subr.mxu0 %v98_v23  ;;  %v88_v33 = vld [vmem:[%s386_s3 + $0x18] sm:$0xff]  ;;  %v87_v34 = vld [vmem:[%s386_s3 + $0x10] sm:$0xff]  ;;  %v86_v35 = vld [vmem:[%s386_s3 + $0x8] sm:$0xff] }
   0x7   :  { %25 = vadd.xlane.f32.xlu0 %v24_v5  ;;  %229 = vmatpush1.msra.mxu1 %v97_v24  ;;  %v85_v36 = vld [vmem:[%s386_s3] sm:$0xff] }
   0x8   :  { %141 = vmatpush1.msra.mxu0 %v97_v24  ;;  %222 = vmatprep.subr.mxu1 %v96_v25  ;;  %v215_v48 = vld [vmem:[%s387_s1] ss:$0 sm:$0xff] }
   0x9   :  { %142 = vmatprep.subr.mxu0 %v96_v25  ;;  %230 = vmatpush1.msra.mxu1 %v95_v26  ;;  %v216_v50 = vld [vmem:[%s388_s2] ss:$0 sm:$0xff] }
   0xa   :  { %143 = vmatpush1.msra.mxu0 %v95_v26  ;;  %223 = vmatprep.subr.mxu1 %v94_v27 }
   0xb   :  { %144 = vmatprep.subr.mxu0 %v94_v27  ;;  %231 = vmatpush1.msra.mxu1 %v93_v28 }
   0xc   :  { %145 = vmatpush1.msra.mxu0 %v93_v28  ;;  %224 = vmatprep.subr.mxu1 %v92_v29 }
   0xd   :  { %146 = vmatprep.subr.mxu0 %v92_v29  ;;  %232 = vmatpush1.msra.mxu1 %v91_v30 }
   0xe   :  { %147 = vmatpush1.msra.mxu0 %v91_v30  ;;  %225 = vmatprep.subr.mxu1 %v90_v31 }
   0xf   :  { %148 = vmatprep.subr.mxu0 %v90_v31  ;;  %233 = vmatpush1.msra.mxu1 %v89_v32 }
  0x10   :  { %149 = vmatpush1.msra.mxu0 %v89_v32  ;;  %226 = vmatprep.subr.mxu1 %v88_v33 }
  0x11   :  { %234 = vmatpush1.msra.mxu1 %v87_v34  ;;  %150 = vmatprep.subr.mxu0 %v88_v33 }
  0x12   :  { %227 = vmatprep.subr.mxu1 %v86_v35  ;;  %151 = vmatpush1.msra.mxu0 %v87_v34 }
  0x13   :  { %235 = vmatpush1.msra.mxu1 %v85_v36  ;;  %152 = vmatprep.subr.mxu0 %v86_v35 }
  0x14   :  { %153 = vmatpush1.msra.mxu0 %v85_v36 }
  0x8c   :  { %v29_v6 = vpop.xlane.xlu0 %28  ;;  %v33_v7 = vpop.xlane.xlu1 %32 }
  0x8d   :  { %v36_v8 = vmul.f32 0.015625, %v29_v6  ;;  %v37_v9 = vmul.f32 0.015625, %v33_v7 }
  0x8f   :  { %v286_v10 = vsub.f32 %v21_v0, %v36_v8  ;;  %v288_v11 = vsub.f32 %v22_v1, %v37_v9  ;;  %v101_v0 = vld [vmem:[%s389_s4] sm:$0x3]  ;;  %v109_v1 = vsub.s32 1, %v104_v62 }
  0x90   :  { %v26_v12 = vpop.xlane.xlu0 %25 }
  0x91   :  { %v35_v13 = vmul.f32 0.015625, %v26_v12  ;;  %v42_v14 = vmul.f32 %v286_v10, %v286_v10  ;;  %v43_v15 = vmul.f32 %v288_v11, %v288_v11  ;;  %v110_v3 = vrot.slane %v101_v0, %v109_v1 }
  0x93   :  { %v294_v16 = vsub.f32 %v20_v2, %v35_v13  ;;  %v47_v17 = vsel %vm23_vm0, %v42_v14, 0.0  ;;  %v50_v18 = vsel %vm30_vm1, %v43_v15, 0.0  ;;  %v106_v2 = vrot.slane %v101_v0, %v105_v63 }
  0x94   :  { %48 = vadd.xlane.f32.xlu1 %v47_v17 }
  0x95   :  { %v41_v19 = vmul.f32 %v294_v16, %v294_v16 }
  0x97   :  { %v44_v20 = vsel %vm23_vm0, %v41_v19, 0.0 }
  0x98   :  { %51 = vadd.xlane.f32.xlu1 %v50_v18  ;;  %45 = vadd.xlane.f32.xlu0 %v44_v20 }
 0x11d   :  { %v49_v38 = vpop.xlane.xlu1 %48 }
 0x11e   :  { %v54_v39 = vmul.f32 0.015625, %v49_v38 }
 0x120   :  { %v57_v40 = vadd.f32 1e-05, %v54_v39 }
 0x121   :  { %v52_v41 = vpop.xlane.xlu1 %51  ;;  %v46_v42 = vpop.xlane.xlu0 %45 }
 0x122   :  { %237 = vrsqrt.f32 %v57_v40  ;;  %v55_v43 = vmul.f32 0.015625, %v52_v41  ;;  %v53_v44 = vmul.f32 0.015625, %v46_v42 }
 0x124   :  { %v58_v45 = vadd.f32 1e-05, %v55_v43  ;;  %v56_v46 = vadd.f32 1e-05, %v53_v44 }
 0x126   :  { %239 = vrsqrt.f32 %v58_v45 }
 0x127   :  { %241 = vrsqrt.f32 %v56_v46 }
 0x12f   :  { %v238_v47 = vpop.eup %237 }
 0x130   :  { %v63_v49 = vmul.f32 %v238_v47, %v286_v10 }
 0x132   :  { %v73_v51 = vmul.f32 %v215_v48, %v63_v49 }
 0x133   :  { %v240_v52 = vpop.eup %239 }
 0x134   :  { %v242_v53 = vpop.eup %241  ;;  %v83_v54 = vadd.f32 %v216_v50, %v73_v51  ;;  %v64_v55 = vmul.f32 %v240_v52, %v288_v11 }
 0x135   :  { %v62_v56 = vmul.f32 %v242_v53, %v294_v16 }
 0x136   :  { %218 = vmatmul.mubr.msk.f32.vlgmr.msra.gmra.mxu1 %vm23_vm0, %v83_v54  ;;  %v74_v57 = vmul.f32 %v215_v48, %v64_v55 }
 0x137   :  { %198 = vmatprep.mubr.f32.mxu1 %v243_v37  ;;  %v72_v58 = vmul.f32 %v215_v48, %v62_v56 }
 0x138   :  { %v84_v59 = vadd.f32 %v216_v50, %v74_v57 }
 0x139   :  { %v82_v60 = vadd.f32 %v216_v50, %v72_v58 }
 0x13a   :  { %219 = vmatmul.mubr.msk.f32.gmra.mxu1 %vm23_vm0, %v84_v59 }
 0x13b   :  { %217 = vmatmul.mubr.msk.f32.vlgmr.msra.gmra.mxu0 %vm23_vm0, %v82_v60 }
 0x1f6   :  { %v194_v4 = vpop.f32.mrf.mxu1 }
 0x1f7   :  { %v195_v5 = vadd.f32 %v194_v4, %v106_v2 }
 0x1f8   :  { %v196_v6 = vpop.f32.mrf.mxu1 }
 0x1f9   :  { %207 = vst [vmem:[%s390_s5 + $0x10] sm:$0xff] %v195_v5  ;;  %v197_v7 = vadd.f32 %v196_v6, %v110_v3 }
 0x1fa   :  { %v200_v8 = vpop.f32.mrf.mxu1 }
 0x1fb   :  { %208 = vst.msk [vmem:[%s390_s5 + $0x18] sm:$0xff] %vm23_vm0, %v197_v7  ;;  %v188_v9 = vpop.f32.mrf.mxu0  ;;  %v201_v10 = vadd.f32 %v200_v8, %v106_v2 }
 0x1fc   :  { %v189_v11 = vadd.f32 %v188_v9, %v106_v2  ;;  %v202_v12 = vpop.f32.mrf.mxu1 }
 0x1fd   :  { %209 = vst [vmem:[%s390_s5 + $0x20] sm:$0xf] %v201_v10  ;;  %v190_v13 = vpop.f32.mrf.mxu0  ;;  %v203_v14 = vadd.f32 %v202_v12, %v110_v3 }
 0x1fe   :  { %205 = vst [vmem:[%s390_s5] sm:$0xff] %v189_v11  ;;  %v191_v15 = vadd.f32 %v190_v13, %v110_v3 }
 0x1ff   :  { %210 = vst.msk [vmem:[%s390_s5 + $0x28] sm:$0xf] %vm30_vm1, %v203_v14 }
 0x200   :  { %206 = vst.msk [vmem:[%s390_s5 + $0x8] sm:$0xff] %vm23_vm0, %v191_v15 }

// kernel: clip_forward.38
= control target key start
LH: loop header
LB: loop body
LE: loop exit
PB: predicated region body
PF: predicated region fallthrough
CT: control target
= control target key end

     0   :  { %vm17_vm0 = vcmask 523264   ;;  %vm24_vm1 = vcmask 519168   ;;  %s147_s0 = inlined_call_operand.vmem [shape: f32[20,64], index: 0, kind: input, shape index: {}]   ;;  %s148_s1 = inlined_call_operand.vmem [shape: f32[1,64], index: 1, kind: input, shape index: {}]   ;;  %s149_s2 = inlined_call_operand.vmem [shape: f32[1,64], index: 2, kind: input, shape index: {}]   ;;  %s150_s3 = inlined_call_operand.vmem [shape: f32[20,64], index: 3, kind: output, shape index: {}]  }
   0x1   :  { %v14_v0 = vld [vmem:[%s147_s0] sm:$0xff]  ;;  %v16_v1 = vld [vmem:[%s147_s0 + $0x10] sm:$0xf]  ;;  %v15_v2 = vld [vmem:[%s147_s0 + $0x8] sm:$0xff] }
   0x2   :  { %v18_v3 = vsel %vm17_vm0, %v14_v0, 0.0  ;;  %v25_v4 = vsel %vm24_vm1, %v16_v1, 0.0  ;;  %v21_v5 = vsel %vm17_vm0, %v15_v2, 0.0  ;;  %v86_v31 = vld [vmem:[%s148_s1] ss:$0 sm:$0xff] }
   0x3   :  { %19 = vadd.xlane.f32.xlu0 %v18_v3  ;;  %26 = vadd.xlane.f32.xlu1 %v25_v4  ;;  %v87_v33 = vld [vmem:[%s149_s2] ss:$0 sm:$0xff] }
   0x7   :  { %22 = vadd.xlane.f32.xlu0 %v21_v5 }
  0x8c   :  { %v20_v6 = vpop.xlane.xlu0 %19  ;;  %v27_v7 = vpop.xlane.xlu1 %26 }
  0x8d   :  { %v29_v8 = vmul.f32 0.015625, %v20_v6  ;;  %v31_v9 = vmul.f32 0.015625, %v27_v7 }
  0x8f   :  { %v32_v10 = vsub.f32 %v14_v0, %v29_v8  ;;  %v34_v11 = vsub.f32 %v16_v1, %v31_v9 }
  0x90   :  { %v23_v12 = vpop.xlane.xlu0 %22 }
  0x91   :  { %v30_v13 = vmul.f32 0.015625, %v23_v12  ;;  %v35_v14 = vmul.f32 %v32_v10, %v32_v10  ;;  %v37_v15 = vmul.f32 %v34_v11, %v34_v11 }
  0x93   :  { %v33_v16 = vsub.f32 %v15_v2, %v30_v13  ;;  %v38_v17 = vsel %vm17_vm0, %v35_v14, 0.0  ;;  %v44_v18 = vsel %vm24_vm1, %v37_v15, 0.0 }
  0x94   :  { %39 = vadd.xlane.f32.xlu1 %v38_v17 }
  0x95   :  { %v36_v19 = vmul.f32 %v33_v16, %v33_v16 }
  0x97   :  { %v41_v20 = vsel %vm17_vm0, %v36_v19, 0.0 }
  0x98   :  { %45 = vadd.xlane.f32.xlu1 %v44_v18  ;;  %42 = vadd.xlane.f32.xlu0 %v41_v20 }
 0x11d   :  { %v40_v21 = vpop.xlane.xlu1 %39 }
 0x11e   :  { %v47_v22 = vmul.f32 0.015625, %v40_v21 }
 0x120   :  { %v50_v23 = vadd.f32 1e-05, %v47_v22 }
 0x121   :  { %v46_v24 = vpop.xlane.xlu1 %45  ;;  %v43_v25 = vpop.xlane.xlu0 %42 }
 0x122   :  { %88 = vrsqrt.f32 %v50_v23  ;;  %v49_v26 = vmul.f32 0.015625, %v46_v24  ;;  %v48_v27 = vmul.f32 0.015625, %v43_v25 }
 0x124   :  { %v52_v28 = vadd.f32 1e-05, %v49_v26  ;;  %v51_v29 = vadd.f32 1e-05, %v48_v27 }
 0x126   :  { %90 = vrsqrt.f32 %v52_v28 }
 0x127   :  { %92 = vrsqrt.f32 %v51_v29 }
 0x12f   :  { %v89_v30 = vpop.eup %88 }
 0x130   :  { %v56_v32 = vmul.f32 %v89_v30, %v32_v10 }
 0x132   :  { %v66_v34 = vmul.f32 %v86_v31, %v56_v32 }
 0x133   :  { %v91_v35 = vpop.eup %90 }
 0x134   :  { %v93_v36 = vpop.eup %92  ;;  %v76_v37 = vadd.f32 %v87_v33, %v66_v34  ;;  %v58_v38 = vmul.f32 %v91_v35, %v34_v11 }
 0x135   :  { %v57_v39 = vmul.f32 %v93_v36, %v33_v16 }
 0x136   :  { %79 = vst.msk [vmem:[%s150_s3] sm:$0xff] %vm17_vm0, %v76_v37  ;;  %v68_v40 = vmul.f32 %v86_v31, %v58_v38 }
 0x137   :  { %v67_v41 = vmul.f32 %v86_v31, %v57_v39 }
 0x138   :  { %v78_v42 = vadd.f32 %v87_v33, %v68_v40 }
 0x139   :  { %v77_v43 = vadd.f32 %v87_v33, %v67_v41 }
 0x13a   :  { %81 = vst.msk [vmem:[%s150_s3 + $0x10] sm:$0xf] %vm24_vm1, %v78_v42 }
 0x13b   :  { %80 = vst.msk [vmem:[%s150_s3 + $0x8] sm:$0xff] %vm17_vm0, %v77_v43 }

// kernel: clip_forward.40
= control target key start
LH: loop header
LB: loop body
LE: loop exit
PB: predicated region body
PF: predicated region fallthrough
CT: control target
= control target key end

     0   :  { %vm54_vm0 = vcmask 523264   ;;  %v1925_v0 = vmov 0.0   ;;  %vm1926_vm1 = vmmov 0   ;;  %vm815_vm2 = vcmask 9216   ;;  %s2201_s1 = inlined_call_operand.vmem [shape: f32[10,2,64], index: 1, kind: input, shape index: {}]   ;;  %s2202_s0 = inlined_call_operand.vmem [shape: f32[10,2,64], index: 0, kind: input, shape index: {}]   ;;  %s2203_s2 = inlined_call_operand.vmem [shape: f32[10,2,64], index: 2, kind: input, shape index: {}]   ;;  %s2204_s3 = inlined_call_operand.vmem [shape: f32[10,2,64], index: 3, kind: output, shape index: {}]  }
   0x1   :  { %1783 = vmatprep.subr.mxu0 %v1925_v0  ;;  %v34_v1 = vld [vmem:[%s2201_s1] sm:$0x3]  ;;  %1785 = vmatprep.mubr.msk.f32.mxu0 %vm1926_vm1, %v1925_v0  ;;  %v35_v3 = vld [vmem:[%s2201_s1 + $0x2] sm:$0x3]  ;;  %v36_v6 = vld [vmem:[%s2201_s1 + $0x4] sm:$0x3] }
   0x2   :  { %v14_v2 = vld [vmem:[%s2202_s0] sm:$0x3]  ;;  %1784 = vmatpush3.xpose.msk.msra.mxu0 %vm54_vm0, %v34_v1  ;;  %1788 = vmatprep.subr.mxu1 %v1925_v0  ;;  %v15_v5 = vld [vmem:[%s2202_s0 + $0x2] sm:$0x3]  ;;  %v16_v8 = vld [vmem:[%s2202_s0 + $0x4] sm:$0x3] }
   0x3   :  { %v24_v4 = vmul.f32 0.125, %v14_v2  ;;  %1789 = vmatpush3.xpose.msk.msra.mxu1 %vm54_vm0, %v35_v3  ;;  %1793 = vmatprep.subr.mxu0 %v1925_v0  ;;  %v25_v7 = vmul.f32 0.125, %v15_v5  ;;  %v37_v9 = vld [vmem:[%s2201_s1 + $0x6] sm:$0x3]  ;;  %v26_v11 = vmul.f32 0.125, %v16_v8  ;;  %vm910_vm3 = vcmask 1041408  }
   0x4   :  { %1790 = vmatprep.mubr.msk.f32.mxu1 %vm1926_vm1, %v1925_v0  ;;  %1798 = vmatprep.subr.mxu1 %v1925_v0  ;;  %v17_v10 = vld [vmem:[%s2202_s0 + $0x6] sm:$0x3]  ;;  %v18_v13 = vld [vmem:[%s2202_s0 + $0x8] sm:$0x3]  ;;  %v19_v15 = vld [vmem:[%s2202_s0 + $0xa] sm:$0x3] }
   0x5   :  { %1786 = vmatmul.mubr.msk.f32.vlgmr.msra.gmra.mxu0 %vm54_vm0, %v24_v4  ;;  %v27_v12 = vmul.f32 0.125, %v17_v10  ;;  %v38_v14 = vld [vmem:[%s2201_s1 + $0x8] sm:$0x3]  ;;  %v39_v16 = vld [vmem:[%s2201_s1 + $0xa] sm:$0x3]  ;;  %v28_v17 = vmul.f32 0.125, %v18_v13 }
   0x6   :  { %1794 = vmatpush3.xpose.msk.msra.mxu0 %vm54_vm0, %v36_v6  ;;  %1791 = vmatmul.mubr.msk.f32.vlgmr.msra.gmra.mxu1 %vm54_vm0, %v25_v7  ;;  %v29_v18 = vmul.f32 0.125, %v19_v15  ;;  %v20_v19 = vld [vmem:[%s2202_s0 + $0xc] sm:$0x3]  ;;  %v21_v21 = vld [vmem:[%s2202_s0 + $0xe] sm:$0x3]  ;;  %vm906_vm4 = vcmask 15360  }
   0x7   :  { %1795 = vmatprep.mubr.msk.f32.mxu0 %vm1926_vm1, %v1925_v0  ;;  %1799 = vmatpush3.xpose.msk.msra.mxu1 %vm54_vm0, %v37_v9  ;;  %v40_v20 = vld [vmem:[%s2201_s1 + $0xc] sm:$0x3]  ;;  %v41_v22 = vld [vmem:[%s2201_s1 + $0xe] sm:$0x3]  ;;  %v30_v23 = vmul.f32 0.125, %v20_v19  ;;  %v31_v24 = vmul.f32 0.125, %v21_v21 }
   0x8   :  { %1803 = vmatprep.subr.mxu0 %v1925_v0  ;;  %1800 = vmatprep.mubr.msk.f32.mxu1 %vm1926_vm1, %v1925_v0  ;;  %v22_v25 = vld [vmem:[%s2202_s0 + $0x10] sm:$0x3]  ;;  %v23_v27 = vld [vmem:[%s2202_s0 + $0x12] sm:$0x3]  ;;  %v44_v61 = vld [vmem:[%s2203_s2] sm:$0x3] }
   0x9   :  { %1796 = vmatmul.mubr.msk.f32.vlgmr.msra.gmra.mxu0 %vm54_vm0, %v26_v11  ;;  %1808 = vmatprep.subr.mxu1 %v1925_v0  ;;  %v42_v26 = vld [vmem:[%s2201_s1 + $0x10] sm:$0x3]  ;;  %v43_v28 = vld [vmem:[%s2201_s1 + $0x12] sm:$0x3]  ;;  %v32_v29 = vmul.f32 0.125, %v22_v25  ;;  %v33_v30 = vmul.f32 0.125, %v23_v27 }
   0xa   :  { %1804 = vmatpush3.xpose.msk.msra.mxu0 %vm54_vm0, %v38_v14  ;;  %1801 = vmatmul.mubr.msk.f32.vlgmr.msra.gmra.mxu1 %vm54_vm0, %v27_v12  ;;  %v45_v62 = vld [vmem:[%s2203_s2 + $0x2] sm:$0x3]  ;;  %v46_v25 = vld [vmem:[%s2203_s2 + $0x4] sm:$0x3]  ;;  %vm1688_vm5 = vcmask 517120  }
   0xb   :  { %1805 = vmatprep.mubr.msk.f32.mxu0 %vm1926_vm1, %v1925_v0  ;;  %1809 = vmatpush3.xpose.msk.msra.mxu1 %vm54_vm0, %v39_v16 }
   0xc   :  { %1813 = vmatprep.subr.mxu0 %v1925_v0  ;;  %1810 = vmatprep.mubr.msk.f32.mxu1 %vm1926_vm1, %v1925_v0 }
   0xd   :  { %1806 = vmatmul.mubr.msk.f32.vlgmr.msra.gmra.mxu0 %vm54_vm0, %v28_v17  ;;  %1818 = vmatprep.subr.mxu1 %v1925_v0 }
   0xe   :  { %1814 = vmatpush3.xpose.msk.msra.mxu0 %vm54_vm0, %v40_v20  ;;  %1811 = vmatmul.mubr.msk.f32.vlgmr.msra.gmra.mxu1 %vm54_vm0, %v29_v18 }
   0xf   :  { %1815 = vmatprep.mubr.msk.f32.mxu0 %vm1926_vm1, %v1925_v0  ;;  %1819 = vmatpush3.xpose.msk.msra.mxu1 %vm54_vm0, %v41_v22 }
  0x10   :  { %1823 = vmatprep.subr.mxu0 %v1925_v0  ;;  %1820 = vmatprep.mubr.msk.f32.mxu1 %vm1926_vm1, %v1925_v0 }
  0x11   :  { %1816 = vmatmul.mubr.msk.f32.vlgmr.msra.gmra.mxu0 %vm54_vm0, %v30_v23  ;;  %1828 = vmatprep.subr.mxu1 %v1925_v0 }
  0x12   :  { %1824 = vmatpush3.xpose.msk.msra.mxu0 %vm54_vm0, %v42_v26  ;;  %1821 = vmatmul.mubr.msk.f32.vlgmr.msra.gmra.mxu1 %vm54_vm0, %v31_v24 }
  0x13   :  { %1825 = vmatprep.mubr.msk.f32.mxu0 %vm1926_vm1, %v1925_v0  ;;  %1829 = vmatpush3.xpose.msk.msra.mxu1 %vm54_vm0, %v43_v28 }
  0x14   :  { %1830 = vmatprep.mubr.msk.f32.mxu1 %vm1926_vm1, %v1925_v0  ;;  %1833 = vmatprep.subr.mxu0 %v1925_v0 }
  0x15   :  { %1826 = vmatmul.mubr.msk.f32.vlgmr.msra.gmra.mxu0 %vm54_vm0, %v32_v29  ;;  %1838 = vmatprep.subr.mxu1 %v1925_v0 }
  0x16   :  { %1831 = vmatmul.mubr.msk.f32.vlgmr.msra.gmra.mxu1 %vm54_vm0, %v33_v30  ;;  %1835 = vmatprep.mubr.msk.f32.mxu0 %vm1926_vm1, %v1925_v0 }
  0x17   :  { %1840 = vmatprep.mubr.msk.f32.mxu1 %vm1926_vm1, %v1925_v0  ;;  %1834 = vmatpush3.msk.msra.mxu0 %vm910_vm3, %v44_v61 }
  0x18   :  { %1843 = vmatprep.subr.mxu0 %v1925_v0  ;;  %1839 = vmatpush3.msk.msra.mxu1 %vm910_vm3, %v45_v62 }
  0x19   :  { %1848 = vmatprep.subr.mxu1 %v1925_v0 }
  0xc5   :  { %v127_v31 = vpop.f32.mrf.mxu0 }
  0xc6   :  { %v816_v32 = vsel %vm815_vm2, %v127_v31, -inf  ;;  %v203_v33 = vpop.f32.mrf.mxu1 }
  0xc7   :  { %817 = vmax.xlane.f32.xlu0 %v816_v32  ;;  %v1787_v34 = vpop.f32.mrf.mxu0  ;;  %v819_v36 = vsel %vm815_vm2, %v203_v33, -inf  ;;  %v47_v32 = vld [vmem:[%s2203_s2 + $0x6] sm:$0x3] }
  0xc8   :  { %v1792_v35 = vpop.f32.mrf.mxu1 }
  0xc9   :  { %v279_v37 = vpop.f32.mrf.mxu0 }
  0xca   :  { %v822_v38 = vsel %vm815_vm2, %v279_v37, -inf  ;;  %v355_v39 = vpop.f32.mrf.mxu1 }
  0xcb   :  { %820 = vmax.xlane.f32.xlu0 %v819_v36  ;;  %823 = vmax.xlane.f32.xlu1 %v822_v38  ;;  %v1797_v40 = vpop.f32.mrf.mxu0  ;;  %v825_v42 = vsel %vm815_vm2, %v355_v39, -inf }
  0xcc   :  { %v1802_v41 = vpop.f32.mrf.mxu1  ;;  %v49_v40 = vld [vmem:[%s2203_s2 + $0xa] sm:$0x3] }
  0xcd   :  { %v431_v43 = vpop.f32.mrf.mxu0 }
  0xce   :  { %v828_v44 = vsel %vm815_vm2, %v431_v43, -inf  ;;  %v507_v45 = vpop.f32.mrf.mxu1 }
  0xcf   :  { %826 = vmax.xlane.f32.xlu1 %v825_v42  ;;  %829 = vmax.xlane.f32.xlu0 %v828_v44  ;;  %v1807_v46 = vpop.f32.mrf.mxu0  ;;  %v831_v48 = vsel %vm815_vm2, %v507_v45, -inf  ;;  %v50_v44 = vld [vmem:[%s2203_s2 + $0xc] sm:$0x3] }
  0xd0   :  { %v1812_v47 = vpop.f32.mrf.mxu1 }
  0xd1   :  { %v583_v49 = vpop.f32.mrf.mxu0  ;;  %v51_v47 = vld [vmem:[%s2203_s2 + $0xe] sm:$0x3] }
  0xd2   :  { %v834_v50 = vsel %vm815_vm2, %v583_v49, -inf  ;;  %v659_v51 = vpop.f32.mrf.mxu1 }
  0xd3   :  { %832 = vmax.xlane.f32.xlu1 %v831_v48  ;;  %835 = vmax.xlane.f32.xlu0 %v834_v50  ;;  %v1817_v52 = vpop.f32.mrf.mxu0  ;;  %v837_v54 = vsel %vm815_vm2, %v659_v51, -inf  ;;  %v52_v50 = vld [vmem:[%s2203_s2 + $0x10] sm:$0x3] }
  0xd4   :  { %v1822_v53 = vpop.f32.mrf.mxu1 }
  0xd5   :  { %v735_v55 = vpop.f32.mrf.mxu0  ;;  %v53_v53 = vld [vmem:[%s2203_s2 + $0x12] sm:$0x3] }
  0xd6   :  { %v840_v56 = vsel %vm815_vm2, %v735_v55, -inf  ;;  %v2072_v57 = vpop.f32.mrf.mxu1 }
  0xd7   :  { %838 = vmax.xlane.f32.xlu1 %v837_v54  ;;  %841 = vmax.xlane.f32.xlu0 %v840_v56  ;;  %v1827_v58 = vpop.f32.mrf.mxu0  ;;  %v843_v60 = vsel %vm815_vm2, %v2072_v57, -inf }
  0xd8   :  { %v1832_v59 = vpop.f32.mrf.mxu1 }
  0xdb   :  { %844 = vmax.xlane.f32.xlu1 %v843_v60 }
 0x150   :  { %v818_v63 = vpop.xlane.xlu0 %817 }
 0x151   :  { %v846_v1 = vsub.f32 %v127_v31, %v818_v63 }
 0x153   :  { %v856_v2 = vmul.f32 1.442695, %v846_v1 }
 0x154   :  { %v821_v3 = vpop.xlane.xlu0 %820  ;;  %v824_v4 = vpop.xlane.xlu1 %823 }
 0x155   :  { %1885 = vpow2.f32 %v856_v2  ;;  %v847_v5 = vsub.f32 %v203_v33, %v821_v3  ;;  %v848_v6 = vsub.f32 %v279_v37, %v824_v4  ;;  %v48_v37 = vld [vmem:[%s2203_s2 + $0x8] sm:$0x3] }
 0x157   :  { %v858_v7 = vmul.f32 1.442695, %v847_v5  ;;  %v860_v8 = vmul.f32 1.442695, %v848_v6 }
 0x158   :  { %v827_v9 = vpop.xlane.xlu1 %826  ;;  %v830_v10 = vpop.xlane.xlu0 %829 }
 0x159   :  { %1887 = vpow2.f32 %v858_v7  ;;  %v849_v11 = vsub.f32 %v355_v39, %v827_v9  ;;  %v850_v12 = vsub.f32 %v431_v43, %v830_v10 }
 0x15a   :  { %1889 = vpow2.f32 %v860_v8 }
 0x15b   :  { %v862_v13 = vmul.f32 1.442695, %v849_v11  ;;  %v864_v14 = vmul.f32 1.442695, %v850_v12 }
 0x15c   :  { %v833_v15 = vpop.xlane.xlu1 %832  ;;  %v836_v16 = vpop.xlane.xlu0 %835 }
 0x15d   :  { %1891 = vpow2.f32 %v862_v13  ;;  %v851_v17 = vsub.f32 %v507_v45, %v833_v15  ;;  %v852_v18 = vsub.f32 %v583_v49, %v836_v16 }
 0x15e   :  { %1893 = vpow2.f32 %v864_v14 }
 0x15f   :  { %v866_v19 = vmul.f32 1.442695, %v851_v17  ;;  %v868_v20 = vmul.f32 1.442695, %v852_v18 }
 0x160   :  { %v839_v21 = vpop.xlane.xlu1 %838  ;;  %v842_v22 = vpop.xlane.xlu0 %841 }
 0x161   :  { %1895 = vpow2.f32 %v866_v19  ;;  %v853_v23 = vsub.f32 %v659_v51, %v839_v21  ;;  %v854_v24 = vsub.f32 %v735_v55, %v842_v22 }
 0x162   :  { %v1886_v26 = vpop.eup %1885  ;;  %1897 = vpow2.f32 %v868_v20 }
 0x163   :  { %v870_v27 = vmul.f32 1.442695, %v853_v23  ;;  %v872_v28 = vmul.f32 1.442695, %v854_v24  ;;  %1836 = vmatmul.mubr.msk.f32.vlgmr.msra.gmra.mxu0 %vm906_vm4, %v1886_v26  ;;  %v876_v29 = vsel %vm815_vm2, %v1886_v26, 0.0 }
 0x164   :  { %v845_v30 = vpop.xlane.xlu1 %844  ;;  %877 = vadd.xlane.f32.xlu0 %v876_v29  ;;  %1844 = vmatpush3.msk.msra.mxu0 %vm910_vm3, %v46_v25 }
 0x165   :  { %1899 = vpow2.f32 %v870_v27  ;;  %v855_v31 = vsub.f32 %v2072_v57, %v845_v30  ;;  %1845 = vmatprep.mubr.msk.f32.mxu0 %vm1926_vm1, %v1925_v0  ;;  %1853 = vmatprep.subr.mxu0 %v1925_v0 }
 0x166   :  { %v1888_v33 = vpop.eup %1887  ;;  %1901 = vpow2.f32 %v872_v28 }
 0x167   :  { %v1890_v34 = vpop.eup %1889  ;;  %v874_v35 = vmul.f32 1.442695, %v855_v31  ;;  %1841 = vmatmul.mubr.msk.f32.vlgmr.msra.gmra.mxu1 %vm906_vm4, %v1888_v33  ;;  %v879_v36 = vsel %vm815_vm2, %v1888_v33, 0.0 }
 0x168   :  { %1846 = vmatmul.mubr.msk.f32.vlgmr.msra.gmra.mxu0 %vm906_vm4, %v1890_v34  ;;  %1849 = vmatpush3.msk.msra.mxu1 %vm910_vm3, %v47_v32  ;;  %v882_v38 = vsel %vm815_vm2, %v1890_v34, 0.0 }
 0x169   :  { %1903 = vpow2.f32 %v874_v35  ;;  %880 = vadd.xlane.f32.xlu1 %v879_v36  ;;  %883 = vadd.xlane.f32.xlu0 %v882_v38 }
 0x16a   :  { %v1892_v39 = vpop.eup %1891  ;;  %1850 = vmatprep.mubr.msk.f32.mxu1 %vm1926_vm1, %v1925_v0  ;;  %1854 = vmatpush3.msk.msra.mxu0 %vm910_vm3, %v48_v37 }
 0x16b   :  { %v1894_v41 = vpop.eup %1893  ;;  %1855 = vmatprep.mubr.msk.f32.mxu0 %vm1926_vm1, %v1925_v0  ;;  %1851 = vmatmul.mubr.msk.f32.vlgmr.msra.gmra.mxu1 %vm906_vm4, %v1892_v39  ;;  %v885_v42 = vsel %vm815_vm2, %v1892_v39, 0.0 }
 0x16c   :  { %1856 = vmatmul.mubr.msk.f32.vlgmr.msra.gmra.mxu0 %vm906_vm4, %v1894_v41  ;;  %1858 = vmatprep.subr.mxu1 %v1925_v0  ;;  %v888_v43 = vsel %vm815_vm2, %v1894_v41, 0.0 }
 0x16d   :  { %1859 = vmatpush3.msk.msra.mxu1 %vm910_vm3, %v49_v40  ;;  %886 = vadd.xlane.f32.xlu1 %v885_v42 }
 0x16e   :  { %v1896_v45 = vpop.eup %1895  ;;  %889 = vadd.xlane.f32.xlu0 %v888_v43  ;;  %1863 = vmatprep.subr.mxu0 %v1925_v0 }
 0x16f   :  { %v1898_v46 = vpop.eup %1897  ;;  %1860 = vmatprep.mubr.msk.f32.mxu1 %vm1926_vm1, %v1925_v0  ;;  %1864 = vmatpush3.msk.msra.mxu0 %vm910_vm3, %v50_v44  ;;  %v891_v48 = vsel %vm815_vm2, %v1896_v45, 0.0 }
 0x170   :  { %1865 = vmatprep.mubr.msk.f32.mxu0 %vm1926_vm1, %v1925_v0  ;;  %1861 = vmatmul.mubr.msk.f32.vlgmr.msra.gmra.mxu1 %vm906_vm4, %v1896_v45  ;;  %v894_v49 = vsel %vm815_vm2, %v1898_v46, 0.0 }
 0x171   :  { %1866 = vmatmul.mubr.msk.f32.vlgmr.msra.gmra.mxu0 %vm906_vm4, %v1898_v46  ;;  %1868 = vmatprep.subr.mxu1 %v1925_v0 }
 0x172   :  { %v1900_v51 = vpop.eup %1899  ;;  %1869 = vmatpush3.msk.msra.mxu1 %vm910_vm3, %v51_v47  ;;  %892 = vadd.xlane.f32.xlu1 %v891_v48 }
 0x173   :  { %v1902_v52 = vpop.eup %1901  ;;  %895 = vadd.xlane.f32.xlu0 %v894_v49  ;;  %1873 = vmatprep.subr.mxu0 %v1925_v0  ;;  %v897_v54 = vsel %vm815_vm2, %v1900_v51, 0.0 }
 0x174   :  { %1870 = vmatprep.mubr.msk.f32.mxu1 %vm1926_vm1, %v1925_v0  ;;  %1874 = vmatpush3.msk.msra.mxu0 %vm910_vm3, %v52_v50  ;;  %v900_v55 = vsel %vm815_vm2, %v1902_v52, 0.0 }
 0x175   :  { %1875 = vmatprep.mubr.msk.f32.mxu0 %vm1926_vm1, %v1925_v0  ;;  %1871 = vmatmul.mubr.msk.f32.vlgmr.msra.gmra.mxu1 %vm906_vm4, %v1900_v51 }
 0x176   :  { %v1904_v56 = vpop.eup %1903  ;;  %1876 = vmatmul.mubr.msk.f32.vlgmr.msra.gmra.mxu0 %vm906_vm4, %v1902_v52  ;;  %1878 = vmatprep.subr.mxu1 %v1925_v0 }
 0x177   :  { %1879 = vmatpush3.msk.msra.mxu1 %vm910_vm3, %v53_v53  ;;  %898 = vadd.xlane.f32.xlu1 %v897_v54  ;;  %v903_v57 = vsel %vm815_vm2, %v1904_v56, 0.0 }
 0x178   :  { %901 = vadd.xlane.f32.xlu0 %v900_v55  ;;  %1880 = vmatprep.mubr.msk.f32.mxu1 %vm1926_vm1, %v1925_v0 }
 0x179   :  { %1881 = vmatmul.mubr.msk.f32.vlgmr.msra.gmra.mxu1 %vm906_vm4, %v1904_v56 }
 0x17b   :  { %904 = vadd.xlane.f32.xlu1 %v903_v57 }
 0x1ed   :  { %v878_v58 = vpop.xlane.xlu0 %877 }
 0x1ee   :  { %1905 = vrcp.f32 %v878_v58 }
 0x1f2   :  { %v881_v59 = vpop.xlane.xlu1 %880  ;;  %v884_v60 = vpop.xlane.xlu0 %883 }
 0x1f3   :  { %1907 = vrcp.f32 %v881_v59 }
 0x1f4   :  { %1909 = vrcp.f32 %v884_v60 }
 0x1f6   :  { %v887_v61 = vpop.xlane.xlu1 %886 }
 0x1f7   :  { %v890_v62 = vpop.xlane.xlu0 %889  ;;  %1911 = vrcp.f32 %v887_v61 }
 0x1f8   :  { %1913 = vrcp.f32 %v890_v62 }
 0x1fb   :  { %v893_v63 = vpop.xlane.xlu1 %892  ;;  %v1906_v2 = vpop.eup %1905 }
 0x1fc   :  { %v896_v1 = vpop.xlane.xlu0 %895  ;;  %1915 = vrcp.f32 %v893_v63 }
 0x1fd   :  { %1917 = vrcp.f32 %v896_v1 }
 0x200   :  { %v899_v0 = vpop.xlane.xlu1 %898  ;;  %v1908_v7 = vpop.eup %1907 }
 0x201   :  { %v902_v6 = vpop.xlane.xlu0 %901  ;;  %v1910_v9 = vpop.eup %1909  ;;  %1919 = vrcp.f32 %v899_v0 }
 0x202   :  { %1921 = vrcp.f32 %v902_v6 }
 0x204   :  { %v905_v12 = vpop.xlane.xlu1 %904  ;;  %v1912_v16 = vpop.eup %1911 }
 0x205   :  { %v1914_v18 = vpop.eup %1913  ;;  %1923 = vrcp.f32 %v905_v12 }
 0x209   :  { %v1916_v24 = vpop.eup %1915 }
 0x20a   :  { %v1918_v26 = vpop.eup %1917 }
 0x20e   :  { %v1920_v32 = vpop.eup %1919 }
 0x20f   :  { %v1922_v34 = vpop.eup %1921 }
 0x212   :  { %v1924_v40 = vpop.eup %1923 }
 0x223   :  { %v980_v3 = vpop.f32.mrf.mxu0 }
 0x224   :  { %v1678_v4 = vmul.f32 %v1906_v2, %v980_v3 }
 0x225   :  { %v1837_v5 = vpop.f32.mrf.mxu0 }
 0x226   :  { %1689 = vst.msk [vmem:[%s2204_s3] sm:$0x3] %vm1688_vm5, %v1678_v4 }
 0x227   :  { %v1056_v8 = vpop.f32.mrf.mxu1 }
 0x228   :  { %v1679_v10 = vmul.f32 %v1908_v7, %v1056_v8  ;;  %v1132_v11 = vpop.f32.mrf.mxu0 }
 0x229   :  { %v1680_v13 = vmul.f32 %v1910_v9, %v1132_v11  ;;  %v1842_v14 = vpop.f32.mrf.mxu1 }
 0x22a   :  { %1690 = vst.msk [vmem:[%s2204_s3 + $0x2] sm:$0x3] %vm1688_vm5, %v1679_v10  ;;  %v1847_v15 = vpop.f32.mrf.mxu0 }
 0x22b   :  { %1691 = vst.msk [vmem:[%s2204_s3 + $0x4] sm:$0x3] %vm1688_vm5, %v1680_v13  ;;  %v1208_v17 = vpop.f32.mrf.mxu1 }
 0x22c   :  { %v1681_v19 = vmul.f32 %v1912_v16, %v1208_v17  ;;  %v1284_v20 = vpop.f32.mrf.mxu0 }
 0x22d   :  { %v1682_v21 = vmul.f32 %v1914_v18, %v1284_v20  ;;  %v1852_v22 = vpop.f32.mrf.mxu1 }
 0x22e   :  { %1692 = vst.msk [vmem:[%s2204_s3 + $0x6] sm:$0x3] %vm1688_vm5, %v1681_v19  ;;  %v1857_v23 = vpop.f32.mrf.mxu0 }
 0x22f   :  { %1693 = vst.msk [vmem:[%s2204_s3 + $0x8] sm:$0x3] %vm1688_vm5, %v1682_v21 }
 0x230   :  { %v1360_v25 = vpop.f32.mrf.mxu1 }
 0x231   :  { %v1683_v27 = vmul.f32 %v1916_v24, %v1360_v25  ;;  %v1436_v28 = vpop.f32.mrf.mxu0 }
 0x232   :  { %v1684_v29 = vmul.f32 %v1918_v26, %v1436_v28  ;;  %v1862_v30 = vpop.f32.mrf.mxu1 }
 0x233   :  { %1694 = vst.msk [vmem:[%s2204_s3 + $0xa] sm:$0x3] %vm1688_vm5, %v1683_v27  ;;  %v1867_v31 = vpop.f32.mrf.mxu0 }
 0x234   :  { %1695 = vst.msk [vmem:[%s2204_s3 + $0xc] sm:$0x3] %vm1688_vm5, %v1684_v29 }
 0x235   :  { %v1512_v33 = vpop.f32.mrf.mxu1 }
 0x236   :  { %v1685_v35 = vmul.f32 %v1920_v32, %v1512_v33  ;;  %v1588_v36 = vpop.f32.mrf.mxu0 }
 0x237   :  { %v1686_v37 = vmul.f32 %v1922_v34, %v1588_v36  ;;  %v1872_v38 = vpop.f32.mrf.mxu1 }
 0x238   :  { %1696 = vst.msk [vmem:[%s2204_s3 + $0xe] sm:$0x3] %vm1688_vm5, %v1685_v35  ;;  %v1877_v39 = vpop.f32.mrf.mxu0 }
 0x239   :  { %1697 = vst.msk [vmem:[%s2204_s3 + $0x10] sm:$0x3] %vm1688_vm5, %v1686_v37  ;;  %v1664_v41 = vpop.f32.mrf.mxu1 }
 0x23a   :  { %v1687_v42 = vmul.f32 %v1924_v40, %v1664_v41 }
 0x23b   :  { %v1882_v43 = vpop.f32.mrf.mxu1 }
 0x23c   :  { %1698 = vst.msk [vmem:[%s2204_s3 + $0x12] sm:$0x3] %vm1688_vm5, %v1687_v42 }

// kernel: clip_forward.41
= control target key start
LH: loop header
LB: loop body
LE: loop exit
PB: predicated region body
PF: predicated region fallthrough
CT: control target
= control target key end

     0   :  { %v188_v0 = vmov 0.0   ;;  %vm32_vm0 = vcmask 523264   ;;  %vm189_vm1 = vmmov 0   ;;  %vm124_vm2 = vcmask 519168   ;;  %s260_s1 = inlined_call_operand.vmem [shape: f32[64,64], index: 1, kind: input, shape index: {}]   ;;  %s261_s0 = inlined_call_operand.vmem [shape: f32[20,64], index: 0, kind: input, shape index: {}]   ;;  %s262_s2 = inlined_call_operand.vmem [shape: f32[1,64], index: 2, kind: input, shape index: {}]   ;;  %s263_s3 = inlined_call_operand.vmem [shape: f32[20,64], index: 3, kind: output, shape index: {}]  }
   0x1   :  { %170 = vmatprep.subr.mxu1 %v188_v0  ;;  %v24_v1 = vld [vmem:[%s260_s1 + $0x38] sm:$0xff]  ;;  %145 = vmatprep.subr.mxu0 %v188_v0  ;;  %v23_v2 = vld [vmem:[%s260_s1 + $0x30] sm:$0xff]  ;;  %v22_v3 = vld [vmem:[%s260_s1 + $0x28] sm:$0xff] }
   0x2   :  { %178 = vmatpush3.msra.mxu1 %v24_v1  ;;  %146 = vmatpush3.msra.mxu0 %v24_v1  ;;  %v21_v4 = vld [vmem:[%s260_s1 + $0x20] sm:$0xff]  ;;  %v20_v5 = vld [vmem:[%s260_s1 + $0x18] sm:$0xff]  ;;  %v19_v6 = vld [vmem:[%s260_s1 + $0x10] sm:$0xff] }
   0x3   :  { %171 = vmatprep.subr.mxu1 %v188_v0  ;;  %147 = vmatprep.subr.mxu0 %v188_v0  ;;  %v18_v7 = vld [vmem:[%s260_s1 + $0x8] sm:$0xff]  ;;  %v17_v8 = vld [vmem:[%s260_s1] sm:$0xff]  ;;  %v16_v11 = vld [vmem:[%s261_s0 + $0x10] sm:$0xf] }
   0x4   :  { %179 = vmatpush3.msra.mxu1 %v23_v2  ;;  %148 = vmatpush3.msra.mxu0 %v23_v2  ;;  %v15_v9 = vld [vmem:[%s261_s0 + $0x8] sm:$0xff]  ;;  %v14_v10 = vld [vmem:[%s261_s0] sm:$0xff] }
   0x5   :  { %172 = vmatprep.subr.mxu1 %v188_v0  ;;  %149 = vmatprep.subr.mxu0 %v188_v0  ;;  %v130_v12 = vld [vmem:[%s262_s2] ss:$0 sm:$0xff] }
   0x6   :  { %180 = vmatpush3.msra.mxu1 %v22_v3  ;;  %150 = vmatpush3.msra.mxu0 %v22_v3 }
   0x7   :  { %173 = vmatprep.subr.mxu1 %v188_v0  ;;  %151 = vmatprep.subr.mxu0 %v188_v0 }
   0x8   :  { %181 = vmatpush3.msra.mxu1 %v21_v4  ;;  %152 = vmatpush3.msra.mxu0 %v21_v4 }
   0x9   :  { %174 = vmatprep.subr.mxu1 %v188_v0  ;;  %153 = vmatprep.subr.mxu0 %v188_v0 }
   0xa   :  { %182 = vmatpush3.msra.mxu1 %v20_v5  ;;  %154 = vmatpush3.msra.mxu0 %v20_v5 }
   0xb   :  { %175 = vmatprep.subr.mxu1 %v188_v0  ;;  %155 = vmatprep.subr.mxu0 %v188_v0 }
   0xc   :  { %183 = vmatpush3.msra.mxu1 %v19_v6  ;;  %156 = vmatpush3.msra.mxu0 %v19_v6 }
   0xd   :  { %176 = vmatprep.subr.mxu1 %v188_v0  ;;  %157 = vmatprep.subr.mxu0 %v188_v0 }
   0xe   :  { %184 = vmatpush3.msra.mxu1 %v18_v7  ;;  %158 = vmatpush3.msra.mxu0 %v18_v7 }
   0xf   :  { %177 = vmatprep.subr.mxu1 %v188_v0  ;;  %164 = vmatprep.mubr.msk.f32.mxu1 %vm189_vm1, %v188_v0 }
  0x10   :  { %185 = vmatpush3.msra.mxu1 %v17_v8  ;;  %159 = vmatprep.subr.mxu0 %v188_v0 }
  0x11   :  { %165 = vmatmul.mubr.msk.f32.vlgmr.msra.gmra.mxu1 %vm32_vm0, %v15_v9  ;;  %160 = vmatpush3.msra.mxu0 %v17_v8 }
  0x12   :  { %161 = vmatprep.mubr.msk.f32.mxu0 %vm189_vm1, %v188_v0  ;;  %167 = vmatprep.mubr.msk.f32.mxu1 %vm189_vm1, %v188_v0 }
  0x13   :  { %162 = vmatmul.mubr.msk.f32.vlgmr.msra.gmra.mxu0 %vm32_vm0, %v14_v10 }
  0x15   :  { %168 = vmatmul.mubr.msk.f32.gmra.mxu1 %vm32_vm0, %v16_v11 }
  0xd1   :  { %v113_v13 = vpop.f32.mrf.mxu1 }
  0xd2   :  { %v114_v14 = vadd.f32 %v130_v12, %v113_v13 }
  0xd3   :  { %v108_v15 = vpop.f32.mrf.mxu0  ;;  %v166_v16 = vpop.f32.mrf.mxu1 }
  0xd4   :  { %123 = vst.msk [vmem:[%s263_s3 + $0x8] sm:$0xff] %vm32_vm0, %v114_v14  ;;  %v109_v17 = vadd.f32 %v130_v12, %v108_v15 }
  0xd5   :  { %v163_v18 = vpop.f32.mrf.mxu0  ;;  %v118_v19 = vpop.f32.mrf.mxu1 }
  0xd6   :  { %122 = vst.msk [vmem:[%s263_s3] sm:$0xff] %vm32_vm0, %v109_v17  ;;  %v119_v20 = vadd.f32 %v130_v12, %v118_v19 }
  0xd7   :  { %v169_v21 = vpop.f32.mrf.mxu1 }
  0xd8   :  { %125 = vst.msk [vmem:[%s263_s3 + $0x10] sm:$0xf] %vm124_vm2, %v119_v20 }

// kernel: clip_forward.45
= control target key start
LH: loop header
LB: loop body
LE: loop exit
PB: predicated region body
PF: predicated region fallthrough
CT: control target
= control target key end

     0   :  { %v197_v0 = vmov 0.0   ;;  %vm35_vm0 = vcmask 523264   ;;  %vm198_vm1 = vmmov 0   ;;  %vm133_vm2 = vcmask 519168   ;;  %s283_s1 = inlined_call_operand.vmem [shape: f32[64,64], index: 1, kind: input, shape index: {}]   ;;  %s284_s0 = inlined_call_operand.vmem [shape: f32[20,64], index: 0, kind: input, shape index: {}]   ;;  %s285_s2 = inlined_call_operand.vmem [shape: f32[1,64], index: 2, kind: input, shape index: {}]   ;;  %s286_s3 = inlined_call_operand.vmem [shape: f32[20,64], index: 3, kind: input, shape index: {}]   ;;  %s287_s4 = inlined_call_operand.vmem [shape: f32[20,64], index: 4, kind: output, shape index: {}]  }
   0x1   :  { %179 = vmatprep.subr.mxu1 %v197_v0  ;;  %v27_v1 = vld [vmem:[%s283_s1 + $0x38] sm:$0xff]  ;;  %154 = vmatprep.subr.mxu0 %v197_v0  ;;  %v26_v2 = vld [vmem:[%s283_s1 + $0x30] sm:$0xff]  ;;  %v25_v3 = vld [vmem:[%s283_s1 + $0x28] sm:$0xff] }
   0x2   :  { %187 = vmatpush3.msra.mxu1 %v27_v1  ;;  %155 = vmatpush3.msra.mxu0 %v27_v1  ;;  %v24_v4 = vld [vmem:[%s283_s1 + $0x20] sm:$0xff]  ;;  %v23_v5 = vld [vmem:[%s283_s1 + $0x18] sm:$0xff]  ;;  %v22_v6 = vld [vmem:[%s283_s1 + $0x10] sm:$0xff] }
   0x3   :  { %180 = vmatprep.subr.mxu1 %v197_v0  ;;  %156 = vmatprep.subr.mxu0 %v197_v0  ;;  %v21_v7 = vld [vmem:[%s283_s1 + $0x8] sm:$0xff]  ;;  %v20_v8 = vld [vmem:[%s283_s1] sm:$0xff]  ;;  %v19_v11 = vld [vmem:[%s284_s0 + $0x10] sm:$0xf] }
   0x4   :  { %188 = vmatpush3.msra.mxu1 %v26_v2  ;;  %157 = vmatpush3.msra.mxu0 %v26_v2  ;;  %v18_v9 = vld [vmem:[%s284_s0 + $0x8] sm:$0xff]  ;;  %v17_v10 = vld [vmem:[%s284_s0] sm:$0xff]  ;;  %v127_v23 = vld [vmem:[%s286_s3 + $0x10] sm:$0xf] }
   0x5   :  { %181 = vmatprep.subr.mxu1 %v197_v0  ;;  %158 = vmatprep.subr.mxu0 %v197_v0  ;;  %v139_v12 = vld [vmem:[%s285_s2] ss:$0 sm:$0xff]  ;;  %v126_v14 = vld [vmem:[%s286_s3 + $0x8] sm:$0xff] }
   0x6   :  { %189 = vmatpush3.msra.mxu1 %v25_v3  ;;  %159 = vmatpush3.msra.mxu0 %v25_v3  ;;  %v125_v17 = vld [vmem:[%s286_s3] sm:$0xff] }
   0x7   :  { %182 = vmatprep.subr.mxu1 %v197_v0  ;;  %160 = vmatprep.subr.mxu0 %v197_v0 }
   0x8   :  { %190 = vmatpush3.msra.mxu1 %v24_v4  ;;  %161 = vmatpush3.msra.mxu0 %v24_v4 }
   0x9   :  { %183 = vmatprep.subr.mxu1 %v197_v0  ;;  %162 = vmatprep.subr.mxu0 %v197_v0 }
   0xa   :  { %191 = vmatpush3.msra.mxu1 %v23_v5  ;;  %163 = vmatpush3.msra.mxu0 %v23_v5 }
   0xb   :  { %184 = vmatprep.subr.mxu1 %v197_v0  ;;  %164 = vmatprep.subr.mxu0 %v197_v0 }
   0xc   :  { %192 = vmatpush3.msra.mxu1 %v22_v6  ;;  %165 = vmatpush3.msra.mxu0 %v22_v6 }
   0xd   :  { %185 = vmatprep.subr.mxu1 %v197_v0  ;;  %166 = vmatprep.subr.mxu0 %v197_v0 }
   0xe   :  { %193 = vmatpush3.msra.mxu1 %v21_v7  ;;  %167 = vmatpush3.msra.mxu0 %v21_v7 }
   0xf   :  { %186 = vmatprep.subr.mxu1 %v197_v0  ;;  %173 = vmatprep.mubr.msk.f32.mxu1 %vm198_vm1, %v197_v0 }
  0x10   :  { %194 = vmatpush3.msra.mxu1 %v20_v8  ;;  %168 = vmatprep.subr.mxu0 %v197_v0 }
  0x11   :  { %174 = vmatmul.mubr.msk.f32.vlgmr.msra.gmra.mxu1 %vm35_vm0, %v18_v9  ;;  %169 = vmatpush3.msra.mxu0 %v20_v8 }
  0x12   :  { %170 = vmatprep.mubr.msk.f32.mxu0 %vm198_vm1, %v197_v0  ;;  %176 = vmatprep.mubr.msk.f32.mxu1 %vm198_vm1, %v197_v0 }
  0x13   :  { %171 = vmatmul.mubr.msk.f32.vlgmr.msra.gmra.mxu0 %vm35_vm0, %v17_v10 }
  0x15   :  { %177 = vmatmul.mubr.msk.f32.gmra.mxu1 %vm35_vm0, %v19_v11 }
  0xd1   :  { %v116_v13 = vpop.f32.mrf.mxu1 }
  0xd2   :  { %v117_v15 = vadd.f32 %v139_v12, %v116_v13 }
  0xd3   :  { %v111_v16 = vpop.f32.mrf.mxu0  ;;  %v175_v18 = vpop.f32.mrf.mxu1 }
  0xd4   :  { %v129_v19 = vadd.f32 %v126_v14, %v117_v15  ;;  %v112_v20 = vadd.f32 %v139_v12, %v111_v16 }
  0xd5   :  { %v172_v21 = vpop.f32.mrf.mxu0  ;;  %v121_v22 = vpop.f32.mrf.mxu1 }
  0xd6   :  { %132 = vst.msk [vmem:[%s287_s4 + $0x8] sm:$0xff] %vm35_vm0, %v129_v19  ;;  %v128_v24 = vadd.f32 %v125_v17, %v112_v20  ;;  %v122_v25 = vadd.f32 %v139_v12, %v121_v22 }
  0xd7   :  { %v178_v26 = vpop.f32.mrf.mxu1 }
  0xd8   :  { %131 = vst.msk [vmem:[%s287_s4] sm:$0xff] %vm35_vm0, %v128_v24  ;;  %v130_v27 = vadd.f32 %v127_v23, %v122_v25 }
  0xda   :  { %134 = vst.msk [vmem:[%s287_s4 + $0x10] sm:$0xf] %vm133_vm2, %v130_v27 }

// kernel: clip_forward.42
= control target key start
LH: loop header
LB: loop body
LE: loop exit
PB: predicated region body
PF: predicated region fallthrough
CT: control target
= control target key end

     0   :  { %v320_v0 = vmov 0.0   ;;  %vm321_vm0 = vmmov 0   ;;  %vm38_vm1 = vcmask 523264   ;;  %vm152_vm2 = vcmask 130048   ;;  %s433_s1 = inlined_call_operand.vmem [shape: f32[64,16], index: 1, kind: input, shape index: {}]   ;;  %s434_s0 = inlined_call_operand.vmem [shape: f32[20,64], index: 0, kind: input, shape index: {}]   ;;  %s435_s3 = inlined_call_operand.vmem [shape: f32[16,64], index: 3, kind: input, shape index: {}]   ;;  %s436_s2 = inlined_call_operand.vmem [shape: f32[1,16], index: 2, kind: input, shape index: {}]   ;;  %s437_s4 = inlined_call_operand.vmem [shape: f32[1,64], index: 4, kind: input, shape index: {}]   ;;  %s438_s5 = inlined_call_operand.vmem [shape: f32[20,64], index: 5, kind: output, shape index: {}]  }
   0x1   :  { %274 = vmatprep.subr.mxu0 %v320_v0  ;;  %v30_v1 = vld [vmem:[%s433_s1 + $0x38] sm:$0xff]  ;;  %v29_v2 = vld [vmem:[%s433_s1 + $0x30] sm:$0xff]  ;;  %290 = vmatprep.mubr.msk.f32.mxu0 %vm321_vm0, %v320_v0  ;;  %v28_v3 = vld [vmem:[%s433_s1 + $0x28] sm:$0xff]  ;;  %vm244_vm3 = vcmask 519168  }
   0x2   :  { %275 = vmatpush3.msra.mxu0 %v30_v1  ;;  %299 = vmatprep.subr.mxu1 %v320_v0  ;;  %v27_v4 = vld [vmem:[%s433_s1 + $0x20] sm:$0xff]  ;;  %v26_v5 = vld [vmem:[%s433_s1 + $0x18] sm:$0xff]  ;;  %v25_v6 = vld [vmem:[%s433_s1 + $0x10] sm:$0xff] }
   0x3   :  { %276 = vmatprep.subr.mxu0 %v320_v0  ;;  %303 = vmatprep.mubr.msk.f32.mxu1 %vm321_vm0, %v320_v0  ;;  %v24_v7 = vld [vmem:[%s433_s1 + $0x8] sm:$0xff]  ;;  %v23_v8 = vld [vmem:[%s433_s1] sm:$0xff]  ;;  %v22_v11 = vld [vmem:[%s434_s0 + $0x10] sm:$0xf] }
   0x4   :  { %277 = vmatpush3.msra.mxu0 %v29_v2  ;;  %v20_v9 = vld [vmem:[%s434_s0] sm:$0xff]  ;;  %v21_v10 = vld [vmem:[%s434_s0 + $0x8] sm:$0xff] }
   0x5   :  { %278 = vmatprep.subr.mxu0 %v320_v0  ;;  %v144_v12 = vld [vmem:[%s435_s3 + $0x8] sm:$0xff]  ;;  %v143_v13 = vld [vmem:[%s435_s3] sm:$0xff] }
   0x6   :  { %279 = vmatpush3.msra.mxu0 %v28_v3  ;;  %300 = vmatpush3.msra.mxu1 %v144_v12  ;;  %v250_v14 = vld [vmem:[%s436_s2] ss:$0 sm:$0xff] }
   0x7   :  { %280 = vmatprep.subr.mxu0 %v320_v0  ;;  %301 = vmatprep.subr.mxu1 %v320_v0  ;;  %v254_v39 = vld [vmem:[%s437_s4] ss:$0 sm:$0xff] }
   0x8   :  { %281 = vmatpush3.msra.mxu0 %v27_v4  ;;  %302 = vmatpush3.msra.mxu1 %v143_v13 }
   0x9   :  { %282 = vmatprep.subr.mxu0 %v320_v0 }
   0xa   :  { %283 = vmatpush3.msra.mxu0 %v26_v5 }
   0xb   :  { %284 = vmatprep.subr.mxu0 %v320_v0 }
   0xc   :  { %285 = vmatpush3.msra.mxu0 %v25_v6 }
   0xd   :  { %286 = vmatprep.subr.mxu0 %v320_v0 }
   0xe   :  { %287 = vmatpush3.msra.mxu0 %v24_v7 }
   0xf   :  { %288 = vmatprep.subr.mxu0 %v320_v0 }
  0x10   :  { %289 = vmatpush3.msra.mxu0 %v23_v8 }
  0x11   :  { %291 = vmatmul.mubr.msk.f32.vlgmr.msra.gmra.mxu0 %vm38_vm1, %v20_v9 }
  0x12   :  { %293 = vmatprep.mubr.msk.f32.mxu0 %vm321_vm0, %v320_v0 }
  0x15   :  { %294 = vmatmul.mubr.msk.f32.gmra.mxu0 %vm38_vm1, %v21_v10 }
  0x16   :  { %296 = vmatprep.mubr.msk.f32.mxu0 %vm321_vm0, %v320_v0 }
  0x19   :  { %297 = vmatmul.mubr.msk.f32.gmra.mxu0 %vm38_vm1, %v22_v11 }
  0xd1   :  { %v114_v15 = vpop.f32.mrf.mxu0 }
  0xd2   :  { %v115_v16 = vadd.f32 %v250_v14, %v114_v15 }
  0xd3   :  { %v292_v17 = vpop.f32.mrf.mxu0 }
  0xd4   :  { %v131_v18 = vmul.f32 0.70710677, %v115_v16  ;;  %v128_v28 = vmul.f32 0.5, %v115_v16 }
  0xd5   :  { %v119_v19 = vpop.f32.mrf.mxu0 }
  0xd6   :  { %314 = verf.f32 %v131_v18  ;;  %v120_v20 = vadd.f32 %v250_v14, %v119_v19 }
  0xd7   :  { %v295_v21 = vpop.f32.mrf.mxu0 }
  0xd8   :  { %v132_v22 = vmul.f32 0.70710677, %v120_v20  ;;  %v129_v32 = vmul.f32 0.5, %v120_v20 }
  0xd9   :  { %v124_v23 = vpop.f32.mrf.mxu0 }
  0xda   :  { %316 = verf.f32 %v132_v22  ;;  %v125_v24 = vadd.f32 %v250_v14, %v124_v23 }
  0xdb   :  { %v298_v25 = vpop.f32.mrf.mxu0 }
  0xdc   :  { %v133_v26 = vmul.f32 0.70710677, %v125_v24  ;;  %v130_v36 = vmul.f32 0.5, %v125_v24 }
  0xde   :  { %318 = verf.f32 %v133_v26 }
  0xe3   :  { %v315_v27 = vpop.eup %314 }
  0xe4   :  { %v137_v29 = vadd.f32 1.0, %v315_v27 }
  0xe6   :  { %v140_v30 = vmul.f32 %v137_v29, %v128_v28 }
  0xe7   :  { %v317_v31 = vpop.eup %316 }
  0xe8   :  { %v138_v33 = vadd.f32 1.0, %v317_v31  ;;  %304 = vmatmul.mubr.msk.f32.vlgmr.msra.gmra.mxu1 %vm152_vm2, %v140_v30 }
  0xe9   :  { %306 = vmatprep.mubr.msk.f32.mxu1 %vm321_vm0, %v320_v0 }
  0xea   :  { %v141_v34 = vmul.f32 %v138_v33, %v129_v32 }
  0xeb   :  { %v319_v35 = vpop.eup %318 }
  0xec   :  { %v139_v37 = vadd.f32 1.0, %v319_v35  ;;  %307 = vmatmul.mubr.msk.f32.gmra.mxu1 %vm152_vm2, %v141_v34 }
  0xed   :  { %309 = vmatprep.mubr.msk.f32.mxu1 %vm321_vm0, %v320_v0 }
  0xee   :  { %v142_v38 = vmul.f32 %v139_v37, %v130_v36 }
  0xf0   :  { %310 = vmatmul.mubr.msk.f32.gmra.mxu1 %vm152_vm2, %v142_v38 }
 0x1a8   :  { %v228_v40 = vpop.f32.mrf.mxu1 }
 0x1a9   :  { %v229_v41 = vadd.f32 %v254_v39, %v228_v40 }
 0x1aa   :  { %v305_v42 = vpop.f32.mrf.mxu1 }
 0x1ab   :  { %242 = vst.msk [vmem:[%s438_s5] sm:$0xff] %vm38_vm1, %v229_v41 }
 0x1ac   :  { %v233_v43 = vpop.f32.mrf.mxu1 }
 0x1ad   :  { %v234_v44 = vadd.f32 %v254_v39, %v233_v43 }
 0x1ae   :  { %v308_v45 = vpop.f32.mrf.mxu1 }
 0x1af   :  { %243 = vst.msk [vmem:[%s438_s5 + $0x8] sm:$0xff] %vm38_vm1, %v234_v44 }
 0x1b0   :  { %v238_v46 = vpop.f32.mrf.mxu1 }
 0x1b1   :  { %v239_v47 = vadd.f32 %v254_v39, %v238_v46 }
 0x1b2   :  { %v311_v48 = vpop.f32.mrf.mxu1 }
 0x1b3   :  { %245 = vst.msk [vmem:[%s438_s5 + $0x10] sm:$0xf] %vm244_vm3, %v239_v47 }

// kernel: clip_forward.44
= control target key start
LH: loop header
LB: loop body
LE: loop exit
PB: predicated region body
PF: predicated region fallthrough
CT: control target
= control target key end

     0   :  { %vm30_vm0 = vcmask 523264   ;;  %v785_v0 = vmov 0.0   ;;  %vm786_vm1 = vmmov 0   ;;  %vm335_vm2 = vcmask 36864   ;;  %s907_s1 = inlined_call_operand.vmem [shape: f32[4,5,64], index: 1, kind: input, shape index: {}]   ;;  %s908_s0 = inlined_call_operand.vmem [shape: f32[4,5,64], index: 0, kind: input, shape index: {}]   ;;  %s909_s2 = inlined_call_operand.vmem [shape: f32[4,5,64], index: 2, kind: input, shape index: {}]   ;;  %s910_s3 = inlined_call_operand.vmem [shape: f32[4,5,64], index: 3, kind: output, shape index: {}]  }
   0x1   :  { %727 = vmatprep.subr.mxu0 %v785_v0  ;;  %v22_v1 = vld [vmem:[%s907_s1] sm:$0x1f]  ;;  %729 = vmatprep.mubr.msk.f32.mxu0 %vm786_vm1, %v785_v0  ;;  %v23_v3 = vld [vmem:[%s907_s1 + $0x8] sm:$0x1f]  ;;  %v24_v6 = vld [vmem:[%s907_s1 + $0x10] sm:$0x1f] }
   0x2   :  { %v14_v2 = vld [vmem:[%s908_s0] sm:$0x1f]  ;;  %728 = vmatpush3.xpose.msk.msra.mxu0 %vm30_vm0, %v22_v1  ;;  %732 = vmatprep.subr.mxu1 %v785_v0  ;;  %v15_v5 = vld [vmem:[%s908_s0 + $0x8] sm:$0x1f]  ;;  %v16_v8 = vld [vmem:[%s908_s0 + $0x10] sm:$0x1f] }
   0x3   :  { %v18_v4 = vmul.f32 0.125, %v14_v2  ;;  %733 = vmatpush3.xpose.msk.msra.mxu1 %vm30_vm0, %v23_v3  ;;  %737 = vmatprep.subr.mxu0 %v785_v0  ;;  %v19_v7 = vmul.f32 0.125, %v15_v5  ;;  %v25_v9 = vld [vmem:[%s907_s1 + $0x18] sm:$0x1f]  ;;  %v20_v11 = vmul.f32 0.125, %v16_v8  ;;  %vm376_vm3 = vcmask 1044480  }
   0x4   :  { %734 = vmatprep.mubr.msk.f32.mxu1 %vm786_vm1, %v785_v0  ;;  %742 = vmatprep.subr.mxu1 %v785_v0  ;;  %v17_v10 = vld [vmem:[%s908_s0 + $0x18] sm:$0x1f]  ;;  %v26_v25 = vld [vmem:[%s909_s2] sm:$0x1f]  ;;  %v27_v26 = vld [vmem:[%s909_s2 + $0x8] sm:$0x1f] }
   0x5   :  { %730 = vmatmul.mubr.msk.f32.vlgmr.msra.gmra.mxu0 %vm30_vm0, %v18_v4  ;;  %v21_v12 = vmul.f32 0.125, %v17_v10  ;;  %vm372_vm4 = vcmask 39936   ;;  %v28_v39 = vld [vmem:[%s909_s2 + $0x10] sm:$0x1f]  ;;  %v29_v42 = vld [vmem:[%s909_s2 + $0x18] sm:$0x1f] }
   0x6   :  { %738 = vmatpush3.xpose.msk.msra.mxu0 %vm30_vm0, %v24_v6  ;;  %735 = vmatmul.mubr.msk.f32.vlgmr.msra.gmra.mxu1 %vm30_vm0, %v19_v7  ;;  %vm686_vm5 = vcmask 520192  }
   0x7   :  { %739 = vmatprep.mubr.msk.f32.mxu0 %vm786_vm1, %v785_v0  ;;  %743 = vmatpush3.xpose.msk.msra.mxu1 %vm30_vm0, %v25_v9 }
   0x8   :  { %744 = vmatprep.mubr.msk.f32.mxu1 %vm786_vm1, %v785_v0  ;;  %747 = vmatprep.subr.mxu0 %v785_v0 }
   0x9   :  { %740 = vmatmul.mubr.msk.f32.vlgmr.msra.gmra.mxu0 %vm30_vm0, %v20_v11  ;;  %752 = vmatprep.subr.mxu1 %v785_v0 }
   0xa   :  { %745 = vmatmul.mubr.msk.f32.vlgmr.msra.gmra.mxu1 %vm30_vm0, %v21_v12  ;;  %749 = vmatprep.mubr.msk.f32.mxu0 %vm786_vm1, %v785_v0 }
   0xb   :  { %754 = vmatprep.mubr.msk.f32.mxu1 %vm786_vm1, %v785_v0  ;;  %748 = vmatpush3.msk.msra.mxu0 %vm376_vm3, %v26_v25 }
   0xc   :  { %757 = vmatprep.subr.mxu0 %v785_v0  ;;  %753 = vmatpush3.msk.msra.mxu1 %vm376_vm3, %v27_v26 }
   0xd   :  { %762 = vmatprep.subr.mxu1 %v785_v0 }
  0xc5   :  { %v103_v13 = vpop.f32.mrf.mxu0 }
  0xc6   :  { %v336_v14 = vsel %vm335_vm2, %v103_v13, -inf  ;;  %v179_v15 = vpop.f32.mrf.mxu1 }
  0xc7   :  { %337 = vmax.xlane.f32.xlu0 %v336_v14  ;;  %v731_v16 = vpop.f32.mrf.mxu0  ;;  %v339_v18 = vsel %vm335_vm2, %v179_v15, -inf }
  0xc8   :  { %v736_v17 = vpop.f32.mrf.mxu1 }
  0xc9   :  { %v255_v19 = vpop.f32.mrf.mxu0 }
  0xca   :  { %v342_v20 = vsel %vm335_vm2, %v255_v19, -inf  ;;  %v331_v21 = vpop.f32.mrf.mxu1 }
  0xcb   :  { %340 = vmax.xlane.f32.xlu0 %v339_v18  ;;  %343 = vmax.xlane.f32.xlu1 %v342_v20  ;;  %v741_v22 = vpop.f32.mrf.mxu0  ;;  %v345_v24 = vsel %vm335_vm2, %v331_v21, -inf }
  0xcc   :  { %v746_v23 = vpop.f32.mrf.mxu1 }
  0xcf   :  { %346 = vmax.xlane.f32.xlu1 %v345_v24 }
 0x150   :  { %v338_v27 = vpop.xlane.xlu0 %337 }
 0x151   :  { %v348_v28 = vsub.f32 %v103_v13, %v338_v27 }
 0x153   :  { %v352_v29 = vmul.f32 1.442695, %v348_v28 }
 0x154   :  { %v341_v30 = vpop.xlane.xlu0 %340  ;;  %v344_v31 = vpop.xlane.xlu1 %343 }
 0x155   :  { %769 = vpow2.f32 %v352_v29  ;;  %v349_v32 = vsub.f32 %v179_v15, %v341_v30  ;;  %v350_v33 = vsub.f32 %v255_v19, %v344_v31 }
 0x157   :  { %v354_v34 = vmul.f32 1.442695, %v349_v32  ;;  %v356_v35 = vmul.f32 1.442695, %v350_v33 }
 0x158   :  { %v347_v36 = vpop.xlane.xlu1 %346 }
 0x159   :  { %771 = vpow2.f32 %v354_v34  ;;  %v351_v37 = vsub.f32 %v331_v21, %v347_v36 }
 0x15a   :  { %773 = vpow2.f32 %v356_v35 }
 0x15b   :  { %v358_v38 = vmul.f32 1.442695, %v351_v37 }
 0x15d   :  { %775 = vpow2.f32 %v358_v38 }
 0x162   :  { %v770_v40 = vpop.eup %769 }
 0x163   :  { %750 = vmatmul.mubr.msk.f32.vlgmr.msra.gmra.mxu0 %vm372_vm4, %v770_v40  ;;  %v360_v41 = vsel %vm335_vm2, %v770_v40, 0.0 }
 0x164   :  { %361 = vadd.xlane.f32.xlu0 %v360_v41  ;;  %758 = vmatpush3.msk.msra.mxu0 %vm376_vm3, %v28_v39 }
 0x165   :  { %759 = vmatprep.mubr.msk.f32.mxu0 %vm786_vm1, %v785_v0 }
 0x166   :  { %v772_v43 = vpop.eup %771 }
 0x167   :  { %v774_v44 = vpop.eup %773  ;;  %755 = vmatmul.mubr.msk.f32.vlgmr.msra.gmra.mxu1 %vm372_vm4, %v772_v43  ;;  %v363_v45 = vsel %vm335_vm2, %v772_v43, 0.0 }
 0x168   :  { %760 = vmatmul.mubr.msk.f32.vlgmr.msra.gmra.mxu0 %vm372_vm4, %v774_v44  ;;  %763 = vmatpush3.msk.msra.mxu1 %vm376_vm3, %v29_v42  ;;  %v366_v46 = vsel %vm335_vm2, %v774_v44, 0.0 }
 0x169   :  { %364 = vadd.xlane.f32.xlu1 %v363_v45  ;;  %367 = vadd.xlane.f32.xlu0 %v366_v46 }
 0x16a   :  { %v776_v47 = vpop.eup %775  ;;  %764 = vmatprep.mubr.msk.f32.mxu1 %vm786_vm1, %v785_v0 }
 0x16b   :  { %765 = vmatmul.mubr.msk.f32.vlgmr.msra.gmra.mxu1 %vm372_vm4, %v776_v47  ;;  %v369_v48 = vsel %vm335_vm2, %v776_v47, 0.0 }
 0x16d   :  { %370 = vadd.xlane.f32.xlu1 %v369_v48 }
 0x1ed   :  { %v362_v49 = vpop.xlane.xlu0 %361 }
 0x1ee   :  { %777 = vrcp.f32 %v362_v49 }
 0x1f2   :  { %v365_v50 = vpop.xlane.xlu1 %364  ;;  %v368_v51 = vpop.xlane.xlu0 %367 }
 0x1f3   :  { %779 = vrcp.f32 %v365_v50 }
 0x1f4   :  { %781 = vrcp.f32 %v368_v51 }
 0x1f6   :  { %v371_v52 = vpop.xlane.xlu1 %370 }
 0x1f7   :  { %783 = vrcp.f32 %v371_v52 }
 0x1fb   :  { %v778_v53 = vpop.eup %777 }
 0x200   :  { %v780_v57 = vpop.eup %779 }
 0x201   :  { %v782_v59 = vpop.eup %781 }
 0x204   :  { %v784_v1 = vpop.eup %783 }
 0x223   :  { %v446_v54 = vpop.f32.mrf.mxu0 }
 0x224   :  { %v682_v55 = vmul.f32 %v778_v53, %v446_v54 }
 0x225   :  { %v751_v56 = vpop.f32.mrf.mxu0 }
 0x226   :  { %687 = vst.msk [vmem:[%s910_s3] sm:$0x1f] %vm686_vm5, %v682_v55 }
 0x227   :  { %v522_v58 = vpop.f32.mrf.mxu1 }
 0x228   :  { %v683_v60 = vmul.f32 %v780_v57, %v522_v58  ;;  %v598_v61 = vpop.f32.mrf.mxu0 }
 0x229   :  { %v684_v62 = vmul.f32 %v782_v59, %v598_v61  ;;  %v756_v63 = vpop.f32.mrf.mxu1 }
 0x22a   :  { %688 = vst.msk [vmem:[%s910_s3 + $0x8] sm:$0x1f] %vm686_vm5, %v683_v60  ;;  %v761_v0 = vpop.f32.mrf.mxu0 }
 0x22b   :  { %689 = vst.msk [vmem:[%s910_s3 + $0x10] sm:$0x1f] %vm686_vm5, %v684_v62  ;;  %v674_v2 = vpop.f32.mrf.mxu1 }
 0x22c   :  { %v685_v3 = vmul.f32 %v784_v1, %v674_v2 }
 0x22d   :  { %v766_v4 = vpop.f32.mrf.mxu1 }
 0x22e   :  { %690 = vst.msk [vmem:[%s910_s3 + $0x18] sm:$0x1f] %vm686_vm5, %v685_v3 }

// kernel: clip_forward.46
= control target key start
LH: loop header
LB: loop body
LE: loop exit
PB: predicated region body
PF: predicated region fallthrough
CT: control target
= control target key end

     0   :  { %v323_v0 = vmov 0.0   ;;  %vm324_vm0 = vmmov 0   ;;  %vm38_vm1 = vcmask 523264   ;;  %vm152_vm2 = vcmask 130048   ;;  %s436_s1 = inlined_call_operand.vmem [shape: f32[64,16], index: 1, kind: input, shape index: {}]   ;;  %s437_s0 = inlined_call_operand.vmem [shape: f32[20,64], index: 0, kind: input, shape index: {}]   ;;  %s438_s3 = inlined_call_operand.vmem [shape: f32[16,64], index: 3, kind: input, shape index: {}]   ;;  %s439_s2 = inlined_call_operand.vmem [shape: f32[1,16], index: 2, kind: input, shape index: {}]   ;;  %s440_s4 = inlined_call_operand.vmem [shape: f32[1,64], index: 4, kind: input, shape index: {}]   ;;  %s441_s5 = inlined_call_operand.vmem [shape: f32[20,64], index: 5, kind: output, shape index: {}]  }
   0x1   :  { %277 = vmatprep.subr.mxu0 %v323_v0  ;;  %v30_v1 = vld [vmem:[%s436_s1 + $0x38] sm:$0xff]  ;;  %v29_v2 = vld [vmem:[%s436_s1 + $0x30] sm:$0xff]  ;;  %293 = vmatprep.mubr.msk.f32.mxu0 %vm324_vm0, %v323_v0  ;;  %v28_v3 = vld [vmem:[%s436_s1 + $0x28] sm:$0xff]  ;;  %vm247_vm3 = vcmask 519168  }
   0x2   :  { %278 = vmatpush3.msra.mxu0 %v30_v1  ;;  %302 = vmatprep.subr.mxu1 %v323_v0  ;;  %v27_v4 = vld [vmem:[%s436_s1 + $0x20] sm:$0xff]  ;;  %v26_v5 = vld [vmem:[%s436_s1 + $0x18] sm:$0xff]  ;;  %v25_v6 = vld [vmem:[%s436_s1 + $0x10] sm:$0xff] }
   0x3   :  { %279 = vmatprep.subr.mxu0 %v323_v0  ;;  %306 = vmatprep.mubr.msk.f32.mxu1 %vm324_vm0, %v323_v0  ;;  %v24_v7 = vld [vmem:[%s436_s1 + $0x8] sm:$0xff]  ;;  %v23_v8 = vld [vmem:[%s436_s1] sm:$0xff]  ;;  %v22_v11 = vld [vmem:[%s437_s0 + $0x10] sm:$0xf] }
   0x4   :  { %280 = vmatpush3.msra.mxu0 %v29_v2  ;;  %v20_v9 = vld [vmem:[%s437_s0] sm:$0xff]  ;;  %v21_v10 = vld [vmem:[%s437_s0 + $0x8] sm:$0xff] }
   0x5   :  { %281 = vmatprep.subr.mxu0 %v323_v0  ;;  %v144_v12 = vld [vmem:[%s438_s3 + $0x8] sm:$0xff]  ;;  %v143_v13 = vld [vmem:[%s438_s3] sm:$0xff] }
   0x6   :  { %282 = vmatpush3.msra.mxu0 %v28_v3  ;;  %303 = vmatpush3.msra.mxu1 %v144_v12  ;;  %v253_v14 = vld [vmem:[%s439_s2] ss:$0 sm:$0xff] }
   0x7   :  { %283 = vmatprep.subr.mxu0 %v323_v0  ;;  %304 = vmatprep.subr.mxu1 %v323_v0  ;;  %v257_v39 = vld [vmem:[%s440_s4] ss:$0 sm:$0xff] }
   0x8   :  { %284 = vmatpush3.msra.mxu0 %v27_v4  ;;  %305 = vmatpush3.msra.mxu1 %v143_v13 }
   0x9   :  { %285 = vmatprep.subr.mxu0 %v323_v0 }
   0xa   :  { %286 = vmatpush3.msra.mxu0 %v26_v5 }
   0xb   :  { %287 = vmatprep.subr.mxu0 %v323_v0 }
   0xc   :  { %288 = vmatpush3.msra.mxu0 %v25_v6 }
   0xd   :  { %289 = vmatprep.subr.mxu0 %v323_v0 }
   0xe   :  { %290 = vmatpush3.msra.mxu0 %v24_v7 }
   0xf   :  { %291 = vmatprep.subr.mxu0 %v323_v0 }
  0x10   :  { %292 = vmatpush3.msra.mxu0 %v23_v8 }
  0x11   :  { %294 = vmatmul.mubr.msk.f32.vlgmr.msra.gmra.mxu0 %vm38_vm1, %v20_v9 }
  0x12   :  { %296 = vmatprep.mubr.msk.f32.mxu0 %vm324_vm0, %v323_v0 }
  0x15   :  { %297 = vmatmul.mubr.msk.f32.gmra.mxu0 %vm38_vm1, %v21_v10 }
  0x16   :  { %299 = vmatprep.mubr.msk.f32.mxu0 %vm324_vm0, %v323_v0 }
  0x19   :  { %300 = vmatmul.mubr.msk.f32.gmra.mxu0 %vm38_vm1, %v22_v11 }
  0xd1   :  { %v114_v15 = vpop.f32.mrf.mxu0 }
  0xd2   :  { %v115_v16 = vadd.f32 %v253_v14, %v114_v15 }
  0xd3   :  { %v295_v17 = vpop.f32.mrf.mxu0 }
  0xd4   :  { %v131_v18 = vmul.f32 0.70710677, %v115_v16  ;;  %v128_v28 = vmul.f32 0.5, %v115_v16 }
  0xd5   :  { %v119_v19 = vpop.f32.mrf.mxu0 }
  0xd6   :  { %317 = verf.f32 %v131_v18  ;;  %v120_v20 = vadd.f32 %v253_v14, %v119_v19 }
  0xd7   :  { %v298_v21 = vpop.f32.mrf.mxu0 }
  0xd8   :  { %v132_v22 = vmul.f32 0.70710677, %v120_v20  ;;  %v129_v32 = vmul.f32 0.5, %v120_v20 }
  0xd9   :  { %v124_v23 = vpop.f32.mrf.mxu0 }
  0xda   :  { %319 = verf.f32 %v132_v22  ;;  %v125_v24 = vadd.f32 %v253_v14, %v124_v23 }
  0xdb   :  { %v301_v25 = vpop.f32.mrf.mxu0 }
  0xdc   :  { %v133_v26 = vmul.f32 0.70710677, %v125_v24  ;;  %v130_v36 = vmul.f32 0.5, %v125_v24 }
  0xde   :  { %321 = verf.f32 %v133_v26 }
  0xe3   :  { %v318_v27 = vpop.eup %317 }
  0xe4   :  { %v137_v29 = vadd.f32 1.0, %v318_v27 }
  0xe6   :  { %v140_v30 = vmul.f32 %v137_v29, %v128_v28 }
  0xe7   :  { %v320_v31 = vpop.eup %319 }
  0xe8   :  { %v138_v33 = vadd.f32 1.0, %v320_v31  ;;  %307 = vmatmul.mubr.msk.f32.vlgmr.msra.gmra.mxu1 %vm152_vm2, %v140_v30 }
  0xe9   :  { %309 = vmatprep.mubr.msk.f32.mxu1 %vm324_vm0, %v323_v0 }
  0xea   :  { %v141_v34 = vmul.f32 %v138_v33, %v129_v32 }
  0xeb   :  { %v322_v35 = vpop.eup %321 }
  0xec   :  { %v139_v37 = vadd.f32 1.0, %v322_v35  ;;  %310 = vmatmul.mubr.msk.f32.gmra.mxu1 %vm152_vm2, %v141_v34 }
  0xed   :  { %312 = vmatprep.mubr.msk.f32.mxu1 %vm324_vm0, %v323_v0 }
  0xee   :  { %v142_v38 = vmul.f32 %v139_v37, %v130_v36 }
  0xf0   :  { %313 = vmatmul.mubr.msk.f32.gmra.mxu1 %vm152_vm2, %v142_v38 }
 0x1a8   :  { %v228_v40 = vpop.f32.mrf.mxu1 }
 0x1a9   :  { %v229_v41 = vadd.f32 %v257_v39, %v228_v40 }
 0x1aa   :  { %v308_v42 = vpop.f32.mrf.mxu1 }
 0x1ab   :  { %v242_v43 = vadd.f32 %v229_v41, %v20_v9 }
 0x1ac   :  { %v233_v44 = vpop.f32.mrf.mxu1 }
 0x1ad   :  { %245 = vst.msk [vmem:[%s441_s5] sm:$0xff] %vm38_vm1, %v242_v43  ;;  %v234_v45 = vadd.f32 %v257_v39, %v233_v44 }
 0x1ae   :  { %v311_v46 = vpop.f32.mrf.mxu1 }
 0x1af   :  { %v243_v47 = vadd.f32 %v234_v45, %v21_v10 }
 0x1b0   :  { %v238_v48 = vpop.f32.mrf.mxu1 }
 0x1b1   :  { %246 = vst.msk [vmem:[%s441_s5 + $0x8] sm:$0xff] %vm38_vm1, %v243_v47  ;;  %v239_v49 = vadd.f32 %v257_v39, %v238_v48 }
 0x1b2   :  { %v314_v50 = vpop.f32.mrf.mxu1 }
 0x1b3   :  { %v244_v51 = vadd.f32 %v239_v49, %v22_v11 }
 0x1b5   :  { %248 = vst.msk [vmem:[%s441_s5 + $0x10] sm:$0xf] %vm247_vm3, %v244_v51 }

// kernel: clip_forward.47
= control target key start
LH: loop header
LB: loop body
LE: loop exit
PB: predicated region body
PF: predicated region fallthrough
CT: control target
= control target key end

     0   :  { %vm23_vm0 = vcmask 523264   ;;  %vm30_vm1 = vcmask 519168   ;;  %v321_v37 = vmov 0.0   ;;  %v103_v61 = vlaneseq  ;;  %s460_s0 = inlined_call_operand.vmem [shape: f32[20,64], index: 0, kind: input, shape index: {}]   ;;  %s461_s3 = inlined_call_operand.vmem [shape: f32[64,256], index: 3, kind: input, shape index: {}]   ;;  %s462_s1 = inlined_call_operand.vmem [shape: f32[1,64], index: 1, kind: input, shape index: {}]   ;;  %s463_s2 = inlined_call_operand.vmem [shape: f32[1,64], index: 2, kind: input, shape index: {}]   ;;  %s464_s4 = inlined_call_operand.vmem [shape: f32[1,256], index: 4, kind: input, shape index: {}]   ;;  %s465_s5 = inlined_call_operand.vmem [shape: f32[20,256], index: 5, kind: output, shape index: {}]  }
   0x1   :  { %v21_v0 = vld [vmem:[%s460_s0 + $0x8] sm:$0xff]  ;;  %v22_v1 = vld [vmem:[%s460_s0 + $0x10] sm:$0xf]  ;;  %v20_v2 = vld [vmem:[%s460_s0] sm:$0xff]  ;;  %192 = vmatprep.mubr.f32.mxu1 %v321_v37  ;;  %186 = vmatprep.mubr.f32.mxu0 %v321_v37 }
   0x2   :  { %v27_v3 = vsel %vm23_vm0, %v21_v0, 0.0  ;;  %v31_v4 = vsel %vm30_vm1, %v22_v1, 0.0  ;;  %v24_v5 = vsel %vm23_vm0, %v20_v2, 0.0  ;;  %v100_v21 = vld [vmem:[%s461_s3 + $0x78] sm:$0xff]  ;;  %v99_v22 = vld [vmem:[%s461_s3 + $0x70] sm:$0xff]  ;;  %v98_v23 = vld [vmem:[%s461_s3 + $0x68] sm:$0xff] }
   0x3   :  { %28 = vadd.xlane.f32.xlu0 %v27_v3  ;;  %32 = vadd.xlane.f32.xlu1 %v31_v4  ;;  %v97_v24 = vld [vmem:[%s461_s3 + $0x60] sm:$0xff]  ;;  %v96_v25 = vld [vmem:[%s461_s3 + $0x58] sm:$0xff]  ;;  %v95_v26 = vld [vmem:[%s461_s3 + $0x50] sm:$0xff]  ;;  %v104_v62 = vshrl.u32 %v103_v61, 7 }
   0x4   :  { %274 = vmatprep.subr.mxu1 %v100_v21  ;;  %138 = vmatprep.subr.mxu0 %v100_v21  ;;  %v94_v27 = vld [vmem:[%s461_s3 + $0x48] sm:$0xff]  ;;  %v93_v28 = vld [vmem:[%s461_s3 + $0x40] sm:$0xff]  ;;  %v92_v29 = vld [vmem:[%s461_s3 + $0x38] sm:$0xff] }
   0x5   :  { %282 = vmatpush1.msra.mxu1 %v99_v22  ;;  %139 = vmatpush1.msra.mxu0 %v99_v22  ;;  %v91_v30 = vld [vmem:[%s461_s3 + $0x30] sm:$0xff]  ;;  %v90_v31 = vld [vmem:[%s461_s3 + $0x28] sm:$0xff]  ;;  %v89_v32 = vld [vmem:[%s461_s3 + $0x20] sm:$0xff]  ;;  %v105_v63 = vsub.s32 0, %v104_v62 }
   0x6   :  { %275 = vmatprep.subr.mxu1 %v98_v23  ;;  %140 = vmatprep.subr.mxu0 %v98_v23  ;;  %v88_v33 = vld [vmem:[%s461_s3 + $0x18] sm:$0xff]  ;;  %v87_v34 = vld [vmem:[%s461_s3 + $0x10] sm:$0xff]  ;;  %v86_v35 = vld [vmem:[%s461_s3 + $0x8] sm:$0xff] }
   0x7   :  { %25 = vadd.xlane.f32.xlu0 %v24_v5  ;;  %283 = vmatpush1.msra.mxu1 %v97_v24  ;;  %v85_v36 = vld [vmem:[%s461_s3] sm:$0xff] }
   0x8   :  { %141 = vmatpush1.msra.mxu0 %v97_v24  ;;  %276 = vmatprep.subr.mxu1 %v96_v25  ;;  %v263_v48 = vld [vmem:[%s462_s1] ss:$0 sm:$0xff] }
   0x9   :  { %142 = vmatprep.subr.mxu0 %v96_v25  ;;  %284 = vmatpush1.msra.mxu1 %v95_v26  ;;  %v264_v50 = vld [vmem:[%s463_s2] ss:$0 sm:$0xff] }
   0xa   :  { %143 = vmatpush1.msra.mxu0 %v95_v26  ;;  %277 = vmatprep.subr.mxu1 %v94_v27 }
   0xb   :  { %144 = vmatprep.subr.mxu0 %v94_v27  ;;  %285 = vmatpush1.msra.mxu1 %v93_v28 }
   0xc   :  { %145 = vmatpush1.msra.mxu0 %v93_v28  ;;  %278 = vmatprep.subr.mxu1 %v92_v29 }
   0xd   :  { %146 = vmatprep.subr.mxu0 %v92_v29  ;;  %286 = vmatpush1.msra.mxu1 %v91_v30 }
   0xe   :  { %147 = vmatpush1.msra.mxu0 %v91_v30  ;;  %279 = vmatprep.subr.mxu1 %v90_v31 }
   0xf   :  { %148 = vmatprep.subr.mxu0 %v90_v31  ;;  %287 = vmatpush1.msra.mxu1 %v89_v32 }
  0x10   :  { %149 = vmatpush1.msra.mxu0 %v89_v32  ;;  %280 = vmatprep.subr.mxu1 %v88_v33 }
  0x11   :  { %288 = vmatpush1.msra.mxu1 %v87_v34  ;;  %150 = vmatprep.subr.mxu0 %v88_v33 }
  0x12   :  { %281 = vmatprep.subr.mxu1 %v86_v35  ;;  %151 = vmatpush1.msra.mxu0 %v87_v34 }
  0x13   :  { %289 = vmatpush1.msra.mxu1 %v85_v36  ;;  %152 = vmatprep.subr.mxu0 %v86_v35 }
  0x14   :  { %153 = vmatpush1.msra.mxu0 %v85_v36 }
  0x8c   :  { %v29_v6 = vpop.xlane.xlu0 %28  ;;  %v33_v7 = vpop.xlane.xlu1 %32 }
  0x8d   :  { %v36_v8 = vmul.f32 0.015625, %v29_v6  ;;  %v37_v9 = vmul.f32 0.015625, %v33_v7 }
  0x8f   :  { %v364_v10 = vsub.f32 %v21_v0, %v36_v8  ;;  %v366_v11 = vsub.f32 %v22_v1, %v37_v9  ;;  %v101_v0 = vld [vmem:[%s464_s4] sm:$0x3]  ;;  %v109_v1 = vsub.s32 1, %v104_v62 }
  0x90   :  { %v26_v12 = vpop.xlane.xlu0 %25 }
  0x91   :  { %v35_v13 = vmul.f32 0.015625, %v26_v12  ;;  %v42_v14 = vmul.f32 %v364_v10, %v364_v10  ;;  %v43_v15 = vmul.f32 %v366_v11, %v366_v11  ;;  %v110_v3 = vrot.slane %v101_v0, %v109_v1 }
  0x93   :  { %v372_v16 = vsub.f32 %v20_v2, %v35_v13  ;;  %v47_v17 = vsel %vm23_vm0, %v42_v14, 0.0  ;;  %v50_v18 = vsel %vm30_vm1, %v43_v15, 0.0  ;;  %v106_v2 = vrot.slane %v101_v0, %v105_v63 }
  0x94   :  { %48 = vadd.xlane.f32.xlu1 %v47_v17 }
  0x95   :  { %v41_v19 = vmul.f32 %v372_v16, %v372_v16 }
  0x97   :  { %v44_v20 = vsel %vm23_vm0, %v41_v19, 0.0 }
  0x98   :  { %51 = vadd.xlane.f32.xlu1 %v50_v18  ;;  %45 = vadd.xlane.f32.xlu0 %v44_v20 }
 0x11d   :  { %v49_v38 = vpop.xlane.xlu1 %48 }
 0x11e   :  { %v54_v39 = vmul.f32 0.015625, %v49_v38 }
 0x120   :  { %v57_v40 = vadd.f32 1e-05, %v54_v39 }
 0x121   :  { %v52_v41 = vpop.xlane.xlu1 %51  ;;  %v46_v42 = vpop.xlane.xlu0 %45 }
 0x122   :  { %291 = vrsqrt.f32 %v57_v40  ;;  %v55_v43 = vmul.f32 0.015625, %v52_v41  ;;  %v53_v44 = vmul.f32 0.015625, %v46_v42 }
 0x124   :  { %v58_v45 = vadd.f32 1e-05, %v55_v43  ;;  %v56_v46 = vadd.f32 1e-05, %v53_v44 }
 0x126   :  { %293 = vrsqrt.f32 %v58_v45 }
 0x127   :  { %295 = vrsqrt.f32 %v56_v46 }
 0x12f   :  { %v292_v47 = vpop.eup %291 }
 0x130   :  { %v63_v49 = vmul.f32 %v292_v47, %v364_v10 }
 0x132   :  { %v73_v51 = vmul.f32 %v263_v48, %v63_v49 }
 0x133   :  { %v294_v52 = vpop.eup %293 }
 0x134   :  { %v296_v53 = vpop.eup %295  ;;  %v83_v54 = vadd.f32 %v264_v50, %v73_v51  ;;  %v64_v55 = vmul.f32 %v294_v52, %v366_v11 }
 0x135   :  { %v62_v56 = vmul.f32 %v296_v53, %v372_v16 }
 0x136   :  { %266 = vmatmul.mubr.msk.f32.vlgmr.msra.gmra.mxu1 %vm23_vm0, %v83_v54  ;;  %v74_v57 = vmul.f32 %v263_v48, %v64_v55 }
 0x137   :  { %198 = vmatprep.mubr.f32.mxu1 %v321_v37  ;;  %v72_v58 = vmul.f32 %v263_v48, %v62_v56 }
 0x138   :  { %v84_v59 = vadd.f32 %v264_v50, %v74_v57 }
 0x139   :  { %v82_v60 = vadd.f32 %v264_v50, %v72_v58 }
 0x13a   :  { %267 = vmatmul.mubr.msk.f32.gmra.mxu1 %vm23_vm0, %v84_v59 }
 0x13b   :  { %265 = vmatmul.mubr.msk.f32.vlgmr.msra.gmra.mxu0 %vm23_vm0, %v82_v60 }
 0x1f6   :  { %v194_v4 = vpop.f32.mrf.mxu1 }
 0x1f7   :  { %v195_v5 = vadd.f32 %v194_v4, %v106_v2 }
 0x1f8   :  { %v196_v6 = vpop.f32.mrf.mxu1 }
 0x1f9   :  { %v270_v7 = vmul.f32 -1.702, %v195_v5  ;;  %v197_v8 = vadd.f32 %v196_v6, %v110_v3 }
 0x1fa   :  { %v200_v9 = vpop.f32.mrf.mxu1 }
 0x1fb   :  { %v221_v10 = vmul.f32 1.442695, %v270_v7  ;;  %v271_v11 = vmul.f32 -1.702, %v197_v8  ;;  %v188_v12 = vpop.f32.mrf.mxu0  ;;  %v201_v13 = vadd.f32 %v200_v9, %v106_v2 }
 0x1fc   :  { %v189_v14 = vadd.f32 %v188_v12, %v106_v2  ;;  %v202_v15 = vpop.f32.mrf.mxu1 }
 0x1fd   :  { %297 = vpow2.f32 %v221_v10  ;;  %v223_v16 = vmul.f32 1.442695, %v271_v11  ;;  %v272_v17 = vmul.f32 -1.702, %v201_v13  ;;  %v190_v18 = vpop.f32.mrf.mxu0  ;;  %v203_v19 = vadd.f32 %v202_v15, %v110_v3 }
 0x1fe   :  { %v268_v20 = vmul.f32 -1.702, %v189_v14  ;;  %v191_v21 = vadd.f32 %v190_v18, %v110_v3 }
 0x1ff   :  { %299 = vpow2.f32 %v223_v16  ;;  %v225_v22 = vmul.f32 1.442695, %v272_v17  ;;  %v273_v23 = vmul.f32 -1.702, %v203_v19 }
 0x200   :  { %v217_v24 = vmul.f32 1.442695, %v268_v20  ;;  %v269_v25 = vmul.f32 -1.702, %v191_v21 }
 0x201   :  { %301 = vpow2.f32 %v225_v22  ;;  %v227_v26 = vmul.f32 1.442695, %v273_v23 }
 0x202   :  { %303 = vpow2.f32 %v217_v24  ;;  %v219_v27 = vmul.f32 1.442695, %v269_v25 }
 0x203   :  { %305 = vpow2.f32 %v227_v26 }
 0x204   :  { %307 = vpow2.f32 %v219_v27 }
 0x20a   :  { %v298_v28 = vpop.eup %297 }
 0x20b   :  { %v231_v29 = vadd.f32 1.0, %v298_v28 }
 0x20c   :  { %v300_v30 = vpop.eup %299 }
 0x20d   :  { %309 = vrcp.f32 %v231_v29  ;;  %v232_v31 = vadd.f32 1.0, %v300_v30 }
 0x20e   :  { %v302_v32 = vpop.eup %301 }
 0x20f   :  { %v304_v33 = vpop.eup %303  ;;  %311 = vrcp.f32 %v232_v31  ;;  %v233_v34 = vadd.f32 1.0, %v302_v32 }
 0x210   :  { %v306_v35 = vpop.eup %305  ;;  %v229_v36 = vadd.f32 1.0, %v304_v33 }
 0x211   :  { %v308_v37 = vpop.eup %307  ;;  %313 = vrcp.f32 %v233_v34  ;;  %v234_v38 = vadd.f32 1.0, %v306_v35 }
 0x212   :  { %315 = vrcp.f32 %v229_v36  ;;  %v230_v39 = vadd.f32 1.0, %v308_v37 }
 0x213   :  { %317 = vrcp.f32 %v234_v38 }
 0x214   :  { %319 = vrcp.f32 %v230_v39 }
 0x21a   :  { %v310_v40 = vpop.eup %309 }
 0x21b   :  { %v249_v41 = vmul.f32 %v310_v40, %v195_v5 }
 0x21c   :  { %v312_v42 = vpop.eup %311 }
 0x21d   :  { %255 = vst [vmem:[%s465_s5 + $0x10] sm:$0xff] %v249_v41  ;;  %v250_v43 = vmul.f32 %v312_v42, %v197_v8 }
 0x21e   :  { %v314_v44 = vpop.eup %313 }
 0x21f   :  { %v316_v45 = vpop.eup %315  ;;  %256 = vst [vmem:[%s465_s5 + $0x18] sm:$0xff] %v250_v43  ;;  %v251_v46 = vmul.f32 %v314_v44, %v201_v13 }
 0x220   :  { %v318_v47 = vpop.eup %317  ;;  %v247_v48 = vmul.f32 %v316_v45, %v189_v14 }
 0x221   :  { %v320_v49 = vpop.eup %319  ;;  %257 = vst [vmem:[%s465_s5 + $0x20] sm:$0xf] %v251_v46  ;;  %v252_v50 = vmul.f32 %v318_v47, %v203_v19 }
 0x222   :  { %253 = vst [vmem:[%s465_s5] sm:$0xff] %v247_v48  ;;  %v248_v51 = vmul.f32 %v320_v49, %v191_v21 }
 0x223   :  { %258 = vst [vmem:[%s465_s5 + $0x28] sm:$0xf] %v252_v50 }
 0x224   :  { %254 = vst [vmem:[%s465_s5 + $0x8] sm:$0xff] %v248_v51 }

// kernel: clip_forward.48
= control target key start
LH: loop header
LB: loop body
LE: loop exit
PB: predicated region body
PF: predicated region fallthrough
CT: control target
= control target key end

     0   :  { %vm148_vm0 = vcmask 523264   ;;  %vm151_vm1 = vcmask 519168   ;;  %s391_s1 = inlined_call_operand.vmem [shape: f32[256,64], index: 1, kind: input, shape index: {}]   ;;  %s392_s0 = inlined_call_operand.vmem [shape: f32[20,256], index: 0, kind: input, shape index: {}]   ;;  %s393_s2 = inlined_call_operand.vmem [shape: f32[1,64], index: 2, kind: input, shape index: {}]   ;;  %s394_s3 = inlined_call_operand.vmem [shape: f32[20,64], index: 3, kind: input, shape index: {}]   ;;  %s395_s4 = inlined_call_operand.vmem [shape: f32[20,64], index: 4, kind: output, shape index: {}]  }
   0x1   :  { %v54_v0 = vld [vmem:[%s391_s1 + $0xf8] sm:$0xff]  ;;  %v53_v2 = vld [vmem:[%s391_s1 + $0xf0] sm:$0xff]  ;;  %v52_v4 = vld [vmem:[%s391_s1 + $0xe8] sm:$0xff] }
   0x2   :  { %v38_v1 = vld [vmem:[%s391_s1 + $0x78] sm:$0xff]  ;;  %199 = vmatprep.subr.mxu1 %v54_v0  ;;  %158 = vmatprep.subr.mxu0 %v54_v0  ;;  %v37_v3 = vld [vmem:[%s391_s1 + $0x70] sm:$0xff]  ;;  %v36_v5 = vld [vmem:[%s391_s1 + $0x68] sm:$0xff] }
   0x3   :  { %215 = vmatpush3.msra.mxu1 %v38_v1  ;;  %159 = vmatpush3.msra.mxu0 %v38_v1  ;;  %v51_v6 = vld [vmem:[%s391_s1 + $0xe0] sm:$0xff]  ;;  %v50_v8 = vld [vmem:[%s391_s1 + $0xd8] sm:$0xff]  ;;  %v49_v10 = vld [vmem:[%s391_s1 + $0xd0] sm:$0xff] }
   0x4   :  { %200 = vmatprep.subr.mxu1 %v53_v2  ;;  %160 = vmatprep.subr.mxu0 %v53_v2  ;;  %v35_v7 = vld [vmem:[%s391_s1 + $0x60] sm:$0xff]  ;;  %v34_v9 = vld [vmem:[%s391_s1 + $0x58] sm:$0xff]  ;;  %v33_v11 = vld [vmem:[%s391_s1 + $0x50] sm:$0xff] }
   0x5   :  { %216 = vmatpush3.msra.mxu1 %v37_v3  ;;  %161 = vmatpush3.msra.mxu0 %v37_v3  ;;  %v48_v12 = vld [vmem:[%s391_s1 + $0xc8] sm:$0xff]  ;;  %v47_v14 = vld [vmem:[%s391_s1 + $0xc0] sm:$0xff]  ;;  %v46_v16 = vld [vmem:[%s391_s1 + $0xb8] sm:$0xff] }
   0x6   :  { %201 = vmatprep.subr.mxu1 %v52_v4  ;;  %162 = vmatprep.subr.mxu0 %v52_v4  ;;  %v32_v13 = vld [vmem:[%s391_s1 + $0x48] sm:$0xff]  ;;  %v31_v15 = vld [vmem:[%s391_s1 + $0x40] sm:$0xff]  ;;  %v30_v17 = vld [vmem:[%s391_s1 + $0x38] sm:$0xff] }
   0x7   :  { %217 = vmatpush3.msra.mxu1 %v36_v5  ;;  %163 = vmatpush3.msra.mxu0 %v36_v5  ;;  %v45_v18 = vld [vmem:[%s391_s1 + $0xb0] sm:$0xff]  ;;  %v44_v20 = vld [vmem:[%s391_s1 + $0xa8] sm:$0xff]  ;;  %v43_v22 = vld [vmem:[%s391_s1 + $0xa0] sm:$0xff] }
   0x8   :  { %202 = vmatprep.subr.mxu1 %v51_v6  ;;  %164 = vmatprep.subr.mxu0 %v51_v6  ;;  %v29_v19 = vld [vmem:[%s391_s1 + $0x30] sm:$0xff]  ;;  %v28_v21 = vld [vmem:[%s391_s1 + $0x28] sm:$0xff]  ;;  %v27_v23 = vld [vmem:[%s391_s1 + $0x20] sm:$0xff] }
   0x9   :  { %218 = vmatpush3.msra.mxu1 %v35_v7  ;;  %165 = vmatpush3.msra.mxu0 %v35_v7  ;;  %v42_v24 = vld [vmem:[%s391_s1 + $0x98] sm:$0xff]  ;;  %v41_v26 = vld [vmem:[%s391_s1 + $0x90] sm:$0xff]  ;;  %v40_v28 = vld [vmem:[%s391_s1 + $0x88] sm:$0xff] }
   0xa   :  { %203 = vmatprep.subr.mxu1 %v50_v8  ;;  %166 = vmatprep.subr.mxu0 %v50_v8  ;;  %v26_v25 = vld [vmem:[%s391_s1 + $0x18] sm:$0xff]  ;;  %v25_v27 = vld [vmem:[%s391_s1 + $0x10] sm:$0xff]  ;;  %v24_v29 = vld [vmem:[%s391_s1 + $0x8] sm:$0xff] }
   0xb   :  { %219 = vmatpush3.msra.mxu1 %v34_v9  ;;  %167 = vmatpush3.msra.mxu0 %v34_v9  ;;  %v39_v30 = vld [vmem:[%s391_s1 + $0x80] sm:$0xff]  ;;  %v20_v31 = vld [vmem:[%s392_s0 + $0x18] sm:$0xff]  ;;  %v19_v33 = vld [vmem:[%s392_s0 + $0x10] sm:$0xff] }
   0xc   :  { %204 = vmatprep.subr.mxu1 %v49_v10  ;;  %168 = vmatprep.subr.mxu0 %v49_v10  ;;  %v23_v32 = vld [vmem:[%s391_s1] sm:$0xff]  ;;  %v18_v34 = vld [vmem:[%s392_s0 + $0x8] sm:$0xff]  ;;  %v144_v53 = vld [vmem:[%s394_s3 + $0x10] sm:$0xf] }
   0xd   :  { %220 = vmatpush3.msra.mxu1 %v33_v11  ;;  %169 = vmatpush3.msra.mxu0 %v33_v11  ;;  %v22_v35 = vld [vmem:[%s392_s0 + $0x28] sm:$0xf]  ;;  %v17_v36 = vld [vmem:[%s392_s0] sm:$0xff] }
   0xe   :  { %205 = vmatprep.subr.mxu1 %v48_v12  ;;  %170 = vmatprep.subr.mxu0 %v48_v12  ;;  %v21_v37 = vld [vmem:[%s392_s0 + $0x20] sm:$0xf]  ;;  %v143_v43 = vld [vmem:[%s394_s3 + $0x8] sm:$0xff] }
   0xf   :  { %221 = vmatpush3.msra.mxu1 %v32_v13  ;;  %171 = vmatpush3.msra.mxu0 %v32_v13  ;;  %v157_v40 = vld [vmem:[%s393_s2] ss:$0 sm:$0xff] }
  0x10   :  { %206 = vmatprep.subr.mxu1 %v47_v14  ;;  %172 = vmatprep.subr.mxu0 %v47_v14  ;;  %v142_v48 = vld [vmem:[%s394_s3] sm:$0xff] }
  0x11   :  { %222 = vmatpush3.msra.mxu1 %v31_v15  ;;  %173 = vmatpush3.msra.mxu0 %v31_v15 }
  0x12   :  { %207 = vmatprep.subr.mxu1 %v46_v16  ;;  %174 = vmatprep.subr.mxu0 %v46_v16 }
  0x13   :  { %223 = vmatpush3.msra.mxu1 %v30_v17  ;;  %175 = vmatpush3.msra.mxu0 %v30_v17 }
  0x14   :  { %208 = vmatprep.subr.mxu1 %v45_v18  ;;  %176 = vmatprep.subr.mxu0 %v45_v18 }
  0x15   :  { %224 = vmatpush3.msra.mxu1 %v29_v19  ;;  %177 = vmatpush3.msra.mxu0 %v29_v19 }
  0x16   :  { %209 = vmatprep.subr.mxu1 %v44_v20  ;;  %178 = vmatprep.subr.mxu0 %v44_v20 }
  0x17   :  { %225 = vmatpush3.msra.mxu1 %v28_v21  ;;  %179 = vmatpush3.msra.mxu0 %v28_v21 }
  0x18   :  { %210 = vmatprep.subr.mxu1 %v43_v22  ;;  %180 = vmatprep.subr.mxu0 %v43_v22 }
  0x19   :  { %226 = vmatpush3.msra.mxu1 %v27_v23  ;;  %181 = vmatpush3.msra.mxu0 %v27_v23 }
  0x1a   :  { %211 = vmatprep.subr.mxu1 %v42_v24  ;;  %182 = vmatprep.subr.mxu0 %v42_v24 }
  0x1b   :  { %227 = vmatpush3.msra.mxu1 %v26_v25  ;;  %183 = vmatpush3.msra.mxu0 %v26_v25 }
  0x1c   :  { %212 = vmatprep.subr.mxu1 %v41_v26  ;;  %184 = vmatprep.subr.mxu0 %v41_v26 }
  0x1d   :  { %228 = vmatpush3.msra.mxu1 %v25_v27  ;;  %185 = vmatpush3.msra.mxu0 %v25_v27 }
  0x1e   :  { %213 = vmatprep.subr.mxu1 %v40_v28  ;;  %186 = vmatprep.subr.mxu0 %v40_v28 }
  0x1f   :  { %229 = vmatpush3.msra.mxu1 %v24_v29  ;;  %187 = vmatpush3.msra.mxu0 %v24_v29 }
  0x20   :  { %214 = vmatprep.subr.mxu1 %v39_v30  ;;  %131 = vmatprep.mubr.f32.mxu1 %v20_v31 }
  0x21   :  { %230 = vmatpush3.msra.mxu1 %v23_v32  ;;  %188 = vmatprep.subr.mxu0 %v39_v30 }
  0x22   :  { %132 = vmatmul.mubr.f32.vlgmr.msra.gmra.mxu1 %v19_v33  ;;  %189 = vmatpush3.msra.mxu0 %v23_v32 }
  0x23   :  { %126 = vmatprep.mubr.f32.mxu0 %v18_v34  ;;  %136 = vmatprep.mubr.f32.mxu1 %v22_v35 }
  0x24   :  { %127 = vmatmul.mubr.f32.vlgmr.msra.gmra.mxu0 %v17_v36 }
  0x26   :  { %137 = vmatmul.mubr.f32.gmra.mxu1 %v21_v37 }
  0xe2   :  { %v193_v38 = vpop.f32.mrf.mxu1 }
  0xe4   :  { %v190_v39 = vpop.f32.mrf.mxu0  ;;  %v194_v41 = vpop.f32.mrf.mxu1 }
  0xe5   :  { %v195_v42 = vadd.f32 %v194_v41, %v193_v38 }
  0xe6   :  { %v191_v44 = vpop.f32.mrf.mxu0  ;;  %v196_v45 = vpop.f32.mrf.mxu1 }
  0xe7   :  { %v134_v46 = vadd.f32 %v195_v42, %v157_v40  ;;  %v192_v47 = vadd.f32 %v191_v44, %v190_v39 }
  0xe8   :  { %v197_v49 = vpop.f32.mrf.mxu1 }
  0xe9   :  { %v146_v50 = vadd.f32 %v143_v43, %v134_v46  ;;  %v129_v51 = vadd.f32 %v192_v47, %v157_v40  ;;  %v198_v52 = vadd.f32 %v197_v49, %v196_v45 }
  0xeb   :  { %150 = vst.msk [vmem:[%s395_s4 + $0x8] sm:$0xff] %vm148_vm0, %v146_v50  ;;  %v145_v54 = vadd.f32 %v142_v48, %v129_v51  ;;  %v139_v55 = vadd.f32 %v198_v52, %v157_v40 }
  0xed   :  { %149 = vst.msk [vmem:[%s395_s4] sm:$0xff] %vm148_vm0, %v145_v54  ;;  %v147_v56 = vadd.f32 %v144_v53, %v139_v55 }
  0xef   :  { %152 = vst.msk [vmem:[%s395_s4 + $0x10] sm:$0xf] %vm151_vm1, %v147_v56 }

// kernel: clip_forward.59
= control target key start
LH: loop header
LB: loop body
LE: loop exit
PB: predicated region body
PF: predicated region fallthrough
CT: control target
= control target key end

     0   :  { %vm18_vm0 = vcmask 519168   ;;  %v172_v7 = vmov 0.0   ;;  %vm173_vm1 = vmmov 0   ;;  %vm57_vm2 = vcmask 523264   ;;  %s235_s0 = inlined_call_operand.vmem [shape: f32[4,64], index: 0, kind: input, shape index: {}]   ;;  %s236_s3 = inlined_call_operand.vmem [shape: f32[64,32], index: 3, kind: input, shape index: {}]   ;;  %s237_s1 = inlined_call_operand.vmem [shape: f32[1,64], index: 1, kind: input, shape index: {}]   ;;  %s238_s2 = inlined_call_operand.vmem [shape: f32[1,64], index: 2, kind: input, shape index: {}]   ;;  %s239_s4 = inlined_call_operand.vmem [shape: f32[4,32], index: 4, kind: output, shape index: {}]  }
   0x1   :  { %v17_v0 = vld [vmem:[%s235_s0] sm:$0xf]  ;;  %149 = vmatprep.subr.mxu0 %v172_v7  ;;  %v56_v8 = vld [vmem:[%s236_s3 + $0x38] sm:$0xff]  ;;  %v55_v9 = vld [vmem:[%s236_s3 + $0x30] sm:$0xff]  ;;  %165 = vmatprep.mubr.msk.f32.mxu0 %vm173_vm1, %v172_v7  ;;  %vm131_vm3 = vcmask 257024  }
   0x2   :  { %v19_v1 = vsel %vm18_vm0, %v17_v0, 0.0  ;;  %150 = vmatpush3.msra.mxu0 %v56_v8  ;;  %v54_v10 = vld [vmem:[%s236_s3 + $0x28] sm:$0xff]  ;;  %v53_v11 = vld [vmem:[%s236_s3 + $0x20] sm:$0xff]  ;;  %v52_v12 = vld [vmem:[%s236_s3 + $0x18] sm:$0xff] }
   0x3   :  { %20 = vadd.xlane.f32.xlu0 %v19_v1  ;;  %151 = vmatprep.subr.mxu0 %v172_v7  ;;  %v51_v13 = vld [vmem:[%s236_s3 + $0x10] sm:$0xff]  ;;  %v50_v14 = vld [vmem:[%s236_s3 + $0x8] sm:$0xff]  ;;  %v49_v15 = vld [vmem:[%s236_s3] sm:$0xff] }
   0x4   :  { %152 = vmatpush3.msra.mxu0 %v55_v9  ;;  %v137_v20 = vld [vmem:[%s237_s1] ss:$0 sm:$0xff] }
   0x5   :  { %153 = vmatprep.subr.mxu0 %v172_v7  ;;  %v138_v22 = vld [vmem:[%s238_s2] ss:$0 sm:$0xff] }
   0x6   :  { %154 = vmatpush3.msra.mxu0 %v54_v10 }
   0x7   :  { %155 = vmatprep.subr.mxu0 %v172_v7 }
   0x8   :  { %156 = vmatpush3.msra.mxu0 %v53_v11 }
   0x9   :  { %157 = vmatprep.subr.mxu0 %v172_v7 }
   0xa   :  { %158 = vmatpush3.msra.mxu0 %v52_v12 }
   0xb   :  { %159 = vmatprep.subr.mxu0 %v172_v7 }
   0xc   :  { %160 = vmatpush3.msra.mxu0 %v51_v13 }
   0xd   :  { %161 = vmatprep.subr.mxu0 %v172_v7 }
   0xe   :  { %162 = vmatpush3.msra.mxu0 %v50_v14 }
   0xf   :  { %163 = vmatprep.subr.mxu0 %v172_v7 }
  0x10   :  { %164 = vmatpush3.msra.mxu0 %v49_v15 }
  0x8c   :  { %v21_v2 = vpop.xlane.xlu0 %20 }
  0x8d   :  { %v23_v3 = vmul.f32 0.015625, %v21_v2 }
  0x8f   :  { %v24_v4 = vsub.f32 %v17_v0, %v23_v3 }
  0x91   :  { %v25_v5 = vmul.f32 %v24_v4, %v24_v4 }
  0x93   :  { %v26_v6 = vsel %vm18_vm0, %v25_v5, 0.0 }
  0x94   :  { %27 = vadd.xlane.f32.xlu0 %v26_v6 }
 0x11d   :  { %v28_v16 = vpop.xlane.xlu0 %27 }
 0x11e   :  { %v29_v17 = vmul.f32 0.015625, %v28_v16 }
 0x120   :  { %v30_v18 = vadd.f32 1e-05, %v29_v17 }
 0x122   :  { %170 = vrsqrt.f32 %v30_v18 }
 0x12f   :  { %v171_v19 = vpop.eup %170 }
 0x130   :  { %v32_v21 = vmul.f32 %v171_v19, %v24_v4 }
 0x132   :  { %v40_v23 = vmul.f32 %v137_v20, %v32_v21 }
 0x134   :  { %v48_v24 = vadd.f32 %v138_v22, %v40_v23 }
 0x136   :  { %166 = vmatmul.mubr.msk.f32.vlgmr.msra.gmra.mxu0 %vm57_vm2, %v48_v24 }
 0x1f6   :  { %v127_v25 = vpop.f32.mrf.mxu0 }
 0x1f7   :  { %132 = vst.msk [vmem:[%s239_s4] sm:$0xf] %vm131_vm3, %v127_v25 }
 0x1f8   :  { %v167_v26 = vpop.f32.mrf.mxu0 }

// kernel: clip_forward.60
= control target key start
LH: loop header
LB: loop body
LE: loop exit
PB: predicated region body
PF: predicated region fallthrough
CT: control target
= control target key end

     0   :  { %vm22_vm0 = vcmask 261120   ;;  %vm160_vm1 = vcmask 785408   ;;  %s262_s0 = inlined_call_operand.vmem [shape: f32[16,32], index: 0, kind: input, shape index: {}]   ;;  %s263_s3 = inlined_call_operand.vmem [shape: f32[32,96], index: 3, kind: input, shape index: {}]   ;;  %s264_s1 = inlined_call_operand.vmem [shape: f32[1,32], index: 1, kind: input, shape index: {}]   ;;  %s265_s2 = inlined_call_operand.vmem [shape: f32[1,32], index: 2, kind: input, shape index: {}]   ;;  %s266_s4 = inlined_call_operand.vmem [shape: f32[1,96], index: 4, kind: input, shape index: {}]   ;;  %s267_s5 = inlined_call_operand.vmem [shape: f32[16,96], index: 5, kind: output, shape index: {}]  }
   0x1   :  { %v20_v0 = vld [vmem:[%s262_s0] sm:$0xff]  ;;  %v21_v1 = vld [vmem:[%s262_s0 + $0x8] sm:$0xff]  ;;  %v71_v14 = vld [vmem:[%s263_s3 + $0x18] sm:$0xff] }
   0x2   :  { %v23_v2 = vsel %vm22_vm0, %v20_v0, 0.0  ;;  %v26_v3 = vsel %vm22_vm0, %v21_v1, 0.0  ;;  %v70_v15 = vld [vmem:[%s263_s3 + $0x10] sm:$0xff]  ;;  %178 = vmatprep.subr.mxu0 %v71_v14  ;;  %v69_v16 = vld [vmem:[%s263_s3 + $0x8] sm:$0xff]  ;;  %v68_v17 = vld [vmem:[%s263_s3] sm:$0xff] }
   0x3   :  { %24 = vadd.xlane.f32.xlu0 %v23_v2  ;;  %179 = vmatpush3.msra.mxu0 %v71_v14  ;;  %v167_v25 = vld [vmem:[%s264_s1] ss:$0 sm:$0xff] }
   0x4   :  { %180 = vmatprep.subr.mxu0 %v70_v15  ;;  %v168_v27 = vld [vmem:[%s265_s2] ss:$0 sm:$0xff] }
   0x5   :  { %181 = vmatpush3.msra.mxu0 %v70_v15  ;;  %v169_v34 = vld [vmem:[%s266_s4] ss:$0 sm:$0xff] }
   0x6   :  { %182 = vmatprep.subr.mxu0 %v69_v16 }
   0x7   :  { %27 = vadd.xlane.f32.xlu0 %v26_v3  ;;  %183 = vmatpush3.msra.mxu0 %v69_v16 }
   0x8   :  { %184 = vmatprep.subr.mxu0 %v68_v17 }
   0x9   :  { %185 = vmatpush3.msra.mxu0 %v68_v17 }
  0x8c   :  { %v25_v4 = vpop.xlane.xlu0 %24 }
  0x8d   :  { %v30_v5 = vmul.f32 0.03125, %v25_v4 }
  0x8f   :  { %v32_v6 = vsub.f32 %v20_v0, %v30_v5 }
  0x90   :  { %v28_v7 = vpop.xlane.xlu0 %27 }
  0x91   :  { %v31_v8 = vmul.f32 0.03125, %v28_v7  ;;  %v34_v9 = vmul.f32 %v32_v6, %v32_v6 }
  0x93   :  { %v33_v10 = vsub.f32 %v21_v1, %v31_v8  ;;  %v36_v11 = vsel %vm22_vm0, %v34_v9, 0.0 }
  0x94   :  { %37 = vadd.xlane.f32.xlu1 %v36_v11 }
  0x95   :  { %v35_v12 = vmul.f32 %v33_v10, %v33_v10 }
  0x97   :  { %v39_v13 = vsel %vm22_vm0, %v35_v12, 0.0 }
  0x98   :  { %40 = vadd.xlane.f32.xlu1 %v39_v13 }
 0x11d   :  { %v38_v18 = vpop.xlane.xlu1 %37 }
 0x11e   :  { %v42_v19 = vmul.f32 0.03125, %v38_v18 }
 0x120   :  { %v44_v20 = vadd.f32 1e-05, %v42_v19 }
 0x121   :  { %v41_v21 = vpop.xlane.xlu1 %40 }
 0x122   :  { %189 = vrsqrt.f32 %v44_v20  ;;  %v43_v22 = vmul.f32 0.03125, %v41_v21 }
 0x124   :  { %v45_v23 = vadd.f32 1e-05, %v43_v22 }
 0x126   :  { %191 = vrsqrt.f32 %v45_v23 }
 0x12f   :  { %v190_v24 = vpop.eup %189 }
 0x130   :  { %v48_v26 = vmul.f32 %v190_v24, %v32_v6 }
 0x132   :  { %v57_v28 = vmul.f32 %v167_v25, %v48_v26 }
 0x133   :  { %v192_v29 = vpop.eup %191 }
 0x134   :  { %v49_v30 = vmul.f32 %v192_v29, %v33_v10  ;;  %v66_v31 = vadd.f32 %v168_v27, %v57_v28 }
 0x136   :  { %v58_v32 = vmul.f32 %v167_v25, %v49_v30  ;;  %186 = vmatprep.mubr.msk.f32.mxu0 %vm22_vm0, %v66_v31 }
 0x138   :  { %v67_v33 = vadd.f32 %v168_v27, %v58_v32 }
 0x13a   :  { %187 = vmatmul.mubr.msk.f32.vlgmr.msra.gmra.mxu0 %vm22_vm0, %v67_v33 }
 0x1fa   :  { %v188_v35 = vpop.f32.mrf.mxu0 }
 0x1fb   :  { %v157_v36 = vadd.f32 %v188_v35, %v169_v34 }
 0x1fc   :  { %v151_v37 = vpop.f32.mrf.mxu0 }
 0x1fd   :  { %162 = vst.msk [vmem:[%s267_s5 + $0x8] sm:$0xff] %vm160_vm1, %v157_v36  ;;  %v152_v38 = vadd.f32 %v169_v34, %v151_v37 }
 0x1ff   :  { %161 = vst.msk [vmem:[%s267_s5] sm:$0xff] %vm160_vm1, %v152_v38 }

// kernel: clip_forward.62
= control target key start
LH: loop header
LB: loop body
LE: loop exit
PB: predicated region body
PF: predicated region fallthrough
CT: control target
= control target key end

     0   :  { %vm30_vm0 = vcmask 261120   ;;  %s204_s1 = inlined_call_operand.vmem [shape: f32[32,32], index: 1, kind: input, shape index: {}]   ;;  %s205_s0 = inlined_call_operand.vmem [shape: f32[16,32], index: 0, kind: input, shape index: {}]   ;;  %s206_s2 = inlined_call_operand.vmem [shape: f32[1,32], index: 2, kind: input, shape index: {}]   ;;  %s207_s3 = inlined_call_operand.vmem [shape: f32[16,32], index: 3, kind: input, shape index: {}]   ;;  %s208_s4 = inlined_call_operand.vmem [shape: f32[16,32], index: 4, kind: output, shape index: {}]  }
   0x1   :  { %v22_v0 = vld [vmem:[%s204_s1 + $0x18] sm:$0xff]  ;;  %v21_v1 = vld [vmem:[%s204_s1 + $0x10] sm:$0xff]  ;;  %v17_v2 = vld [vmem:[%s205_s0] sm:$0xff] }
   0x2   :  { %131 = vmatprep.subr.mxu0 %v22_v0  ;;  %v20_v3 = vld [vmem:[%s204_s1 + $0x8] sm:$0xff]  ;;  %139 = vmatprep.mubr.msk.f32.mxu0 %vm30_vm0, %v17_v2  ;;  %v19_v4 = vld [vmem:[%s204_s1] sm:$0xff] }
   0x3   :  { %132 = vmatpush3.msra.mxu0 %v22_v0  ;;  %v18_v5 = vld [vmem:[%s205_s0 + $0x8] sm:$0xff]  ;;  %v122_v6 = vld [vmem:[%s206_s2] ss:$0 sm:$0xff] }
   0x4   :  { %133 = vmatprep.subr.mxu0 %v21_v1  ;;  %v113_v8 = vld [vmem:[%s207_s3 + $0x8] sm:$0xff]  ;;  %v112_v11 = vld [vmem:[%s207_s3] sm:$0xff] }
   0x5   :  { %134 = vmatpush3.msra.mxu0 %v21_v1 }
   0x6   :  { %135 = vmatprep.subr.mxu0 %v20_v3 }
   0x7   :  { %136 = vmatpush3.msra.mxu0 %v20_v3 }
   0x8   :  { %137 = vmatprep.subr.mxu0 %v19_v4 }
   0x9   :  { %138 = vmatpush3.msra.mxu0 %v19_v4 }
   0xa   :  { %140 = vmatmul.mubr.msk.f32.vlgmr.msra.gmra.mxu0 %vm30_vm0, %v18_v5 }
  0xca   :  { %v141_v7 = vpop.f32.mrf.mxu0 }
  0xcb   :  { %v109_v9 = vadd.f32 %v141_v7, %v122_v6 }
  0xcc   :  { %v103_v10 = vpop.f32.mrf.mxu0 }
  0xcd   :  { %v115_v12 = vadd.f32 %v113_v8, %v109_v9  ;;  %v104_v13 = vadd.f32 %v122_v6, %v103_v10 }
  0xcf   :  { %117 = vst.msk [vmem:[%s208_s4 + $0x8] sm:$0xff] %vm30_vm0, %v115_v12  ;;  %v114_v14 = vadd.f32 %v112_v11, %v104_v13 }
  0xd1   :  { %116 = vst.msk [vmem:[%s208_s4] sm:$0xff] %vm30_vm0, %v114_v14 }

// kernel: clip_forward.61
= control target key start
LH: loop header
LB: loop body
LE: loop exit
PB: predicated region body
PF: predicated region fallthrough
CT: control target
= control target key end

     0   :  { %vm34_vm0 = vcmask 130048   ;;  %v770_v0 = vmov 0.0   ;;  %vm771_vm1 = vmmov 0   ;;  %vm339_vm2 = vcmask 64512   ;;  %s896_s1 = inlined_call_operand.vmem [shape: f32[4,8,16], index: 1, kind: input, shape index: {}]   ;;  %s897_s0 = inlined_call_operand.vmem [shape: f32[4,8,16], index: 0, kind: input, shape index: {}]   ;;  %s898_s3 = inlined_call_operand.vmem [shape: f32[8,8], index: 3, kind: input, shape index: {}]   ;;  %s899_s2 = inlined_call_operand.vmem [shape: f32[4,8,16], index: 2, kind: input, shape index: {}]   ;;  %s900_s4 = inlined_call_operand.vmem [shape: f32[4,8,16], index: 4, kind: output, shape index: {}]  }
   0x1   :  { %712 = vmatprep.subr.mxu0 %v770_v0  ;;  %v25_v1 = vld [vmem:[%s896_s1] sm:$0xff]  ;;  %714 = vmatprep.mubr.msk.f32.mxu0 %vm771_vm1, %v770_v0  ;;  %v26_v3 = vld [vmem:[%s896_s1 + $0x8] sm:$0xff]  ;;  %v19_v6 = vld [vmem:[%s897_s0 + $0x10] sm:$0xff] }
   0x2   :  { %v17_v2 = vld [vmem:[%s897_s0] sm:$0xff]  ;;  %713 = vmatpush3.xpose.msk.msra.mxu0 %vm34_vm0, %v25_v1  ;;  %717 = vmatprep.subr.mxu1 %v770_v0  ;;  %v18_v5 = vld [vmem:[%s897_s0 + $0x8] sm:$0xff]  ;;  %v27_v7 = vld [vmem:[%s896_s1 + $0x10] sm:$0xff]  ;;  %v23_v11 = vmul.f32 0.25, %v19_v6 }
   0x3   :  { %v21_v4 = vmul.f32 0.25, %v17_v2  ;;  %718 = vmatpush3.xpose.msk.msra.mxu1 %vm34_vm0, %v26_v3  ;;  %722 = vmatprep.subr.mxu0 %v770_v0  ;;  %v22_v8 = vmul.f32 0.25, %v18_v5  ;;  %v20_v9 = vld [vmem:[%s897_s0 + $0x18] sm:$0xff]  ;;  %v33_v13 = vld [vmem:[%s898_s3] sm:$0xff]  ;;  %v30_v31 = vld [vmem:[%s899_s2 + $0x8] sm:$0xff] }
   0x4   :  { %719 = vmatprep.mubr.msk.f32.mxu1 %vm771_vm1, %v770_v0  ;;  %727 = vmatprep.subr.mxu1 %v770_v0  ;;  %v28_v10 = vld [vmem:[%s896_s1 + $0x18] sm:$0xff]  ;;  %v24_v12 = vmul.f32 0.25, %v20_v9  ;;  %v29_v30 = vld [vmem:[%s899_s2] sm:$0xff]  ;;  %v31_v44 = vld [vmem:[%s899_s2 + $0x10] sm:$0xff] }
   0x5   :  { %715 = vmatmul.mubr.msk.f32.vlgmr.msra.gmra.mxu0 %vm34_vm0, %v21_v4  ;;  %v32_v47 = vld [vmem:[%s899_s2 + $0x18] sm:$0xff] }
   0x6   :  { %723 = vmatpush3.xpose.msk.msra.mxu0 %vm34_vm0, %v27_v7  ;;  %720 = vmatmul.mubr.msk.f32.vlgmr.msra.gmra.mxu1 %vm34_vm0, %v22_v8 }
   0x7   :  { %724 = vmatprep.mubr.msk.f32.mxu0 %vm771_vm1, %v770_v0  ;;  %728 = vmatpush3.xpose.msk.msra.mxu1 %vm34_vm0, %v28_v10 }
   0x8   :  { %729 = vmatprep.mubr.msk.f32.mxu1 %vm771_vm1, %v770_v0  ;;  %732 = vmatprep.subr.mxu0 %v770_v0 }
   0x9   :  { %725 = vmatmul.mubr.msk.f32.vlgmr.msra.gmra.mxu0 %vm34_vm0, %v23_v11  ;;  %737 = vmatprep.subr.mxu1 %v770_v0 }
   0xa   :  { %730 = vmatmul.mubr.msk.f32.vlgmr.msra.gmra.mxu1 %vm34_vm0, %v24_v12  ;;  %734 = vmatprep.mubr.msk.f32.mxu0 %vm771_vm1, %v770_v0 }
   0xb   :  { %739 = vmatprep.mubr.msk.f32.mxu1 %vm771_vm1, %v770_v0  ;;  %733 = vmatpush3.msra.mxu0 %v29_v30 }
   0xc   :  { %742 = vmatprep.subr.mxu0 %v770_v0  ;;  %738 = vmatpush3.msra.mxu1 %v30_v31 }
   0xd   :  { %747 = vmatprep.subr.mxu1 %v770_v0 }
  0xc5   :  { %v107_v14 = vpop.f32.mrf.mxu0 }
  0xc6   :  { %v108_v15 = vadd.f32 %v107_v14, %v33_v13  ;;  %v183_v16 = vpop.f32.mrf.mxu1 }
  0xc7   :  { %v716_v17 = vpop.f32.mrf.mxu0  ;;  %v184_v18 = vadd.f32 %v183_v16, %v33_v13 }
  0xc8   :  { %v340_v19 = vsel %vm339_vm2, %v108_v15, -inf  ;;  %v721_v20 = vpop.f32.mrf.mxu1 }
  0xc9   :  { %341 = vmax.xlane.f32.xlu0 %v340_v19  ;;  %v259_v21 = vpop.f32.mrf.mxu0  ;;  %v343_v24 = vsel %vm339_vm2, %v184_v18, -inf }
  0xca   :  { %v260_v22 = vadd.f32 %v259_v21, %v33_v13  ;;  %v335_v23 = vpop.f32.mrf.mxu1 }
  0xcb   :  { %v726_v25 = vpop.f32.mrf.mxu0  ;;  %v336_v26 = vadd.f32 %v335_v23, %v33_v13 }
  0xcc   :  { %v346_v27 = vsel %vm339_vm2, %v260_v22, -inf  ;;  %v731_v28 = vpop.f32.mrf.mxu1 }
  0xcd   :  { %344 = vmax.xlane.f32.xlu0 %v343_v24  ;;  %347 = vmax.xlane.f32.xlu1 %v346_v27  ;;  %v349_v29 = vsel %vm339_vm2, %v336_v26, -inf }
  0xd1   :  { %350 = vmax.xlane.f32.xlu1 %v349_v29 }
 0x152   :  { %v342_v32 = vpop.xlane.xlu0 %341 }
 0x153   :  { %v352_v33 = vsub.f32 %v108_v15, %v342_v32 }
 0x155   :  { %v356_v34 = vmul.f32 1.442695, %v352_v33 }
 0x156   :  { %v345_v35 = vpop.xlane.xlu0 %344  ;;  %v348_v36 = vpop.xlane.xlu1 %347 }
 0x157   :  { %754 = vpow2.f32 %v356_v34  ;;  %v353_v37 = vsub.f32 %v184_v18, %v345_v35  ;;  %v354_v38 = vsub.f32 %v260_v22, %v348_v36 }
 0x159   :  { %v358_v39 = vmul.f32 1.442695, %v353_v37  ;;  %v360_v40 = vmul.f32 1.442695, %v354_v38 }
 0x15a   :  { %v351_v41 = vpop.xlane.xlu1 %350 }
 0x15b   :  { %756 = vpow2.f32 %v358_v39  ;;  %v355_v42 = vsub.f32 %v336_v26, %v351_v41 }
 0x15c   :  { %758 = vpow2.f32 %v360_v40 }
 0x15d   :  { %v362_v43 = vmul.f32 1.442695, %v355_v42 }
 0x15f   :  { %760 = vpow2.f32 %v362_v43 }
 0x164   :  { %v755_v45 = vpop.eup %754 }
 0x165   :  { %735 = vmatmul.mubr.msk.f32.vlgmr.msra.gmra.mxu0 %vm339_vm2, %v755_v45  ;;  %v364_v46 = vsel %vm339_vm2, %v755_v45, 0.0 }
 0x166   :  { %365 = vadd.xlane.f32.xlu0 %v364_v46  ;;  %743 = vmatpush3.msra.mxu0 %v31_v44 }
 0x167   :  { %744 = vmatprep.mubr.msk.f32.mxu0 %vm771_vm1, %v770_v0 }
 0x168   :  { %v757_v48 = vpop.eup %756 }
 0x169   :  { %v759_v49 = vpop.eup %758  ;;  %740 = vmatmul.mubr.msk.f32.vlgmr.msra.gmra.mxu1 %vm339_vm2, %v757_v48  ;;  %v367_v50 = vsel %vm339_vm2, %v757_v48, 0.0 }
 0x16a   :  { %745 = vmatmul.mubr.msk.f32.vlgmr.msra.gmra.mxu0 %vm339_vm2, %v759_v49  ;;  %748 = vmatpush3.msra.mxu1 %v32_v47  ;;  %v370_v51 = vsel %vm339_vm2, %v759_v49, 0.0 }
 0x16b   :  { %368 = vadd.xlane.f32.xlu1 %v367_v50  ;;  %371 = vadd.xlane.f32.xlu0 %v370_v51 }
 0x16c   :  { %v761_v52 = vpop.eup %760  ;;  %749 = vmatprep.mubr.msk.f32.mxu1 %vm771_vm1, %v770_v0 }
 0x16d   :  { %750 = vmatmul.mubr.msk.f32.vlgmr.msra.gmra.mxu1 %vm339_vm2, %v761_v52  ;;  %v373_v53 = vsel %vm339_vm2, %v761_v52, 0.0 }
 0x16f   :  { %374 = vadd.xlane.f32.xlu1 %v373_v53 }
 0x1ef   :  { %v366_v54 = vpop.xlane.xlu0 %365 }
 0x1f0   :  { %762 = vrcp.f32 %v366_v54 }
 0x1f4   :  { %v369_v55 = vpop.xlane.xlu1 %368  ;;  %v372_v56 = vpop.xlane.xlu0 %371 }
 0x1f5   :  { %764 = vrcp.f32 %v369_v55 }
 0x1f6   :  { %766 = vrcp.f32 %v372_v56 }
 0x1f8   :  { %v375_v57 = vpop.xlane.xlu1 %374 }
 0x1f9   :  { %768 = vrcp.f32 %v375_v57 }
 0x1fd   :  { %v763_v58 = vpop.eup %762 }
 0x202   :  { %v765_v62 = vpop.eup %764 }
 0x203   :  { %v767_v0 = vpop.eup %766 }
 0x206   :  { %v769_v6 = vpop.eup %768 }
 0x225   :  { %v445_v59 = vpop.f32.mrf.mxu0 }
 0x226   :  { %v672_v60 = vmul.f32 %v763_v58, %v445_v59 }
 0x227   :  { %v736_v61 = vpop.f32.mrf.mxu0 }
 0x228   :  { %676 = vst.msk [vmem:[%s900_s4] sm:$0xff] %vm34_vm0, %v672_v60 }
 0x229   :  { %v518_v63 = vpop.f32.mrf.mxu1 }
 0x22a   :  { %v673_v1 = vmul.f32 %v765_v62, %v518_v63  ;;  %v591_v2 = vpop.f32.mrf.mxu0 }
 0x22b   :  { %v674_v3 = vmul.f32 %v767_v0, %v591_v2  ;;  %v741_v4 = vpop.f32.mrf.mxu1 }
 0x22c   :  { %677 = vst.msk [vmem:[%s900_s4 + $0x8] sm:$0xff] %vm34_vm0, %v673_v1  ;;  %v746_v5 = vpop.f32.mrf.mxu0 }
 0x22d   :  { %678 = vst.msk [vmem:[%s900_s4 + $0x10] sm:$0xff] %vm34_vm0, %v674_v3  ;;  %v664_v7 = vpop.f32.mrf.mxu1 }
 0x22e   :  { %v675_v8 = vmul.f32 %v769_v6, %v664_v7 }
 0x22f   :  { %v751_v9 = vpop.f32.mrf.mxu1 }
 0x230   :  { %679 = vst.msk [vmem:[%s900_s4 + $0x18] sm:$0xff] %vm34_vm0, %v675_v8 }

// kernel: clip_forward.64
= control target key start
LH: loop header
LB: loop body
LE: loop exit
PB: predicated region body
PF: predicated region fallthrough
CT: control target
= control target key end

     0   :  { %vm22_vm0 = vcmask 261120   ;;  %s287_s0 = inlined_call_operand.vmem [shape: f32[16,32], index: 0, kind: input, shape index: {}]   ;;  %s288_s3 = inlined_call_operand.vmem [shape: f32[32,128], index: 3, kind: input, shape index: {}]   ;;  %s289_s1 = inlined_call_operand.vmem [shape: f32[1,32], index: 1, kind: input, shape index: {}]   ;;  %s290_s2 = inlined_call_operand.vmem [shape: f32[1,32], index: 2, kind: input, shape index: {}]   ;;  %s291_s4 = inlined_call_operand.vmem [shape: f32[1,128], index: 4, kind: input, shape index: {}]   ;;  %s292_s5 = inlined_call_operand.vmem [shape: f32[16,128], index: 5, kind: output, shape index: {}]  }
   0x1   :  { %v20_v0 = vld [vmem:[%s287_s0] sm:$0xff]  ;;  %v21_v1 = vld [vmem:[%s287_s0 + $0x8] sm:$0xff]  ;;  %v71_v14 = vld [vmem:[%s288_s3 + $0x18] sm:$0xff] }
   0x2   :  { %v23_v2 = vsel %vm22_vm0, %v20_v0, 0.0  ;;  %v26_v3 = vsel %vm22_vm0, %v21_v1, 0.0  ;;  %v70_v15 = vld [vmem:[%s288_s3 + $0x10] sm:$0xff]  ;;  %195 = vmatprep.subr.mxu0 %v71_v14  ;;  %v69_v16 = vld [vmem:[%s288_s3 + $0x8] sm:$0xff]  ;;  %v68_v17 = vld [vmem:[%s288_s3] sm:$0xff] }
   0x3   :  { %24 = vadd.xlane.f32.xlu0 %v23_v2  ;;  %196 = vmatpush3.msra.mxu0 %v71_v14  ;;  %v182_v25 = vld [vmem:[%s289_s1] ss:$0 sm:$0xff] }
   0x4   :  { %197 = vmatprep.subr.mxu0 %v70_v15  ;;  %v183_v27 = vld [vmem:[%s290_s2] ss:$0 sm:$0xff] }
   0x5   :  { %198 = vmatpush3.msra.mxu0 %v70_v15  ;;  %v184_v34 = vld [vmem:[%s291_s4] ss:$0 sm:$0xff] }
   0x6   :  { %199 = vmatprep.subr.mxu0 %v69_v16 }
   0x7   :  { %27 = vadd.xlane.f32.xlu0 %v26_v3  ;;  %200 = vmatpush3.msra.mxu0 %v69_v16 }
   0x8   :  { %201 = vmatprep.subr.mxu0 %v68_v17 }
   0x9   :  { %202 = vmatpush3.msra.mxu0 %v68_v17 }
  0x8c   :  { %v25_v4 = vpop.xlane.xlu0 %24 }
  0x8d   :  { %v30_v5 = vmul.f32 0.03125, %v25_v4 }
  0x8f   :  { %v32_v6 = vsub.f32 %v20_v0, %v30_v5 }
  0x90   :  { %v28_v7 = vpop.xlane.xlu0 %27 }
  0x91   :  { %v31_v8 = vmul.f32 0.03125, %v28_v7  ;;  %v34_v9 = vmul.f32 %v32_v6, %v32_v6 }
  0x93   :  { %v33_v10 = vsub.f32 %v21_v1, %v31_v8  ;;  %v36_v11 = vsel %vm22_vm0, %v34_v9, 0.0 }
  0x94   :  { %37 = vadd.xlane.f32.xlu1 %v36_v11 }
  0x95   :  { %v35_v12 = vmul.f32 %v33_v10, %v33_v10 }
  0x97   :  { %v39_v13 = vsel %vm22_vm0, %v35_v12, 0.0 }
  0x98   :  { %40 = vadd.xlane.f32.xlu1 %v39_v13 }
 0x11d   :  { %v38_v18 = vpop.xlane.xlu1 %37 }
 0x11e   :  { %v42_v19 = vmul.f32 0.03125, %v38_v18 }
 0x120   :  { %v44_v20 = vadd.f32 1e-05, %v42_v19 }
 0x121   :  { %v41_v21 = vpop.xlane.xlu1 %40 }
 0x122   :  { %206 = vrsqrt.f32 %v44_v20  ;;  %v43_v22 = vmul.f32 0.03125, %v41_v21 }
 0x124   :  { %v45_v23 = vadd.f32 1e-05, %v43_v22 }
 0x126   :  { %208 = vrsqrt.f32 %v45_v23 }
 0x12f   :  { %v207_v24 = vpop.eup %206 }
 0x130   :  { %v48_v26 = vmul.f32 %v207_v24, %v32_v6 }
 0x132   :  { %v57_v28 = vmul.f32 %v182_v25, %v48_v26 }
 0x133   :  { %v209_v29 = vpop.eup %208 }
 0x134   :  { %v49_v30 = vmul.f32 %v209_v29, %v33_v10  ;;  %v66_v31 = vadd.f32 %v183_v27, %v57_v28 }
 0x136   :  { %v58_v32 = vmul.f32 %v182_v25, %v49_v30  ;;  %203 = vmatprep.mubr.msk.f32.mxu0 %vm22_vm0, %v66_v31 }
 0x138   :  { %v67_v33 = vadd.f32 %v183_v27, %v58_v32 }
 0x13a   :  { %204 = vmatmul.mubr.msk.f32.vlgmr.msra.gmra.mxu0 %vm22_vm0, %v67_v33 }
 0x1fa   :  { %v205_v35 = vpop.f32.mrf.mxu0 }
 0x1fb   :  { %v157_v36 = vadd.f32 %v205_v35, %v184_v34 }
 0x1fc   :  { %v151_v37 = vpop.f32.mrf.mxu0 }
 0x1fd   :  { %v188_v38 = vmul.f32 -1.702, %v157_v36  ;;  %v152_v39 = vadd.f32 %v184_v34, %v151_v37 }
 0x1ff   :  { %v166_v40 = vmul.f32 1.442695, %v188_v38  ;;  %v187_v41 = vmul.f32 -1.702, %v152_v39 }
 0x201   :  { %210 = vpow2.f32 %v166_v40  ;;  %v164_v42 = vmul.f32 1.442695, %v187_v41 }
 0x203   :  { %212 = vpow2.f32 %v164_v42 }
 0x20e   :  { %v211_v43 = vpop.eup %210 }
 0x20f   :  { %v169_v44 = vadd.f32 1.0, %v211_v43 }
 0x210   :  { %v213_v45 = vpop.eup %212 }
 0x211   :  { %214 = vrcp.f32 %v169_v44  ;;  %v168_v46 = vadd.f32 1.0, %v213_v45 }
 0x213   :  { %216 = vrcp.f32 %v168_v46 }
 0x21e   :  { %v215_v47 = vpop.eup %214 }
 0x21f   :  { %v175_v48 = vmul.f32 %v215_v47, %v157_v36 }
 0x220   :  { %v217_v49 = vpop.eup %216 }
 0x221   :  { %177 = vst [vmem:[%s292_s5 + $0x8] sm:$0xff] %v175_v48  ;;  %v174_v50 = vmul.f32 %v217_v49, %v152_v39 }
 0x223   :  { %176 = vst [vmem:[%s292_s5] sm:$0xff] %v174_v50 }

// kernel: clip_forward.63
= control target key start
LH: loop header
LB: loop body
LE: loop exit
PB: predicated region body
PF: predicated region fallthrough
CT: control target
= control target key end

     0   :  { %vm33_vm0 = vcmask 261120   ;;  %vm133_vm1 = vcmask 64512   ;;  %s325_s1 = inlined_call_operand.vmem [shape: f32[32,8], index: 1, kind: input, shape index: {}]   ;;  %s326_s0 = inlined_call_operand.vmem [shape: f32[16,32], index: 0, kind: input, shape index: {}]   ;;  %s327_s3 = inlined_call_operand.vmem [shape: f32[8,32], index: 3, kind: input, shape index: {}]   ;;  %s328_s2 = inlined_call_operand.vmem [shape: f32[1,8], index: 2, kind: input, shape index: {}]   ;;  %s329_s4 = inlined_call_operand.vmem [shape: f32[1,32], index: 4, kind: input, shape index: {}]   ;;  %s330_s5 = inlined_call_operand.vmem [shape: f32[16,32], index: 5, kind: output, shape index: {}]  }
   0x1   :  { %v25_v0 = vld [vmem:[%s325_s1 + $0x18] sm:$0xff]  ;;  %v24_v1 = vld [vmem:[%s325_s1 + $0x10] sm:$0xff]  ;;  %v20_v2 = vld [vmem:[%s326_s0] sm:$0xff] }
   0x2   :  { %238 = vmatprep.subr.mxu0 %v25_v0  ;;  %v23_v3 = vld [vmem:[%s325_s1 + $0x8] sm:$0xff]  ;;  %246 = vmatprep.mubr.msk.f32.mxu0 %vm33_vm0, %v20_v2  ;;  %v22_v4 = vld [vmem:[%s325_s1] sm:$0xff] }
   0x3   :  { %239 = vmatpush3.msra.mxu0 %v25_v0  ;;  %v21_v5 = vld [vmem:[%s326_s0 + $0x8] sm:$0xff]  ;;  %v125_v6 = vld [vmem:[%s327_s3] sm:$0xff] }
   0x4   :  { %240 = vmatprep.subr.mxu0 %v24_v1  ;;  %249 = vmatprep.subr.mxu1 %v125_v6  ;;  %v223_v7 = vld [vmem:[%s328_s2] ss:$0 sm:$0xff] }
   0x5   :  { %241 = vmatpush3.msra.mxu0 %v24_v1  ;;  %250 = vmatpush3.msra.mxu1 %v125_v6  ;;  %v226_v22 = vld [vmem:[%s329_s4] ss:$0 sm:$0xff] }
   0x6   :  { %242 = vmatprep.subr.mxu0 %v23_v3 }
   0x7   :  { %243 = vmatpush3.msra.mxu0 %v23_v3 }
   0x8   :  { %244 = vmatprep.subr.mxu0 %v22_v4 }
   0x9   :  { %245 = vmatpush3.msra.mxu0 %v22_v4 }
   0xa   :  { %247 = vmatmul.mubr.msk.f32.vlgmr.msra.gmra.mxu0 %vm33_vm0, %v21_v5 }
  0xca   :  { %v248_v8 = vpop.f32.mrf.mxu0 }
  0xcb   :  { %v112_v9 = vadd.f32 %v248_v8, %v223_v7 }
  0xcc   :  { %v106_v10 = vpop.f32.mrf.mxu0 }
  0xcd   :  { %v118_v11 = vmul.f32 0.70710677, %v112_v9  ;;  %v107_v12 = vadd.f32 %v223_v7, %v106_v10  ;;  %v116_v19 = vmul.f32 0.5, %v112_v9 }
  0xcf   :  { %254 = verf.f32 %v118_v11  ;;  %v117_v13 = vmul.f32 0.70710677, %v107_v12  ;;  %v115_v17 = vmul.f32 0.5, %v107_v12 }
  0xd1   :  { %256 = verf.f32 %v117_v13 }
  0xdc   :  { %v255_v14 = vpop.eup %254 }
  0xdd   :  { %v122_v16 = vadd.f32 1.0, %v255_v14 }
  0xde   :  { %v257_v15 = vpop.eup %256 }
  0xdf   :  { %v121_v18 = vadd.f32 1.0, %v257_v15  ;;  %v124_v21 = vmul.f32 %v122_v16, %v116_v19 }
  0xe1   :  { %v123_v20 = vmul.f32 %v121_v18, %v115_v17 }
  0xe3   :  { %251 = vmatprep.mubr.msk.f32.mxu1 %vm133_vm1, %v123_v20 }
  0xe4   :  { %252 = vmatmul.mubr.msk.f32.vlgmr.msra.gmra.mxu1 %vm133_vm1, %v124_v21 }
 0x1a4   :  { %v253_v23 = vpop.f32.mrf.mxu1 }
 0x1a5   :  { %v212_v24 = vadd.f32 %v253_v23, %v226_v22 }
 0x1a6   :  { %v206_v25 = vpop.f32.mrf.mxu1 }
 0x1a7   :  { %v216_v26 = vadd.f32 %v212_v24, %v21_v5  ;;  %v207_v27 = vadd.f32 %v226_v22, %v206_v25 }
 0x1a9   :  { %218 = vst.msk [vmem:[%s330_s5 + $0x8] sm:$0xff] %vm33_vm0, %v216_v26  ;;  %v215_v28 = vadd.f32 %v207_v27, %v20_v2 }
 0x1ab   :  { %217 = vst.msk [vmem:[%s330_s5] sm:$0xff] %vm33_vm0, %v215_v28 }

// kernel: clip_forward.65
= control target key start
LH: loop header
LB: loop body
LE: loop exit
PB: predicated region body
PF: predicated region fallthrough
CT: control target
= control target key end

     0   :  { %vm121_vm0 = vcmask 261120   ;;  %s276_s1 = inlined_call_operand.vmem [shape: f32[128,32], index: 1, kind: input, shape index: {}]   ;;  %s277_s0 = inlined_call_operand.vmem [shape: f32[16,128], index: 0, kind: input, shape index: {}]   ;;  %s278_s2 = inlined_call_operand.vmem [shape: f32[1,32], index: 2, kind: input, shape index: {}]   ;;  %s279_s3 = inlined_call_operand.vmem [shape: f32[16,32], index: 3, kind: input, shape index: {}]   ;;  %s280_s4 = inlined_call_operand.vmem [shape: f32[16,32], index: 4, kind: output, shape index: {}]  }
   0x1   :  { %v34_v0 = vld [vmem:[%s276_s1 + $0x78] sm:$0xff]  ;;  %v33_v1 = vld [vmem:[%s276_s1 + $0x70] sm:$0xff]  ;;  %v32_v2 = vld [vmem:[%s276_s1 + $0x68] sm:$0xff] }
   0x2   :  { %147 = vmatprep.subr.mxu0 %v34_v0  ;;  %v31_v3 = vld [vmem:[%s276_s1 + $0x60] sm:$0xff]  ;;  %v30_v5 = vld [vmem:[%s276_s1 + $0x58] sm:$0xff]  ;;  %v29_v6 = vld [vmem:[%s276_s1 + $0x50] sm:$0xff] }
   0x3   :  { %148 = vmatpush3.msra.mxu0 %v34_v0  ;;  %v17_v4 = vld [vmem:[%s277_s0] sm:$0xff]  ;;  %v28_v7 = vld [vmem:[%s276_s1 + $0x48] sm:$0xff]  ;;  %v26_v9 = vld [vmem:[%s276_s1 + $0x38] sm:$0xff] }
   0x4   :  { %149 = vmatprep.subr.mxu0 %v33_v1  ;;  %179 = vmatprep.mubr.f32.mxu0 %v17_v4  ;;  %v27_v8 = vld [vmem:[%s276_s1 + $0x40] sm:$0xff]  ;;  %v25_v10 = vld [vmem:[%s276_s1 + $0x30] sm:$0xff]  ;;  %v24_v11 = vld [vmem:[%s276_s1 + $0x28] sm:$0xff] }
   0x5   :  { %150 = vmatpush3.msra.mxu0 %v33_v1  ;;  %v23_v12 = vld [vmem:[%s276_s1 + $0x20] sm:$0xff]  ;;  %v22_v13 = vld [vmem:[%s276_s1 + $0x18] sm:$0xff]  ;;  %v21_v14 = vld [vmem:[%s276_s1 + $0x10] sm:$0xff] }
   0x6   :  { %151 = vmatprep.subr.mxu0 %v32_v2  ;;  %v20_v15 = vld [vmem:[%s276_s1 + $0x8] sm:$0xff]  ;;  %v19_v16 = vld [vmem:[%s276_s1] sm:$0xff] }
   0x7   :  { %152 = vmatpush3.msra.mxu0 %v32_v2  ;;  %v18_v17 = vld [vmem:[%s277_s0 + $0x8] sm:$0xff]  ;;  %v128_v18 = vld [vmem:[%s278_s2] ss:$0 sm:$0xff] }
   0x8   :  { %153 = vmatprep.subr.mxu0 %v31_v3  ;;  %v118_v20 = vld [vmem:[%s279_s3 + $0x8] sm:$0xff]  ;;  %v117_v23 = vld [vmem:[%s279_s3] sm:$0xff] }
   0x9   :  { %154 = vmatpush3.msra.mxu0 %v31_v3 }
   0xa   :  { %155 = vmatprep.subr.mxu0 %v30_v5 }
   0xb   :  { %156 = vmatpush3.msra.mxu0 %v30_v5 }
   0xc   :  { %157 = vmatprep.subr.mxu0 %v29_v6 }
   0xd   :  { %158 = vmatpush3.msra.mxu0 %v29_v6 }
   0xe   :  { %159 = vmatprep.subr.mxu0 %v28_v7 }
   0xf   :  { %160 = vmatpush3.msra.mxu0 %v28_v7 }
  0x10   :  { %161 = vmatprep.subr.mxu0 %v27_v8 }
  0x11   :  { %162 = vmatpush3.msra.mxu0 %v27_v8 }
  0x12   :  { %163 = vmatprep.subr.mxu0 %v26_v9 }
  0x13   :  { %164 = vmatpush3.msra.mxu0 %v26_v9 }
  0x14   :  { %165 = vmatprep.subr.mxu0 %v25_v10 }
  0x15   :  { %166 = vmatpush3.msra.mxu0 %v25_v10 }
  0x16   :  { %167 = vmatprep.subr.mxu0 %v24_v11 }
  0x17   :  { %168 = vmatpush3.msra.mxu0 %v24_v11 }
  0x18   :  { %169 = vmatprep.subr.mxu0 %v23_v12 }
  0x19   :  { %170 = vmatpush3.msra.mxu0 %v23_v12 }
  0x1a   :  { %171 = vmatprep.subr.mxu0 %v22_v13 }
  0x1b   :  { %172 = vmatpush3.msra.mxu0 %v22_v13 }
  0x1c   :  { %173 = vmatprep.subr.mxu0 %v21_v14 }
  0x1d   :  { %174 = vmatpush3.msra.mxu0 %v21_v14 }
  0x1e   :  { %175 = vmatprep.subr.mxu0 %v20_v15 }
  0x1f   :  { %176 = vmatpush3.msra.mxu0 %v20_v15 }
  0x20   :  { %177 = vmatprep.subr.mxu0 %v19_v16 }
  0x21   :  { %178 = vmatpush3.msra.mxu0 %v19_v16 }
  0x22   :  { %180 = vmatmul.mubr.f32.vlgmr.msra.gmra.mxu0 %v18_v17 }
  0xe2   :  { %v181_v19 = vpop.f32.mrf.mxu0 }
  0xe3   :  { %v114_v21 = vadd.f32 %v181_v19, %v128_v18 }
  0xe4   :  { %v108_v22 = vpop.f32.mrf.mxu0 }
  0xe5   :  { %v120_v24 = vadd.f32 %v118_v20, %v114_v21  ;;  %v109_v25 = vadd.f32 %v128_v18, %v108_v22 }
  0xe7   :  { %123 = vst.msk [vmem:[%s280_s4 + $0x8] sm:$0xff] %vm121_vm0, %v120_v24  ;;  %v119_v26 = vadd.f32 %v117_v23, %v109_v25 }
  0xe9   :  { %122 = vst.msk [vmem:[%s280_s4] sm:$0xff] %vm121_vm0, %v119_v26 }

// kernel: clip_forward.73
= control target key start
LH: loop header
LB: loop body
LE: loop exit
PB: predicated region body
PF: predicated region fallthrough
CT: control target
= control target key end

     0   :  { %v115_v0 = vmov 0.0   ;;  %vm116_vm0 = vmmov 0   ;;  %vm16_vm1 = vcmask 261120   ;;  %vm90_vm2 = vcmask 11264   ;;  %s150_s1 = inlined_call_operand.vmem [shape: f32[32,2], index: 1, kind: input, shape index: {}]   ;;  %s151_s0 = inlined_call_operand.vmem [shape: f32[4,32], index: 0, kind: input, shape index: {}]   ;;  %s152_s2 = inlined_call_operand.vmem [shape: f32[4,2], index: 2, kind: output, shape index: {}]  }
   0x1   :  { %102 = vmatprep.subr.mxu0 %v115_v0  ;;  %v15_v1 = vld [vmem:[%s150_s1 + $0x18] sm:$0xff]  ;;  %v14_v2 = vld [vmem:[%s150_s1 + $0x10] sm:$0xff]  ;;  %110 = vmatprep.mubr.msk.f32.mxu0 %vm116_vm0, %v115_v0  ;;  %v13_v3 = vld [vmem:[%s150_s1 + $0x8] sm:$0xff] }
   0x2   :  { %103 = vmatpush3.msra.mxu0 %v15_v1  ;;  %v12_v4 = vld [vmem:[%s150_s1] sm:$0xff] }
   0x3   :  { %104 = vmatprep.subr.mxu0 %v115_v0  ;;  %v11_v5 = vld [vmem:[%s151_s0] sm:$0xf] }
   0x4   :  { %105 = vmatpush3.msra.mxu0 %v14_v2 }
   0x5   :  { %106 = vmatprep.subr.mxu0 %v115_v0 }
   0x6   :  { %107 = vmatpush3.msra.mxu0 %v13_v3 }
   0x7   :  { %108 = vmatprep.subr.mxu0 %v115_v0 }
   0x8   :  { %109 = vmatpush3.msra.mxu0 %v12_v4 }
   0x9   :  { %111 = vmatmul.mubr.msk.f32.vlgmr.msra.gmra.mxu0 %vm16_vm1, %v11_v5 }
  0xc9   :  { %v86_v6 = vpop.f32.mrf.mxu0 }
  0xca   :  { %91 = vst.msk [vmem:[%s152_s2] sm:$0xf] %vm90_vm2, %v86_v6 }
  0xcb   :  { %v112_v7 = vpop.f32.mrf.mxu0 }

// kernel: clip_forward.72
= control target key start
LH: loop header
LB: loop body
LE: loop exit
PB: predicated region body
PF: predicated region fallthrough
CT: control target
= control target key end

     0   :  { %vm18_vm0 = vcmask 254976   ;;  %v155_v7 = vmov 0.0   ;;  %vm156_vm1 = vmmov 0   ;;  %vm53_vm2 = vcmask 261120   ;;  %s209_s0 = inlined_call_operand.vmem [shape: f32[2,32], index: 0, kind: input, shape index: {}]   ;;  %s210_s3 = inlined_call_operand.vmem [shape: f32[32,32], index: 3, kind: input, shape index: {}]   ;;  %s211_s1 = inlined_call_operand.vmem [shape: f32[1,32], index: 1, kind: input, shape index: {}]   ;;  %s212_s2 = inlined_call_operand.vmem [shape: f32[1,32], index: 2, kind: input, shape index: {}]   ;;  %s213_s4 = inlined_call_operand.vmem [shape: f32[2,32], index: 4, kind: output, shape index: {}]  }
   0x1   :  { %v17_v0 = vld [vmem:[%s209_s0] sm:$0x3]  ;;  %140 = vmatprep.subr.mxu0 %v155_v7  ;;  %v52_v8 = vld [vmem:[%s210_s3 + $0x18] sm:$0xff]  ;;  %v51_v9 = vld [vmem:[%s210_s3 + $0x10] sm:$0xff]  ;;  %148 = vmatprep.mubr.msk.f32.mxu0 %vm156_vm1, %v155_v7 }
   0x2   :  { %v19_v1 = vsel %vm18_vm0, %v17_v0, 0.0  ;;  %141 = vmatpush3.msra.mxu0 %v52_v8  ;;  %v50_v10 = vld [vmem:[%s210_s3 + $0x8] sm:$0xff]  ;;  %v49_v11 = vld [vmem:[%s210_s3] sm:$0xff] }
   0x3   :  { %20 = vadd.xlane.f32.xlu0 %v19_v1  ;;  %142 = vmatprep.subr.mxu0 %v155_v7  ;;  %v132_v16 = vld [vmem:[%s211_s1] ss:$0 sm:$0xff] }
   0x4   :  { %143 = vmatpush3.msra.mxu0 %v51_v9  ;;  %v133_v18 = vld [vmem:[%s212_s2] ss:$0 sm:$0xff] }
   0x5   :  { %144 = vmatprep.subr.mxu0 %v155_v7 }
   0x6   :  { %145 = vmatpush3.msra.mxu0 %v50_v10 }
   0x7   :  { %146 = vmatprep.subr.mxu0 %v155_v7 }
   0x8   :  { %147 = vmatpush3.msra.mxu0 %v49_v11 }
  0x8c   :  { %v21_v2 = vpop.xlane.xlu0 %20 }
  0x8d   :  { %v23_v3 = vmul.f32 0.03125, %v21_v2 }
  0x8f   :  { %v24_v4 = vsub.f32 %v17_v0, %v23_v3 }
  0x91   :  { %v25_v5 = vmul.f32 %v24_v4, %v24_v4 }
  0x93   :  { %v26_v6 = vsel %vm18_vm0, %v25_v5, 0.0 }
  0x94   :  { %27 = vadd.xlane.f32.xlu0 %v26_v6 }
 0x11d   :  { %v28_v12 = vpop.xlane.xlu0 %27 }
 0x11e   :  { %v29_v13 = vmul.f32 0.03125, %v28_v12 }
 0x120   :  { %v30_v14 = vadd.f32 1e-05, %v29_v13 }
 0x122   :  { %153 = vrsqrt.f32 %v30_v14 }
 0x12f   :  { %v154_v15 = vpop.eup %153 }
 0x130   :  { %v32_v17 = vmul.f32 %v154_v15, %v24_v4 }
 0x132   :  { %v40_v19 = vmul.f32 %v132_v16, %v32_v17 }
 0x134   :  { %v48_v20 = vadd.f32 %v133_v18, %v40_v19 }
 0x136   :  { %149 = vmatmul.mubr.msk.f32.vlgmr.msra.gmra.mxu0 %vm53_vm2, %v48_v20 }
 0x1f6   :  { %v123_v21 = vpop.f32.mrf.mxu0 }
 0x1f7   :  { %127 = vst.msk [vmem:[%s213_s4] sm:$0x3] %vm18_vm0, %v123_v21 }
 0x1f8   :  { %v150_v22 = vpop.f32.mrf.mxu0 }

</bundles_post_ra>
